<compile_context>
chip_gen: v7x
topology: tpu7x:2x2x1
jax: 0.10.0
libtpu: 0.0.40
codegen_flags: <defaults>
</compile_context>

<pallas_src>
import jax
import jax.numpy as jnp
from jax.experimental import pallas as pl
from jax.experimental.pallas import tpu as pltpu

# ----------------------------- sizes ---------------------------------------
B = 2      # batch
S = 8      # seq len (== out_seq_len)
V = 32     # vocab (decoder.output_size)
E = 16     # embedding dim
H = 32     # GRU hidden dim

PREC = jax.lax.Precision.HIGHEST   # keep f32 matmuls exact (one-hot folds etc.)


# ----------------------------- kernel --------------------------------------
def seq2seq_kernel(enc_gx_ref, enc_wh_ref, enc_bh_ref,
                   dec_gx0_ref, dec_table_ref, dec_wh_ref, dec_whw_ref,
                   dec_bfull_ref,
                   out_ref):
    s, b, h3 = enc_gx_ref.shape            # (S, B, 3H) layout: per-step reads are
    hdim = h3 // 3                         # contiguous leading-index (B, 3H) loads
    v = dec_table_ref.shape[0]

    # ---- hoist all weight / bias loads out of the (unrolled) loops ----
    enc_wh = enc_wh_ref[...]                                     # (H, 3H)
    dec_table = dec_table_ref[...]                               # (V, 3H)  (emb@Wx + bx folded)
    dec_wh = dec_wh_ref[...]                                     # (H, 3H)  priming only
    dec_whw = dec_whw_ref[...]                                   # (H, 3H + V) fused
    enc_bh = jnp.broadcast_to(enc_bh_ref[...], (b, h3))          # (B, 3H)
    dec_bfull = jnp.broadcast_to(dec_bfull_ref[...], (b, h3 + v))  # (B, 3H + V)
    dec_bh = dec_bfull[:, :h3]                                   # (B, 3H)

    def gru_combine(gx, gh, h):
        # PyTorch GRU gate order: r, z, n.  r and z share ONE fused sigmoid over
        # the contiguous first 2H lanes (one EUP round trip instead of two).
        rz = jax.nn.sigmoid(gx[:, :2 * hdim] + gh[:, :2 * hdim])
        r = rz[:, :hdim]
        z = rz[:, hdim:]
        n = jnp.tanh(gx[:, 2 * hdim:] + r * gh[:, 2 * hdim:])
        return (1.0 - z) * n + z * h

    # ----- encoder: only the recurrent h @ Wh matmul lives in the kernel -----
    h = jnp.zeros((b, hdim), jnp.float32)
    # step 0: h == 0  =>  gh = bh (skip the matmul)
    h = gru_combine(enc_gx_ref[0], enc_bh, h)
    for t in range(1, s):
        gh = jnp.dot(h, enc_wh, precision=PREC,
                     preferred_element_type=jnp.float32) + enc_bh
        h = gru_combine(enc_gx_ref[t], gh, h)

    # ----- decoder: greedy decode, one fused (B,H)x(H,3H+V) matmul per step -----
    # prime gh_0 from the encoder hidden using only the gate columns (H, 3H)
    gh = jnp.dot(h, dec_wh, precision=PREC,
                 preferred_element_type=jnp.float32) + dec_bh
    gx = dec_gx0_ref[...]                                        # precomputed dec_table[src[:, 0]]

    logits_steps = []
    for t in range(s):
        h = gru_combine(gx, gh, h)
        fused = jnp.dot(h, dec_whw, precision=PREC,
                        preferred_element_type=jnp.float32) + dec_bfull  # (B, 3H+V)
        gh = fused[:, :h3]                                       # gates for step t+1
        logits = fused[:, h3:]                                   # logits for step t

        # greedy next token: max + VPU equality (one XLU round trip fewer than
        # argmax); exact logit ties would light multiple lanes but are
        # measure-zero with random float weights.
        if t + 1 < s:
            mx = jnp.max(logits, axis=1, keepdims=True)
            tok_oh = (logits == mx).astype(jnp.float32)
            gx = jnp.dot(tok_oh, dec_table, precision=PREC,
                         preferred_element_type=jnp.float32)

        logits_steps.append(logits)

    # single lane-dense store of raw logits: (B, S*V) = (2, 256)
    out_ref[...] = jnp.concatenate(logits_steps, axis=1)


# ----------------------------- wrapper --------------------------------------
def seq2seq_forward(source_tokens, params):
    # Non-recurrent work precomputed by XLA (wide, parallel over S):
    #   encoder input gates for every timestep (embedding + Wx + bx folded),
    #   transposed to (S, B, 3H) for contiguous per-step kernel reads.
    enc_gx_all = (jnp.dot(jnp.take(params["enc_emb"], source_tokens, axis=0),
                          params["enc_wx"], precision=PREC) + params["enc_bx"])   # (B, S, 3H)
    enc_gx_all = jnp.transpose(enc_gx_all, (1, 0, 2))                              # (S, B, 3H)

    # decoder folded embedding+Wx+bx table (one-hot rows sum to 1 => bias folds)
    dec_table = jnp.dot(params["dec_emb"], params["dec_wx"],
                        precision=PREC) + params["dec_bx"]                         # (V, 3H)
    dec_gx0 = jnp.take(dec_table, source_tokens[:, 0], axis=0)                     # (B, 3H)

    # fuse dec_wh with out_w (one (H, 3H+V) = (32, 128) weight) and the biases
    dec_whw = jnp.concatenate([params["dec_wh"], params["out_w"]], axis=1)         # (H, 3H+V)
    dec_bfull = jnp.concatenate([params["dec_bh"], params["out_b"]], axis=1)       # (1, 3H+V)

    args = (enc_gx_all, params["enc_wh"], params["enc_bh"],
            dec_gx0, dec_table, params["dec_wh"], dec_whw, dec_bfull)

    vmem_spec = pl.BlockSpec(memory_space=pltpu.MemorySpace.VMEM)
    logits_flat = pl.pallas_call(
        seq2seq_kernel,
        out_shape=jax.ShapeDtypeStruct((B, S * V), jnp.float32),
        in_specs=[vmem_spec] * len(args),
        out_specs=vmem_spec,
    )(*args)

    # log_softmax done by XLA, off the serial recurrence path (monotone => same
    # greedy tokens as the in-kernel max over raw logits).
    return jax.nn.log_softmax(logits_flat.reshape(B, S, V), axis=-1)


# ----------------------------- pure-JAX reference ---------------------------
def seq2seq_reference(source_tokens, params):
    src_oh = jax.nn.one_hot(source_tokens, V, dtype=jnp.float32)

    def gru_step(x, h, wx, wh, bx, bh):
        gx = jnp.dot(x, wx, precision=PREC) + bx
        gh = jnp.dot(h, wh, precision=PREC) + bh
        r = jax.nn.sigmoid(gx[:, :H] + gh[:, :H])
        z = jax.nn.sigmoid(gx[:, H:2 * H] + gh[:, H:2 * H])
        n = jnp.tanh(gx[:, 2 * H:] + r * gh[:, 2 * H:])
        return (1.0 - z) * n + z * h

    h = jnp.zeros((B, H), jnp.float32)
    for t in range(S):
        x = jnp.dot(src_oh[:, t, :], params["enc_emb"], precision=PREC)
        h = gru_step(x, h, params["enc_wx"], params["enc_wh"],
                     params["enc_bx"], params["enc_bh"])

    tok_oh = src_oh[:, 0, :]
    outs = []
    for t in range(S):
        x = jnp.dot(tok_oh, params["dec_emb"], precision=PREC)
        h = gru_step(x, h, params["dec_wx"], params["dec_wh"],
                     params["dec_bx"], params["dec_bh"])
        logits = jnp.dot(h, params["out_w"], precision=PREC) + params["out_b"]
        logp = jax.nn.log_softmax(logits, axis=1)
        outs.append(logp)
        nxt = jnp.argmax(logp, axis=1)
        tok_oh = jax.nn.one_hot(nxt, V, dtype=jnp.float32)
    return jnp.stack(outs, axis=1)


# ----------------------------- main ------------------------------------------
if __name__ == "__main__":
    key = jax.random.PRNGKey(0)
    keys = jax.random.split(key, 14)

    def w(k, shape, scale=0.1):
        return (scale * jax.random.normal(k, shape)).astype(jnp.float32)

    params = {
        # encoder: Embedding(V, E) + GRU(E, H)
        "enc_emb": w(keys[0], (V, E)),
        "enc_wx":  w(keys[1], (E, 3 * H)),
        "enc_wh":  w(keys[2], (H, 3 * H)),
        "enc_bx":  w(keys[3], (1, 3 * H)),
        "enc_bh":  w(keys[4], (1, 3 * H)),
        # decoder: Embedding(V, E) + GRU(E, H) + Linear(H, V) + log_softmax
        "dec_emb": w(keys[5], (V, E)),
        "dec_wx":  w(keys[6], (E, 3 * H)),
        "dec_wh":  w(keys[7], (H, 3 * H)),
        "dec_bx":  w(keys[8], (1, 3 * H)),
        "dec_bh":  w(keys[9], (1, 3 * H)),
        "out_w":   w(keys[10], (H, V)),
        "out_b":   w(keys[11], (1, V)),
    }

    source = jax.random.randint(keys[12], (B, S), 0, V, dtype=jnp.int32)

    out = seq2seq_forward(source, params)
    out = jax.block_until_ready(out)

    ref = seq2seq_reference(source, params)
    assert out.shape == (B, S, V)
    assert bool(jnp.all(jnp.isfinite(out)))
    assert bool(jnp.allclose(out, ref, atol=1e-4, rtol=1e-4))

    print("KERNEL_OK")
</pallas_src>

<mosaic_0001>
module attributes {stable_mosaic.version = 11 : i64} {
  func.func @seq2seq_kernel(%arg0: memref<8x2x96xf32, #tpu.memory_space<vmem>>, %arg1: memref<32x96xf32, #tpu.memory_space<vmem>>, %arg2: memref<1x96xf32, #tpu.memory_space<vmem>>, %arg3: memref<2x96xf32, #tpu.memory_space<vmem>>, %arg4: memref<32x96xf32, #tpu.memory_space<vmem>>, %arg5: memref<32x96xf32, #tpu.memory_space<vmem>>, %arg6: memref<32x128xf32, #tpu.memory_space<vmem>>, %arg7: memref<1x128xf32, #tpu.memory_space<vmem>>, %arg8: memref<2x256xf32, #tpu.memory_space<vmem>>) attributes {dimension_semantics = [], scalar_prefetch = 0 : i64, scratch_operands = 0 : i64, tpu.core_type = #tpu.core_type<tc>} {
    %c0 = arith.constant 0 : index
    %c0_0 = arith.constant 0 : index
    %0 = vector.load %arg1[%c0, %c0_0] : memref<32x96xf32, #tpu.memory_space<vmem>>, vector<32x96xf32>
    %c0_1 = arith.constant 0 : index
    %c0_2 = arith.constant 0 : index
    %1 = vector.load %arg4[%c0_1, %c0_2] : memref<32x96xf32, #tpu.memory_space<vmem>>, vector<32x96xf32>
    %c0_3 = arith.constant 0 : index
    %c0_4 = arith.constant 0 : index
    %2 = vector.load %arg5[%c0_3, %c0_4] : memref<32x96xf32, #tpu.memory_space<vmem>>, vector<32x96xf32>
    %c0_5 = arith.constant 0 : index
    %c0_6 = arith.constant 0 : index
    %3 = vector.load %arg6[%c0_5, %c0_6] : memref<32x128xf32, #tpu.memory_space<vmem>>, vector<32x128xf32>
    %c0_7 = arith.constant 0 : index
    %c0_8 = arith.constant 0 : index
    %4 = vector.load %arg2[%c0_7, %c0_8] : memref<1x96xf32, #tpu.memory_space<vmem>>, vector<1x96xf32>
    %5 = vector.shape_cast %4 : vector<1x96xf32> to vector<1x96xf32>
    %6 = vector.broadcast %5 : vector<1x96xf32> to vector<2x96xf32>
    %c0_9 = arith.constant 0 : index
    %c0_10 = arith.constant 0 : index
    %7 = vector.load %arg7[%c0_9, %c0_10] : memref<1x128xf32, #tpu.memory_space<vmem>>, vector<1x128xf32>
    %8 = vector.shape_cast %7 : vector<1x128xf32> to vector<1x128xf32>
    %9 = vector.broadcast %8 : vector<1x128xf32> to vector<2x128xf32>
    %10 = vector.extract_strided_slice %9 {offsets = [0, 0], sizes = [2, 96], strides = [1, 1]} : vector<2x128xf32> to vector<2x96xf32>
    %cst = arith.constant 0.000000e+00 : f32
    %11 = vector.broadcast %cst : f32 to vector<2x32xf32>
    %c0_11 = arith.constant 0 : index
    %c0_12 = arith.constant 0 : index
    %c0_13 = arith.constant 0 : index
    %12 = vector.load %arg0[%c0_11, %c0_12, %c0_13] : memref<8x2x96xf32, #tpu.memory_space<vmem>>, vector<1x2x96xf32>
    %13 = vector.shape_cast %12 : vector<1x2x96xf32> to vector<2x96xf32>
    %14 = vector.extract_strided_slice %13 {offsets = [0, 0], sizes = [2, 64], strides = [1, 1]} : vector<2x96xf32> to vector<2x64xf32>
    %15 = vector.extract_strided_slice %6 {offsets = [0, 0], sizes = [2, 64], strides = [1, 1]} : vector<2x96xf32> to vector<2x64xf32>
    %16 = arith.addf %14, %15 : vector<2x64xf32>
    %17 = arith.negf %16 : vector<2x64xf32>
    %18 = math.exp %17 : vector<2x64xf32>
    %cst_14 = arith.constant 1.000000e+00 : f32
    %19 = vector.broadcast %cst_14 : f32 to vector<2x64xf32>
    %20 = arith.addf %19, %18 : vector<2x64xf32>
    %21 = arith.divf %19, %20 : vector<2x64xf32>
    %22 = vector.extract_strided_slice %21 {offsets = [0, 0], sizes = [2, 32], strides = [1, 1]} : vector<2x64xf32> to vector<2x32xf32>
    %23 = vector.extract_strided_slice %21 {offsets = [0, 32], sizes = [2, 32], strides = [1, 1]} : vector<2x64xf32> to vector<2x32xf32>
    %24 = vector.extract_strided_slice %13 {offsets = [0, 64], sizes = [2, 32], strides = [1, 1]} : vector<2x96xf32> to vector<2x32xf32>
    %25 = vector.extract_strided_slice %6 {offsets = [0, 64], sizes = [2, 32], strides = [1, 1]} : vector<2x96xf32> to vector<2x32xf32>
    %26 = arith.mulf %22, %25 : vector<2x32xf32>
    %27 = arith.addf %24, %26 : vector<2x32xf32>
    %28 = math.tanh %27 : vector<2x32xf32>
    %cst_15 = arith.constant 1.000000e+00 : f32
    %29 = vector.broadcast %cst_15 : f32 to vector<2x32xf32>
    %30 = arith.subf %29, %23 : vector<2x32xf32>
    %31 = arith.mulf %30, %28 : vector<2x32xf32>
    %32 = arith.mulf %23, %11 : vector<2x32xf32>
    %33 = arith.addf %31, %32 : vector<2x32xf32>
    %cst_16 = arith.constant dense<0.000000e+00> : vector<2x96xf32>
    %34 = tpu.matmul %33, %0, %cst_16 {dimension_numbers = #tpu.dot_dimension_numbers<[1], [0], [0], [1], [0, 0, 1, 1], [], []>, precision = #tpu.contract_precision<fp32>} : vector<2x32xf32>, vector<32x96xf32>, vector<2x96xf32> -> vector<2x96xf32>
    %35 = arith.addf %34, %6 : vector<2x96xf32>
    %c1 = arith.constant 1 : index
    %c0_17 = arith.constant 0 : index
    %c0_18 = arith.constant 0 : index
    %36 = vector.load %arg0[%c1, %c0_17, %c0_18] : memref<8x2x96xf32, #tpu.memory_space<vmem>>, vector<1x2x96xf32>
    %37 = vector.shape_cast %36 : vector<1x2x96xf32> to vector<2x96xf32>
    %38 = vector.extract_strided_slice %37 {offsets = [0, 0], sizes = [2, 64], strides = [1, 1]} : vector<2x96xf32> to vector<2x64xf32>
    %39 = vector.extract_strided_slice %35 {offsets = [0, 0], sizes = [2, 64], strides = [1, 1]} : vector<2x96xf32> to vector<2x64xf32>
    %40 = arith.addf %38, %39 : vector<2x64xf32>
    %41 = arith.negf %40 : vector<2x64xf32>
    %42 = math.exp %41 : vector<2x64xf32>
    %cst_19 = arith.constant 1.000000e+00 : f32
    %43 = vector.broadcast %cst_19 : f32 to vector<2x64xf32>
    %44 = arith.addf %43, %42 : vector<2x64xf32>
    %45 = arith.divf %43, %44 : vector<2x64xf32>
    %46 = vector.extract_strided_slice %45 {offsets = [0, 0], sizes = [2, 32], strides = [1, 1]} : vector<2x64xf32> to vector<2x32xf32>
    %47 = vector.extract_strided_slice %45 {offsets = [0, 32], sizes = [2, 32], strides = [1, 1]} : vector<2x64xf32> to vector<2x32xf32>
    %48 = vector.extract_strided_slice %37 {offsets = [0, 64], sizes = [2, 32], strides = [1, 1]} : vector<2x96xf32> to vector<2x32xf32>
    %49 = vector.extract_strided_slice %35 {offsets = [0, 64], sizes = [2, 32], strides = [1, 1]} : vector<2x96xf32> to vector<2x32xf32>
    %50 = arith.mulf %46, %49 : vector<2x32xf32>
    %51 = arith.addf %48, %50 : vector<2x32xf32>
    %52 = math.tanh %51 : vector<2x32xf32>
    %cst_20 = arith.constant 1.000000e+00 : f32
    %53 = vector.broadcast %cst_20 : f32 to vector<2x32xf32>
    %54 = arith.subf %53, %47 : vector<2x32xf32>
    %55 = arith.mulf %54, %52 : vector<2x32xf32>
    %56 = arith.mulf %47, %33 : vector<2x32xf32>
    %57 = arith.addf %55, %56 : vector<2x32xf32>
    %cst_21 = arith.constant dense<0.000000e+00> : vector<2x96xf32>
    %58 = tpu.matmul %57, %0, %cst_21 {dimension_numbers = #tpu.dot_dimension_numbers<[1], [0], [0], [1], [0, 0, 1, 1], [], []>, precision = #tpu.contract_precision<fp32>} : vector<2x32xf32>, vector<32x96xf32>, vector<2x96xf32> -> vector<2x96xf32>
    %59 = arith.addf %58, %6 : vector<2x96xf32>
    %c2 = arith.constant 2 : index
    %c0_22 = arith.constant 0 : index
    %c0_23 = arith.constant 0 : index
    %60 = vector.load %arg0[%c2, %c0_22, %c0_23] : memref<8x2x96xf32, #tpu.memory_space<vmem>>, vector<1x2x96xf32>
    %61 = vector.shape_cast %60 : vector<1x2x96xf32> to vector<2x96xf32>
    %62 = vector.extract_strided_slice %61 {offsets = [0, 0], sizes = [2, 64], strides = [1, 1]} : vector<2x96xf32> to vector<2x64xf32>
    %63 = vector.extract_strided_slice %59 {offsets = [0, 0], sizes = [2, 64], strides = [1, 1]} : vector<2x96xf32> to vector<2x64xf32>
    %64 = arith.addf %62, %63 : vector<2x64xf32>
    %65 = arith.negf %64 : vector<2x64xf32>
    %66 = math.exp %65 : vector<2x64xf32>
    %cst_24 = arith.constant 1.000000e+00 : f32
    %67 = vector.broadcast %cst_24 : f32 to vector<2x64xf32>
    %68 = arith.addf %67, %66 : vector<2x64xf32>
    %69 = arith.divf %67, %68 : vector<2x64xf32>
    %70 = vector.extract_strided_slice %69 {offsets = [0, 0], sizes = [2, 32], strides = [1, 1]} : vector<2x64xf32> to vector<2x32xf32>
    %71 = vector.extract_strided_slice %69 {offsets = [0, 32], sizes = [2, 32], strides = [1, 1]} : vector<2x64xf32> to vector<2x32xf32>
    %72 = vector.extract_strided_slice %61 {offsets = [0, 64], sizes = [2, 32], strides = [1, 1]} : vector<2x96xf32> to vector<2x32xf32>
    %73 = vector.extract_strided_slice %59 {offsets = [0, 64], sizes = [2, 32], strides = [1, 1]} : vector<2x96xf32> to vector<2x32xf32>
    %74 = arith.mulf %70, %73 : vector<2x32xf32>
    %75 = arith.addf %72, %74 : vector<2x32xf32>
    %76 = math.tanh %75 : vector<2x32xf32>
    %cst_25 = arith.constant 1.000000e+00 : f32
    %77 = vector.broadcast %cst_25 : f32 to vector<2x32xf32>
    %78 = arith.subf %77, %71 : vector<2x32xf32>
    %79 = arith.mulf %78, %76 : vector<2x32xf32>
    %80 = arith.mulf %71, %57 : vector<2x32xf32>
    %81 = arith.addf %79, %80 : vector<2x32xf32>
    %cst_26 = arith.constant dense<0.000000e+00> : vector<2x96xf32>
    %82 = tpu.matmul %81, %0, %cst_26 {dimension_numbers = #tpu.dot_dimension_numbers<[1], [0], [0], [1], [0, 0, 1, 1], [], []>, precision = #tpu.contract_precision<fp32>} : vector<2x32xf32>, vector<32x96xf32>, vector<2x96xf32> -> vector<2x96xf32>
    %83 = arith.addf %82, %6 : vector<2x96xf32>
    %c3 = arith.constant 3 : index
    %c0_27 = arith.constant 0 : index
    %c0_28 = arith.constant 0 : index
    %84 = vector.load %arg0[%c3, %c0_27, %c0_28] : memref<8x2x96xf32, #tpu.memory_space<vmem>>, vector<1x2x96xf32>
    %85 = vector.shape_cast %84 : vector<1x2x96xf32> to vector<2x96xf32>
    %86 = vector.extract_strided_slice %85 {offsets = [0, 0], sizes = [2, 64], strides = [1, 1]} : vector<2x96xf32> to vector<2x64xf32>
    %87 = vector.extract_strided_slice %83 {offsets = [0, 0], sizes = [2, 64], strides = [1, 1]} : vector<2x96xf32> to vector<2x64xf32>
    %88 = arith.addf %86, %87 : vector<2x64xf32>
    %89 = arith.negf %88 : vector<2x64xf32>
    %90 = math.exp %89 : vector<2x64xf32>
    %cst_29 = arith.constant 1.000000e+00 : f32
    %91 = vector.broadcast %cst_29 : f32 to vector<2x64xf32>
    %92 = arith.addf %91, %90 : vector<2x64xf32>
    %93 = arith.divf %91, %92 : vector<2x64xf32>
    %94 = vector.extract_strided_slice %93 {offsets = [0, 0], sizes = [2, 32], strides = [1, 1]} : vector<2x64xf32> to vector<2x32xf32>
    %95 = vector.extract_strided_slice %93 {offsets = [0, 32], sizes = [2, 32], strides = [1, 1]} : vector<2x64xf32> to vector<2x32xf32>
    %96 = vector.extract_strided_slice %85 {offsets = [0, 64], sizes = [2, 32], strides = [1, 1]} : vector<2x96xf32> to vector<2x32xf32>
    %97 = vector.extract_strided_slice %83 {offsets = [0, 64], sizes = [2, 32], strides = [1, 1]} : vector<2x96xf32> to vector<2x32xf32>
    %98 = arith.mulf %94, %97 : vector<2x32xf32>
    %99 = arith.addf %96, %98 : vector<2x32xf32>
    %100 = math.tanh %99 : vector<2x32xf32>
    %cst_30 = arith.constant 1.000000e+00 : f32
    %101 = vector.broadcast %cst_30 : f32 to vector<2x32xf32>
    %102 = arith.subf %101, %95 : vector<2x32xf32>
    %103 = arith.mulf %102, %100 : vector<2x32xf32>
    %104 = arith.mulf %95, %81 : vector<2x32xf32>
    %105 = arith.addf %103, %104 : vector<2x32xf32>
    %cst_31 = arith.constant dense<0.000000e+00> : vector<2x96xf32>
    %106 = tpu.matmul %105, %0, %cst_31 {dimension_numbers = #tpu.dot_dimension_numbers<[1], [0], [0], [1], [0, 0, 1, 1], [], []>, precision = #tpu.contract_precision<fp32>} : vector<2x32xf32>, vector<32x96xf32>, vector<2x96xf32> -> vector<2x96xf32>
    %107 = arith.addf %106, %6 : vector<2x96xf32>
    %c4 = arith.constant 4 : index
    %c0_32 = arith.constant 0 : index
    %c0_33 = arith.constant 0 : index
    %108 = vector.load %arg0[%c4, %c0_32, %c0_33] : memref<8x2x96xf32, #tpu.memory_space<vmem>>, vector<1x2x96xf32>
    %109 = vector.shape_cast %108 : vector<1x2x96xf32> to vector<2x96xf32>
    %110 = vector.extract_strided_slice %109 {offsets = [0, 0], sizes = [2, 64], strides = [1, 1]} : vector<2x96xf32> to vector<2x64xf32>
    %111 = vector.extract_strided_slice %107 {offsets = [0, 0], sizes = [2, 64], strides = [1, 1]} : vector<2x96xf32> to vector<2x64xf32>
    %112 = arith.addf %110, %111 : vector<2x64xf32>
    %113 = arith.negf %112 : vector<2x64xf32>
    %114 = math.exp %113 : vector<2x64xf32>
    %cst_34 = arith.constant 1.000000e+00 : f32
    %115 = vector.broadcast %cst_34 : f32 to vector<2x64xf32>
    %116 = arith.addf %115, %114 : vector<2x64xf32>
    %117 = arith.divf %115, %116 : vector<2x64xf32>
    %118 = vector.extract_strided_slice %117 {offsets = [0, 0], sizes = [2, 32], strides = [1, 1]} : vector<2x64xf32> to vector<2x32xf32>
    %119 = vector.extract_strided_slice %117 {offsets = [0, 32], sizes = [2, 32], strides = [1, 1]} : vector<2x64xf32> to vector<2x32xf32>
    %120 = vector.extract_strided_slice %109 {offsets = [0, 64], sizes = [2, 32], strides = [1, 1]} : vector<2x96xf32> to vector<2x32xf32>
    %121 = vector.extract_strided_slice %107 {offsets = [0, 64], sizes = [2, 32], strides = [1, 1]} : vector<2x96xf32> to vector<2x32xf32>
    %122 = arith.mulf %118, %121 : vector<2x32xf32>
    %123 = arith.addf %120, %122 : vector<2x32xf32>
    %124 = math.tanh %123 : vector<2x32xf32>
    %cst_35 = arith.constant 1.000000e+00 : f32
    %125 = vector.broadcast %cst_35 : f32 to vector<2x32xf32>
    %126 = arith.subf %125, %119 : vector<2x32xf32>
    %127 = arith.mulf %126, %124 : vector<2x32xf32>
    %128 = arith.mulf %119, %105 : vector<2x32xf32>
    %129 = arith.addf %127, %128 : vector<2x32xf32>
    %cst_36 = arith.constant dense<0.000000e+00> : vector<2x96xf32>
    %130 = tpu.matmul %129, %0, %cst_36 {dimension_numbers = #tpu.dot_dimension_numbers<[1], [0], [0], [1], [0, 0, 1, 1], [], []>, precision = #tpu.contract_precision<fp32>} : vector<2x32xf32>, vector<32x96xf32>, vector<2x96xf32> -> vector<2x96xf32>
    %131 = arith.addf %130, %6 : vector<2x96xf32>
    %c5 = arith.constant 5 : index
    %c0_37 = arith.constant 0 : index
    %c0_38 = arith.constant 0 : index
    %132 = vector.load %arg0[%c5, %c0_37, %c0_38] : memref<8x2x96xf32, #tpu.memory_space<vmem>>, vector<1x2x96xf32>
    %133 = vector.shape_cast %132 : vector<1x2x96xf32> to vector<2x96xf32>
    %134 = vector.extract_strided_slice %133 {offsets = [0, 0], sizes = [2, 64], strides = [1, 1]} : vector<2x96xf32> to vector<2x64xf32>
    %135 = vector.extract_strided_slice %131 {offsets = [0, 0], sizes = [2, 64], strides = [1, 1]} : vector<2x96xf32> to vector<2x64xf32>
    %136 = arith.addf %134, %135 : vector<2x64xf32>
    %137 = arith.negf %136 : vector<2x64xf32>
    %138 = math.exp %137 : vector<2x64xf32>
    %cst_39 = arith.constant 1.000000e+00 : f32
    %139 = vector.broadcast %cst_39 : f32 to vector<2x64xf32>
    %140 = arith.addf %139, %138 : vector<2x64xf32>
    %141 = arith.divf %139, %140 : vector<2x64xf32>
    %142 = vector.extract_strided_slice %141 {offsets = [0, 0], sizes = [2, 32], strides = [1, 1]} : vector<2x64xf32> to vector<2x32xf32>
    %143 = vector.extract_strided_slice %141 {offsets = [0, 32], sizes = [2, 32], strides = [1, 1]} : vector<2x64xf32> to vector<2x32xf32>
    %144 = vector.extract_strided_slice %133 {offsets = [0, 64], sizes = [2, 32], strides = [1, 1]} : vector<2x96xf32> to vector<2x32xf32>
    %145 = vector.extract_strided_slice %131 {offsets = [0, 64], sizes = [2, 32], strides = [1, 1]} : vector<2x96xf32> to vector<2x32xf32>
    %146 = arith.mulf %142, %145 : vector<2x32xf32>
    %147 = arith.addf %144, %146 : vector<2x32xf32>
    %148 = math.tanh %147 : vector<2x32xf32>
    %cst_40 = arith.constant 1.000000e+00 : f32
    %149 = vector.broadcast %cst_40 : f32 to vector<2x32xf32>
    %150 = arith.subf %149, %143 : vector<2x32xf32>
    %151 = arith.mulf %150, %148 : vector<2x32xf32>
    %152 = arith.mulf %143, %129 : vector<2x32xf32>
    %153 = arith.addf %151, %152 : vector<2x32xf32>
    %cst_41 = arith.constant dense<0.000000e+00> : vector<2x96xf32>
    %154 = tpu.matmul %153, %0, %cst_41 {dimension_numbers = #tpu.dot_dimension_numbers<[1], [0], [0], [1], [0, 0, 1, 1], [], []>, precision = #tpu.contract_precision<fp32>} : vector<2x32xf32>, vector<32x96xf32>, vector<2x96xf32> -> vector<2x96xf32>
    %155 = arith.addf %154, %6 : vector<2x96xf32>
    %c6 = arith.constant 6 : index
    %c0_42 = arith.constant 0 : index
    %c0_43 = arith.constant 0 : index
    %156 = vector.load %arg0[%c6, %c0_42, %c0_43] : memref<8x2x96xf32, #tpu.memory_space<vmem>>, vector<1x2x96xf32>
    %157 = vector.shape_cast %156 : vector<1x2x96xf32> to vector<2x96xf32>
    %158 = vector.extract_strided_slice %157 {offsets = [0, 0], sizes = [2, 64], strides = [1, 1]} : vector<2x96xf32> to vector<2x64xf32>
    %159 = vector.extract_strided_slice %155 {offsets = [0, 0], sizes = [2, 64], strides = [1, 1]} : vector<2x96xf32> to vector<2x64xf32>
    %160 = arith.addf %158, %159 : vector<2x64xf32>
    %161 = arith.negf %160 : vector<2x64xf32>
    %162 = math.exp %161 : vector<2x64xf32>
    %cst_44 = arith.constant 1.000000e+00 : f32
    %163 = vector.broadcast %cst_44 : f32 to vector<2x64xf32>
    %164 = arith.addf %163, %162 : vector<2x64xf32>
    %165 = arith.divf %163, %164 : vector<2x64xf32>
    %166 = vector.extract_strided_slice %165 {offsets = [0, 0], sizes = [2, 32], strides = [1, 1]} : vector<2x64xf32> to vector<2x32xf32>
    %167 = vector.extract_strided_slice %165 {offsets = [0, 32], sizes = [2, 32], strides = [1, 1]} : vector<2x64xf32> to vector<2x32xf32>
    %168 = vector.extract_strided_slice %157 {offsets = [0, 64], sizes = [2, 32], strides = [1, 1]} : vector<2x96xf32> to vector<2x32xf32>
    %169 = vector.extract_strided_slice %155 {offsets = [0, 64], sizes = [2, 32], strides = [1, 1]} : vector<2x96xf32> to vector<2x32xf32>
    %170 = arith.mulf %166, %169 : vector<2x32xf32>
    %171 = arith.addf %168, %170 : vector<2x32xf32>
    %172 = math.tanh %171 : vector<2x32xf32>
    %cst_45 = arith.constant 1.000000e+00 : f32
    %173 = vector.broadcast %cst_45 : f32 to vector<2x32xf32>
    %174 = arith.subf %173, %167 : vector<2x32xf32>
    %175 = arith.mulf %174, %172 : vector<2x32xf32>
    %176 = arith.mulf %167, %153 : vector<2x32xf32>
    %177 = arith.addf %175, %176 : vector<2x32xf32>
    %cst_46 = arith.constant dense<0.000000e+00> : vector<2x96xf32>
    %178 = tpu.matmul %177, %0, %cst_46 {dimension_numbers = #tpu.dot_dimension_numbers<[1], [0], [0], [1], [0, 0, 1, 1], [], []>, precision = #tpu.contract_precision<fp32>} : vector<2x32xf32>, vector<32x96xf32>, vector<2x96xf32> -> vector<2x96xf32>
    %179 = arith.addf %178, %6 : vector<2x96xf32>
    %c7 = arith.constant 7 : index
    %c0_47 = arith.constant 0 : index
    %c0_48 = arith.constant 0 : index
    %180 = vector.load %arg0[%c7, %c0_47, %c0_48] : memref<8x2x96xf32, #tpu.memory_space<vmem>>, vector<1x2x96xf32>
    %181 = vector.shape_cast %180 : vector<1x2x96xf32> to vector<2x96xf32>
    %182 = vector.extract_strided_slice %181 {offsets = [0, 0], sizes = [2, 64], strides = [1, 1]} : vector<2x96xf32> to vector<2x64xf32>
    %183 = vector.extract_strided_slice %179 {offsets = [0, 0], sizes = [2, 64], strides = [1, 1]} : vector<2x96xf32> to vector<2x64xf32>
    %184 = arith.addf %182, %183 : vector<2x64xf32>
    %185 = arith.negf %184 : vector<2x64xf32>
    %186 = math.exp %185 : vector<2x64xf32>
    %cst_49 = arith.constant 1.000000e+00 : f32
    %187 = vector.broadcast %cst_49 : f32 to vector<2x64xf32>
    %188 = arith.addf %187, %186 : vector<2x64xf32>
    %189 = arith.divf %187, %188 : vector<2x64xf32>
    %190 = vector.extract_strided_slice %189 {offsets = [0, 0], sizes = [2, 32], strides = [1, 1]} : vector<2x64xf32> to vector<2x32xf32>
    %191 = vector.extract_strided_slice %189 {offsets = [0, 32], sizes = [2, 32], strides = [1, 1]} : vector<2x64xf32> to vector<2x32xf32>
    %192 = vector.extract_strided_slice %181 {offsets = [0, 64], sizes = [2, 32], strides = [1, 1]} : vector<2x96xf32> to vector<2x32xf32>
    %193 = vector.extract_strided_slice %179 {offsets = [0, 64], sizes = [2, 32], strides = [1, 1]} : vector<2x96xf32> to vector<2x32xf32>
    %194 = arith.mulf %190, %193 : vector<2x32xf32>
    %195 = arith.addf %192, %194 : vector<2x32xf32>
    %196 = math.tanh %195 : vector<2x32xf32>
    %cst_50 = arith.constant 1.000000e+00 : f32
    %197 = vector.broadcast %cst_50 : f32 to vector<2x32xf32>
    %198 = arith.subf %197, %191 : vector<2x32xf32>
    %199 = arith.mulf %198, %196 : vector<2x32xf32>
    %200 = arith.mulf %191, %177 : vector<2x32xf32>
    %201 = arith.addf %199, %200 : vector<2x32xf32>
    %cst_51 = arith.constant dense<0.000000e+00> : vector<2x96xf32>
    %202 = tpu.matmul %201, %2, %cst_51 {dimension_numbers = #tpu.dot_dimension_numbers<[1], [0], [0], [1], [0, 0, 1, 1], [], []>, precision = #tpu.contract_precision<fp32>} : vector<2x32xf32>, vector<32x96xf32>, vector<2x96xf32> -> vector<2x96xf32>
    %203 = arith.addf %202, %10 : vector<2x96xf32>
    %c0_52 = arith.constant 0 : index
    %c0_53 = arith.constant 0 : index
    %204 = vector.load %arg3[%c0_52, %c0_53] : memref<2x96xf32, #tpu.memory_space<vmem>>, vector<2x96xf32>
    %205 = vector.extract_strided_slice %204 {offsets = [0, 0], sizes = [2, 64], strides = [1, 1]} : vector<2x96xf32> to vector<2x64xf32>
    %206 = vector.extract_strided_slice %203 {offsets = [0, 0], sizes = [2, 64], strides = [1, 1]} : vector<2x96xf32> to vector<2x64xf32>
    %207 = arith.addf %205, %206 : vector<2x64xf32>
    %208 = arith.negf %207 : vector<2x64xf32>
    %209 = math.exp %208 : vector<2x64xf32>
    %cst_54 = arith.constant 1.000000e+00 : f32
    %210 = vector.broadcast %cst_54 : f32 to vector<2x64xf32>
    %211 = arith.addf %210, %209 : vector<2x64xf32>
    %212 = arith.divf %210, %211 : vector<2x64xf32>
    %213 = vector.extract_strided_slice %212 {offsets = [0, 0], sizes = [2, 32], strides = [1, 1]} : vector<2x64xf32> to vector<2x32xf32>
    %214 = vector.extract_strided_slice %212 {offsets = [0, 32], sizes = [2, 32], strides = [1, 1]} : vector<2x64xf32> to vector<2x32xf32>
    %215 = vector.extract_strided_slice %204 {offsets = [0, 64], sizes = [2, 32], strides = [1, 1]} : vector<2x96xf32> to vector<2x32xf32>
    %216 = vector.extract_strided_slice %203 {offsets = [0, 64], sizes = [2, 32], strides = [1, 1]} : vector<2x96xf32> to vector<2x32xf32>
    %217 = arith.mulf %213, %216 : vector<2x32xf32>
    %218 = arith.addf %215, %217 : vector<2x32xf32>
    %219 = math.tanh %218 : vector<2x32xf32>
    %cst_55 = arith.constant 1.000000e+00 : f32
    %220 = vector.broadcast %cst_55 : f32 to vector<2x32xf32>
    %221 = arith.subf %220, %214 : vector<2x32xf32>
    %222 = arith.mulf %221, %219 : vector<2x32xf32>
    %223 = arith.mulf %214, %201 : vector<2x32xf32>
    %224 = arith.addf %222, %223 : vector<2x32xf32>
    %cst_56 = arith.constant dense<0.000000e+00> : vector<2x128xf32>
    %225 = tpu.matmul %224, %3, %cst_56 {dimension_numbers = #tpu.dot_dimension_numbers<[1], [0], [0], [1], [0, 0, 1, 1], [], []>, precision = #tpu.contract_precision<fp32>} : vector<2x32xf32>, vector<32x128xf32>, vector<2x128xf32> -> vector<2x128xf32>
    %226 = arith.addf %225, %9 : vector<2x128xf32>
    %227 = vector.extract_strided_slice %226 {offsets = [0, 0], sizes = [2, 96], strides = [1, 1]} : vector<2x128xf32> to vector<2x96xf32>
    %228 = vector.extract_strided_slice %226 {offsets = [0, 96], sizes = [2, 32], strides = [1, 1]} : vector<2x128xf32> to vector<2x32xf32>
    %cst_57 = arith.constant dense<0xFF800000> : vector<2xf32>
    %229 = vector.multi_reduction <maximumf>, %228, %cst_57 [1] : vector<2x32xf32> to vector<2xf32>
    %230 = vector.shape_cast %229 : vector<2xf32> to vector<2x1xf32>
    %231 = vector.broadcast %230 : vector<2x1xf32> to vector<2x32xf32>
    %232 = arith.cmpf oeq, %228, %231 : vector<2x32xf32>
    %233 = arith.extui %232 : vector<2x32xi1> to vector<2x32xi32>
    %234 = arith.sitofp %233 : vector<2x32xi32> to vector<2x32xf32>
    %cst_58 = arith.constant dense<0.000000e+00> : vector<2x96xf32>
    %235 = tpu.matmul %234, %1, %cst_58 {dimension_numbers = #tpu.dot_dimension_numbers<[1], [0], [0], [1], [0, 0, 1, 1], [], []>, precision = #tpu.contract_precision<fp32>} : vector<2x32xf32>, vector<32x96xf32>, vector<2x96xf32> -> vector<2x96xf32>
    %236 = vector.extract_strided_slice %235 {offsets = [0, 0], sizes = [2, 64], strides = [1, 1]} : vector<2x96xf32> to vector<2x64xf32>
    %237 = vector.extract_strided_slice %227 {offsets = [0, 0], sizes = [2, 64], strides = [1, 1]} : vector<2x96xf32> to vector<2x64xf32>
    %238 = arith.addf %236, %237 : vector<2x64xf32>
    %239 = arith.negf %238 : vector<2x64xf32>
    %240 = math.exp %239 : vector<2x64xf32>
    %cst_59 = arith.constant 1.000000e+00 : f32
    %241 = vector.broadcast %cst_59 : f32 to vector<2x64xf32>
    %242 = arith.addf %241, %240 : vector<2x64xf32>
    %243 = arith.divf %241, %242 : vector<2x64xf32>
    %244 = vector.extract_strided_slice %243 {offsets = [0, 0], sizes = [2, 32], strides = [1, 1]} : vector<2x64xf32> to vector<2x32xf32>
    %245 = vector.extract_strided_slice %243 {offsets = [0, 32], sizes = [2, 32], strides = [1, 1]} : vector<2x64xf32> to vector<2x32xf32>
    %246 = vector.extract_strided_slice %235 {offsets = [0, 64], sizes = [2, 32], strides = [1, 1]} : vector<2x96xf32> to vector<2x32xf32>
    %247 = vector.extract_strided_slice %227 {offsets = [0, 64], sizes = [2, 32], strides = [1, 1]} : vector<2x96xf32> to vector<2x32xf32>
    %248 = arith.mulf %244, %247 : vector<2x32xf32>
    %249 = arith.addf %246, %248 : vector<2x32xf32>
    %250 = math.tanh %249 : vector<2x32xf32>
    %cst_60 = arith.constant 1.000000e+00 : f32
    %251 = vector.broadcast %cst_60 : f32 to vector<2x32xf32>
    %252 = arith.subf %251, %245 : vector<2x32xf32>
    %253 = arith.mulf %252, %250 : vector<2x32xf32>
    %254 = arith.mulf %245, %224 : vector<2x32xf32>
    %255 = arith.addf %253, %254 : vector<2x32xf32>
    %cst_61 = arith.constant dense<0.000000e+00> : vector<2x128xf32>
    %256 = tpu.matmul %255, %3, %cst_61 {dimension_numbers = #tpu.dot_dimension_numbers<[1], [0], [0], [1], [0, 0, 1, 1], [], []>, precision = #tpu.contract_precision<fp32>} : vector<2x32xf32>, vector<32x128xf32>, vector<2x128xf32> -> vector<2x128xf32>
    %257 = arith.addf %256, %9 : vector<2x128xf32>
    %258 = vector.extract_strided_slice %257 {offsets = [0, 0], sizes = [2, 96], strides = [1, 1]} : vector<2x128xf32> to vector<2x96xf32>
    %259 = vector.extract_strided_slice %257 {offsets = [0, 96], sizes = [2, 32], strides = [1, 1]} : vector<2x128xf32> to vector<2x32xf32>
    %cst_62 = arith.constant dense<0xFF800000> : vector<2xf32>
    %260 = vector.multi_reduction <maximumf>, %259, %cst_62 [1] : vector<2x32xf32> to vector<2xf32>
    %261 = vector.shape_cast %260 : vector<2xf32> to vector<2x1xf32>
    %262 = vector.broadcast %261 : vector<2x1xf32> to vector<2x32xf32>
    %263 = arith.cmpf oeq, %259, %262 : vector<2x32xf32>
    %264 = arith.extui %263 : vector<2x32xi1> to vector<2x32xi32>
    %265 = arith.sitofp %264 : vector<2x32xi32> to vector<2x32xf32>
    %cst_63 = arith.constant dense<0.000000e+00> : vector<2x96xf32>
    %266 = tpu.matmul %265, %1, %cst_63 {dimension_numbers = #tpu.dot_dimension_numbers<[1], [0], [0], [1], [0, 0, 1, 1], [], []>, precision = #tpu.contract_precision<fp32>} : vector<2x32xf32>, vector<32x96xf32>, vector<2x96xf32> -> vector<2x96xf32>
    %267 = vector.extract_strided_slice %266 {offsets = [0, 0], sizes = [2, 64], strides = [1, 1]} : vector<2x96xf32> to vector<2x64xf32>
    %268 = vector.extract_strided_slice %258 {offsets = [0, 0], sizes = [2, 64], strides = [1, 1]} : vector<2x96xf32> to vector<2x64xf32>
    %269 = arith.addf %267, %268 : vector<2x64xf32>
    %270 = arith.negf %269 : vector<2x64xf32>
    %271 = math.exp %270 : vector<2x64xf32>
    %cst_64 = arith.constant 1.000000e+00 : f32
    %272 = vector.broadcast %cst_64 : f32 to vector<2x64xf32>
    %273 = arith.addf %272, %271 : vector<2x64xf32>
    %274 = arith.divf %272, %273 : vector<2x64xf32>
    %275 = vector.extract_strided_slice %274 {offsets = [0, 0], sizes = [2, 32], strides = [1, 1]} : vector<2x64xf32> to vector<2x32xf32>
    %276 = vector.extract_strided_slice %274 {offsets = [0, 32], sizes = [2, 32], strides = [1, 1]} : vector<2x64xf32> to vector<2x32xf32>
    %277 = vector.extract_strided_slice %266 {offsets = [0, 64], sizes = [2, 32], strides = [1, 1]} : vector<2x96xf32> to vector<2x32xf32>
    %278 = vector.extract_strided_slice %258 {offsets = [0, 64], sizes = [2, 32], strides = [1, 1]} : vector<2x96xf32> to vector<2x32xf32>
    %279 = arith.mulf %275, %278 : vector<2x32xf32>
    %280 = arith.addf %277, %279 : vector<2x32xf32>
    %281 = math.tanh %280 : vector<2x32xf32>
    %cst_65 = arith.constant 1.000000e+00 : f32
    %282 = vector.broadcast %cst_65 : f32 to vector<2x32xf32>
    %283 = arith.subf %282, %276 : vector<2x32xf32>
    %284 = arith.mulf %283, %281 : vector<2x32xf32>
    %285 = arith.mulf %276, %255 : vector<2x32xf32>
    %286 = arith.addf %284, %285 : vector<2x32xf32>
    %cst_66 = arith.constant dense<0.000000e+00> : vector<2x128xf32>
    %287 = tpu.matmul %286, %3, %cst_66 {dimension_numbers = #tpu.dot_dimension_numbers<[1], [0], [0], [1], [0, 0, 1, 1], [], []>, precision = #tpu.contract_precision<fp32>} : vector<2x32xf32>, vector<32x128xf32>, vector<2x128xf32> -> vector<2x128xf32>
    %288 = arith.addf %287, %9 : vector<2x128xf32>
    %289 = vector.extract_strided_slice %288 {offsets = [0, 0], sizes = [2, 96], strides = [1, 1]} : vector<2x128xf32> to vector<2x96xf32>
    %290 = vector.extract_strided_slice %288 {offsets = [0, 96], sizes = [2, 32], strides = [1, 1]} : vector<2x128xf32> to vector<2x32xf32>
    %cst_67 = arith.constant dense<0xFF800000> : vector<2xf32>
    %291 = vector.multi_reduction <maximumf>, %290, %cst_67 [1] : vector<2x32xf32> to vector<2xf32>
    %292 = vector.shape_cast %291 : vector<2xf32> to vector<2x1xf32>
    %293 = vector.broadcast %292 : vector<2x1xf32> to vector<2x32xf32>
    %294 = arith.cmpf oeq, %290, %293 : vector<2x32xf32>
    %295 = arith.extui %294 : vector<2x32xi1> to vector<2x32xi32>
    %296 = arith.sitofp %295 : vector<2x32xi32> to vector<2x32xf32>
    %cst_68 = arith.constant dense<0.000000e+00> : vector<2x96xf32>
    %297 = tpu.matmul %296, %1, %cst_68 {dimension_numbers = #tpu.dot_dimension_numbers<[1], [0], [0], [1], [0, 0, 1, 1], [], []>, precision = #tpu.contract_precision<fp32>} : vector<2x32xf32>, vector<32x96xf32>, vector<2x96xf32> -> vector<2x96xf32>
    %298 = vector.extract_strided_slice %297 {offsets = [0, 0], sizes = [2, 64], strides = [1, 1]} : vector<2x96xf32> to vector<2x64xf32>
    %299 = vector.extract_strided_slice %289 {offsets = [0, 0], sizes = [2, 64], strides = [1, 1]} : vector<2x96xf32> to vector<2x64xf32>
    %300 = arith.addf %298, %299 : vector<2x64xf32>
    %301 = arith.negf %300 : vector<2x64xf32>
    %302 = math.exp %301 : vector<2x64xf32>
    %cst_69 = arith.constant 1.000000e+00 : f32
    %303 = vector.broadcast %cst_69 : f32 to vector<2x64xf32>
    %304 = arith.addf %303, %302 : vector<2x64xf32>
    %305 = arith.divf %303, %304 : vector<2x64xf32>
    %306 = vector.extract_strided_slice %305 {offsets = [0, 0], sizes = [2, 32], strides = [1, 1]} : vector<2x64xf32> to vector<2x32xf32>
    %307 = vector.extract_strided_slice %305 {offsets = [0, 32], sizes = [2, 32], strides = [1, 1]} : vector<2x64xf32> to vector<2x32xf32>
    %308 = vector.extract_strided_slice %297 {offsets = [0, 64], sizes = [2, 32], strides = [1, 1]} : vector<2x96xf32> to vector<2x32xf32>
    %309 = vector.extract_strided_slice %289 {offsets = [0, 64], sizes = [2, 32], strides = [1, 1]} : vector<2x96xf32> to vector<2x32xf32>
    %310 = arith.mulf %306, %309 : vector<2x32xf32>
    %311 = arith.addf %308, %310 : vector<2x32xf32>
    %312 = math.tanh %311 : vector<2x32xf32>
    %cst_70 = arith.constant 1.000000e+00 : f32
    %313 = vector.broadcast %cst_70 : f32 to vector<2x32xf32>
    %314 = arith.subf %313, %307 : vector<2x32xf32>
    %315 = arith.mulf %314, %312 : vector<2x32xf32>
    %316 = arith.mulf %307, %286 : vector<2x32xf32>
    %317 = arith.addf %315, %316 : vector<2x32xf32>
    %cst_71 = arith.constant dense<0.000000e+00> : vector<2x128xf32>
    %318 = tpu.matmul %317, %3, %cst_71 {dimension_numbers = #tpu.dot_dimension_numbers<[1], [0], [0], [1], [0, 0, 1, 1], [], []>, precision = #tpu.contract_precision<fp32>} : vector<2x32xf32>, vector<32x128xf32>, vector<2x128xf32> -> vector<2x128xf32>
    %319 = arith.addf %318, %9 : vector<2x128xf32>
    %320 = vector.extract_strided_slice %319 {offsets = [0, 0], sizes = [2, 96], strides = [1, 1]} : vector<2x128xf32> to vector<2x96xf32>
    %321 = vector.extract_strided_slice %319 {offsets = [0, 96], sizes = [2, 32], strides = [1, 1]} : vector<2x128xf32> to vector<2x32xf32>
    %cst_72 = arith.constant dense<0xFF800000> : vector<2xf32>
    %322 = vector.multi_reduction <maximumf>, %321, %cst_72 [1] : vector<2x32xf32> to vector<2xf32>
    %323 = vector.shape_cast %322 : vector<2xf32> to vector<2x1xf32>
    %324 = vector.broadcast %323 : vector<2x1xf32> to vector<2x32xf32>
    %325 = arith.cmpf oeq, %321, %324 : vector<2x32xf32>
    %326 = arith.extui %325 : vector<2x32xi1> to vector<2x32xi32>
    %327 = arith.sitofp %326 : vector<2x32xi32> to vector<2x32xf32>
    %cst_73 = arith.constant dense<0.000000e+00> : vector<2x96xf32>
    %328 = tpu.matmul %327, %1, %cst_73 {dimension_numbers = #tpu.dot_dimension_numbers<[1], [0], [0], [1], [0, 0, 1, 1], [], []>, precision = #tpu.contract_precision<fp32>} : vector<2x32xf32>, vector<32x96xf32>, vector<2x96xf32> -> vector<2x96xf32>
    %329 = vector.extract_strided_slice %328 {offsets = [0, 0], sizes = [2, 64], strides = [1, 1]} : vector<2x96xf32> to vector<2x64xf32>
    %330 = vector.extract_strided_slice %320 {offsets = [0, 0], sizes = [2, 64], strides = [1, 1]} : vector<2x96xf32> to vector<2x64xf32>
    %331 = arith.addf %329, %330 : vector<2x64xf32>
    %332 = arith.negf %331 : vector<2x64xf32>
    %333 = math.exp %332 : vector<2x64xf32>
    %cst_74 = arith.constant 1.000000e+00 : f32
    %334 = vector.broadcast %cst_74 : f32 to vector<2x64xf32>
    %335 = arith.addf %334, %333 : vector<2x64xf32>
    %336 = arith.divf %334, %335 : vector<2x64xf32>
    %337 = vector.extract_strided_slice %336 {offsets = [0, 0], sizes = [2, 32], strides = [1, 1]} : vector<2x64xf32> to vector<2x32xf32>
    %338 = vector.extract_strided_slice %336 {offsets = [0, 32], sizes = [2, 32], strides = [1, 1]} : vector<2x64xf32> to vector<2x32xf32>
    %339 = vector.extract_strided_slice %328 {offsets = [0, 64], sizes = [2, 32], strides = [1, 1]} : vector<2x96xf32> to vector<2x32xf32>
    %340 = vector.extract_strided_slice %320 {offsets = [0, 64], sizes = [2, 32], strides = [1, 1]} : vector<2x96xf32> to vector<2x32xf32>
    %341 = arith.mulf %337, %340 : vector<2x32xf32>
    %342 = arith.addf %339, %341 : vector<2x32xf32>
    %343 = math.tanh %342 : vector<2x32xf32>
    %cst_75 = arith.constant 1.000000e+00 : f32
    %344 = vector.broadcast %cst_75 : f32 to vector<2x32xf32>
    %345 = arith.subf %344, %338 : vector<2x32xf32>
    %346 = arith.mulf %345, %343 : vector<2x32xf32>
    %347 = arith.mulf %338, %317 : vector<2x32xf32>
    %348 = arith.addf %346, %347 : vector<2x32xf32>
    %cst_76 = arith.constant dense<0.000000e+00> : vector<2x128xf32>
    %349 = tpu.matmul %348, %3, %cst_76 {dimension_numbers = #tpu.dot_dimension_numbers<[1], [0], [0], [1], [0, 0, 1, 1], [], []>, precision = #tpu.contract_precision<fp32>} : vector<2x32xf32>, vector<32x128xf32>, vector<2x128xf32> -> vector<2x128xf32>
    %350 = arith.addf %349, %9 : vector<2x128xf32>
    %351 = vector.extract_strided_slice %350 {offsets = [0, 0], sizes = [2, 96], strides = [1, 1]} : vector<2x128xf32> to vector<2x96xf32>
    %352 = vector.extract_strided_slice %350 {offsets = [0, 96], sizes = [2, 32], strides = [1, 1]} : vector<2x128xf32> to vector<2x32xf32>
    %cst_77 = arith.constant dense<0xFF800000> : vector<2xf32>
    %353 = vector.multi_reduction <maximumf>, %352, %cst_77 [1] : vector<2x32xf32> to vector<2xf32>
    %354 = vector.shape_cast %353 : vector<2xf32> to vector<2x1xf32>
    %355 = vector.broadcast %354 : vector<2x1xf32> to vector<2x32xf32>
    %356 = arith.cmpf oeq, %352, %355 : vector<2x32xf32>
    %357 = arith.extui %356 : vector<2x32xi1> to vector<2x32xi32>
    %358 = arith.sitofp %357 : vector<2x32xi32> to vector<2x32xf32>
    %cst_78 = arith.constant dense<0.000000e+00> : vector<2x96xf32>
    %359 = tpu.matmul %358, %1, %cst_78 {dimension_numbers = #tpu.dot_dimension_numbers<[1], [0], [0], [1], [0, 0, 1, 1], [], []>, precision = #tpu.contract_precision<fp32>} : vector<2x32xf32>, vector<32x96xf32>, vector<2x96xf32> -> vector<2x96xf32>
    %360 = vector.extract_strided_slice %359 {offsets = [0, 0], sizes = [2, 64], strides = [1, 1]} : vector<2x96xf32> to vector<2x64xf32>
    %361 = vector.extract_strided_slice %351 {offsets = [0, 0], sizes = [2, 64], strides = [1, 1]} : vector<2x96xf32> to vector<2x64xf32>
    %362 = arith.addf %360, %361 : vector<2x64xf32>
    %363 = arith.negf %362 : vector<2x64xf32>
    %364 = math.exp %363 : vector<2x64xf32>
    %cst_79 = arith.constant 1.000000e+00 : f32
    %365 = vector.broadcast %cst_79 : f32 to vector<2x64xf32>
    %366 = arith.addf %365, %364 : vector<2x64xf32>
    %367 = arith.divf %365, %366 : vector<2x64xf32>
    %368 = vector.extract_strided_slice %367 {offsets = [0, 0], sizes = [2, 32], strides = [1, 1]} : vector<2x64xf32> to vector<2x32xf32>
    %369 = vector.extract_strided_slice %367 {offsets = [0, 32], sizes = [2, 32], strides = [1, 1]} : vector<2x64xf32> to vector<2x32xf32>
    %370 = vector.extract_strided_slice %359 {offsets = [0, 64], sizes = [2, 32], strides = [1, 1]} : vector<2x96xf32> to vector<2x32xf32>
    %371 = vector.extract_strided_slice %351 {offsets = [0, 64], sizes = [2, 32], strides = [1, 1]} : vector<2x96xf32> to vector<2x32xf32>
    %372 = arith.mulf %368, %371 : vector<2x32xf32>
    %373 = arith.addf %370, %372 : vector<2x32xf32>
    %374 = math.tanh %373 : vector<2x32xf32>
    %cst_80 = arith.constant 1.000000e+00 : f32
    %375 = vector.broadcast %cst_80 : f32 to vector<2x32xf32>
    %376 = arith.subf %375, %369 : vector<2x32xf32>
    %377 = arith.mulf %376, %374 : vector<2x32xf32>
    %378 = arith.mulf %369, %348 : vector<2x32xf32>
    %379 = arith.addf %377, %378 : vector<2x32xf32>
    %cst_81 = arith.constant dense<0.000000e+00> : vector<2x128xf32>
    %380 = tpu.matmul %379, %3, %cst_81 {dimension_numbers = #tpu.dot_dimension_numbers<[1], [0], [0], [1], [0, 0, 1, 1], [], []>, precision = #tpu.contract_precision<fp32>} : vector<2x32xf32>, vector<32x128xf32>, vector<2x128xf32> -> vector<2x128xf32>
    %381 = arith.addf %380, %9 : vector<2x128xf32>
    %382 = vector.extract_strided_slice %381 {offsets = [0, 0], sizes = [2, 96], strides = [1, 1]} : vector<2x128xf32> to vector<2x96xf32>
    %383 = vector.extract_strided_slice %381 {offsets = [0, 96], sizes = [2, 32], strides = [1, 1]} : vector<2x128xf32> to vector<2x32xf32>
    %cst_82 = arith.constant dense<0xFF800000> : vector<2xf32>
    %384 = vector.multi_reduction <maximumf>, %383, %cst_82 [1] : vector<2x32xf32> to vector<2xf32>
    %385 = vector.shape_cast %384 : vector<2xf32> to vector<2x1xf32>
    %386 = vector.broadcast %385 : vector<2x1xf32> to vector<2x32xf32>
    %387 = arith.cmpf oeq, %383, %386 : vector<2x32xf32>
    %388 = arith.extui %387 : vector<2x32xi1> to vector<2x32xi32>
    %389 = arith.sitofp %388 : vector<2x32xi32> to vector<2x32xf32>
    %cst_83 = arith.constant dense<0.000000e+00> : vector<2x96xf32>
    %390 = tpu.matmul %389, %1, %cst_83 {dimension_numbers = #tpu.dot_dimension_numbers<[1], [0], [0], [1], [0, 0, 1, 1], [], []>, precision = #tpu.contract_precision<fp32>} : vector<2x32xf32>, vector<32x96xf32>, vector<2x96xf32> -> vector<2x96xf32>
    %391 = vector.extract_strided_slice %390 {offsets = [0, 0], sizes = [2, 64], strides = [1, 1]} : vector<2x96xf32> to vector<2x64xf32>
    %392 = vector.extract_strided_slice %382 {offsets = [0, 0], sizes = [2, 64], strides = [1, 1]} : vector<2x96xf32> to vector<2x64xf32>
    %393 = arith.addf %391, %392 : vector<2x64xf32>
    %394 = arith.negf %393 : vector<2x64xf32>
    %395 = math.exp %394 : vector<2x64xf32>
    %cst_84 = arith.constant 1.000000e+00 : f32
    %396 = vector.broadcast %cst_84 : f32 to vector<2x64xf32>
    %397 = arith.addf %396, %395 : vector<2x64xf32>
    %398 = arith.divf %396, %397 : vector<2x64xf32>
    %399 = vector.extract_strided_slice %398 {offsets = [0, 0], sizes = [2, 32], strides = [1, 1]} : vector<2x64xf32> to vector<2x32xf32>
    %400 = vector.extract_strided_slice %398 {offsets = [0, 32], sizes = [2, 32], strides = [1, 1]} : vector<2x64xf32> to vector<2x32xf32>
    %401 = vector.extract_strided_slice %390 {offsets = [0, 64], sizes = [2, 32], strides = [1, 1]} : vector<2x96xf32> to vector<2x32xf32>
    %402 = vector.extract_strided_slice %382 {offsets = [0, 64], sizes = [2, 32], strides = [1, 1]} : vector<2x96xf32> to vector<2x32xf32>
    %403 = arith.mulf %399, %402 : vector<2x32xf32>
    %404 = arith.addf %401, %403 : vector<2x32xf32>
    %405 = math.tanh %404 : vector<2x32xf32>
    %cst_85 = arith.constant 1.000000e+00 : f32
    %406 = vector.broadcast %cst_85 : f32 to vector<2x32xf32>
    %407 = arith.subf %406, %400 : vector<2x32xf32>
    %408 = arith.mulf %407, %405 : vector<2x32xf32>
    %409 = arith.mulf %400, %379 : vector<2x32xf32>
    %410 = arith.addf %408, %409 : vector<2x32xf32>
    %cst_86 = arith.constant dense<0.000000e+00> : vector<2x128xf32>
    %411 = tpu.matmul %410, %3, %cst_86 {dimension_numbers = #tpu.dot_dimension_numbers<[1], [0], [0], [1], [0, 0, 1, 1], [], []>, precision = #tpu.contract_precision<fp32>} : vector<2x32xf32>, vector<32x128xf32>, vector<2x128xf32> -> vector<2x128xf32>
    %412 = arith.addf %411, %9 : vector<2x128xf32>
    %413 = vector.extract_strided_slice %412 {offsets = [0, 0], sizes = [2, 96], strides = [1, 1]} : vector<2x128xf32> to vector<2x96xf32>
    %414 = vector.extract_strided_slice %412 {offsets = [0, 96], sizes = [2, 32], strides = [1, 1]} : vector<2x128xf32> to vector<2x32xf32>
    %cst_87 = arith.constant dense<0xFF800000> : vector<2xf32>
    %415 = vector.multi_reduction <maximumf>, %414, %cst_87 [1] : vector<2x32xf32> to vector<2xf32>
    %416 = vector.shape_cast %415 : vector<2xf32> to vector<2x1xf32>
    %417 = vector.broadcast %416 : vector<2x1xf32> to vector<2x32xf32>
    %418 = arith.cmpf oeq, %414, %417 : vector<2x32xf32>
    %419 = arith.extui %418 : vector<2x32xi1> to vector<2x32xi32>
    %420 = arith.sitofp %419 : vector<2x32xi32> to vector<2x32xf32>
    %cst_88 = arith.constant dense<0.000000e+00> : vector<2x96xf32>
    %421 = tpu.matmul %420, %1, %cst_88 {dimension_numbers = #tpu.dot_dimension_numbers<[1], [0], [0], [1], [0, 0, 1, 1], [], []>, precision = #tpu.contract_precision<fp32>} : vector<2x32xf32>, vector<32x96xf32>, vector<2x96xf32> -> vector<2x96xf32>
    %422 = vector.extract_strided_slice %421 {offsets = [0, 0], sizes = [2, 64], strides = [1, 1]} : vector<2x96xf32> to vector<2x64xf32>
    %423 = vector.extract_strided_slice %413 {offsets = [0, 0], sizes = [2, 64], strides = [1, 1]} : vector<2x96xf32> to vector<2x64xf32>
    %424 = arith.addf %422, %423 : vector<2x64xf32>
    %425 = arith.negf %424 : vector<2x64xf32>
    %426 = math.exp %425 : vector<2x64xf32>
    %cst_89 = arith.constant 1.000000e+00 : f32
    %427 = vector.broadcast %cst_89 : f32 to vector<2x64xf32>
    %428 = arith.addf %427, %426 : vector<2x64xf32>
    %429 = arith.divf %427, %428 : vector<2x64xf32>
    %430 = vector.extract_strided_slice %429 {offsets = [0, 0], sizes = [2, 32], strides = [1, 1]} : vector<2x64xf32> to vector<2x32xf32>
    %431 = vector.extract_strided_slice %429 {offsets = [0, 32], sizes = [2, 32], strides = [1, 1]} : vector<2x64xf32> to vector<2x32xf32>
    %432 = vector.extract_strided_slice %421 {offsets = [0, 64], sizes = [2, 32], strides = [1, 1]} : vector<2x96xf32> to vector<2x32xf32>
    %433 = vector.extract_strided_slice %413 {offsets = [0, 64], sizes = [2, 32], strides = [1, 1]} : vector<2x96xf32> to vector<2x32xf32>
    %434 = arith.mulf %430, %433 : vector<2x32xf32>
    %435 = arith.addf %432, %434 : vector<2x32xf32>
    %436 = math.tanh %435 : vector<2x32xf32>
    %cst_90 = arith.constant 1.000000e+00 : f32
    %437 = vector.broadcast %cst_90 : f32 to vector<2x32xf32>
    %438 = arith.subf %437, %431 : vector<2x32xf32>
    %439 = arith.mulf %438, %436 : vector<2x32xf32>
    %440 = arith.mulf %431, %410 : vector<2x32xf32>
    %441 = arith.addf %439, %440 : vector<2x32xf32>
    %cst_91 = arith.constant dense<0.000000e+00> : vector<2x128xf32>
    %442 = tpu.matmul %441, %3, %cst_91 {dimension_numbers = #tpu.dot_dimension_numbers<[1], [0], [0], [1], [0, 0, 1, 1], [], []>, precision = #tpu.contract_precision<fp32>} : vector<2x32xf32>, vector<32x128xf32>, vector<2x128xf32> -> vector<2x128xf32>
    %443 = arith.addf %442, %9 : vector<2x128xf32>
    %444 = vector.extract_strided_slice %443 {offsets = [0, 96], sizes = [2, 32], strides = [1, 1]} : vector<2x128xf32> to vector<2x32xf32>
    %445 = tpu.concatenate %228, %259, %290, %321, %352, %383, %414, %444 in 1 : vector<2x32xf32>, vector<2x32xf32>, vector<2x32xf32>, vector<2x32xf32>, vector<2x32xf32>, vector<2x32xf32>, vector<2x32xf32>, vector<2x32xf32> -> vector<2x256xf32>
    %c0_92 = arith.constant 0 : index
    %c0_93 = arith.constant 0 : index
    %446 = vector.load %arg8[%c0_92, %c0_93] : memref<2x256xf32, #tpu.memory_space<vmem>>, vector<2x256xf32>
    tpu.vector_store %arg8[%c0_92, %c0_93], %445 {strides = array<i32>} : memref<2x256xf32, #tpu.memory_space<vmem>>, vector<2x256xf32>,
    return
  }
}

</mosaic_0001>

<bundles_post_ra>
// kernel: tpu_custom_call.1
= control target key start
LH: loop header
LB: loop body
LE: loop exit
PB: predicated region body
PF: predicated region fallthrough
CT: control target
= control target key end

     0   :  { %13 = vsyncpa [#allocation3], 0  ;;  %s16752_s0 = inlined_call_operand.hbm [shape: f32[8,2,96], index: 0, kind: input, shape index: {}]   ;;  %s16753_s1 = inlined_call_operand.hbm [shape: f32[32,96], index: 1, kind: input, shape index: {}]   ;;  %s16754_s2 = inlined_call_operand.vmem [shape: f32[1,96], index: 2, kind: input, shape index: {}]   ;;  %s16755_s3 = inlined_call_operand.vmem [shape: f32[2,96], index: 3, kind: input, shape index: {}]   ;;  %s16756_s4 = inlined_call_operand.hbm [shape: f32[32,96], index: 4, kind: input, shape index: {}]   ;;  %s16757_s5 = inlined_call_operand.hbm [shape: f32[32,96], index: 5, kind: input, shape index: {}]   ;;  %s16758_s6 = inlined_call_operand.hbm [shape: f32[32,128], index: 6, kind: input, shape index: {}]   ;;  %s16759_s7 = inlined_call_operand.vmem [shape: f32[1,128], index: 7, kind: input, shape index: {}]   ;;  %s16760_s8 = inlined_call_operand.hbm [shape: f32[2,256], index: 8, kind: output, shape index: {}]  }
   0x1   :  { %14 = vsyncpa [#allocation6], 0 }
   0x2   :  { %15 = vsyncpa [#allocation9], 0 }
   0x3   :  { %16 = vsyncpa [#allocation4], 0  ;;  %s15482_s27 = smov [#allocation5]   ;;  %s15342_s9 = scalar_lea.hbm %s16753_s1, 512 }
   0x4   :  { %s34_s28 = sshll.u32 %s15482_s27, 4  ;;  %p15343_p0 = scmp.ne.s32.totalorder %s16753_s1, %s15342_s9  ;;  %s35_s28 = int_to_ptr.vmem [resolvable:$true] %s34_s28 }
   0x5   :  { %p15346_p1 = scmp.lt.u32.totalorder %s15342_s9, %s16753_s1 }
   0x7   :  { %p15348_p2 = pnand %p15346_p1, %p15343_p0 }
   0x9   :  { %15351 = shalt.err (!%p15348_p2)
}
   0xa   :  { %s15352_s14 = scalar_lea.vmem %s35_s28, 512  ;;  %p15357_p4 = scmp.lt.s32.totalorder %s35_s28, %s35_s28 }
   0xb   :  { %p15353_p3 = scmp.ne.s32.totalorder %s35_s28, %s15352_s14  ;;  %p15358_p5 = scmp.lt.s32.totalorder %s15352_s14, %s15352_s14 }
   0xd   :  { %p15359_p6 = por %p15358_p5, %p15357_p4 }
   0xf   :  { %p15360_p7 = pnand %p15359_p6, %p15353_p3 }
  0x11   :  { %15363 = shalt.err (!%p15360_p7)
}
  0x12   :  { %s15483_s15 = smov 128   ;;  %s15484_s16 = smov 8  }
  0x13   :  { %40 = dma.hbm_to_vmem [thread:$0]  %s16753_s1, 512, %s35_s28, [#allocation6], %s15483_s15, %s15483_s15, %s15484_s16  }
  0x14   :  { %s15485_s19 = smov [#allocation8]   ;;  %s15486_s21 = smov [#allocation2]  }
  0x15   :  { %s62_s20 = sshll.u32 %s15485_s19, 4  ;;  %s22_s22 = sshll.u32 %s15486_s21, 4  ;;  %s63_s20 = int_to_ptr.vmem [resolvable:$true] %s62_s20  ;;  %s23_s22 = int_to_ptr.vmem [resolvable:$true] %s22_s22 }
  0x16   :  { %s15364_s25 = scalar_lea.hbm %s16757_s5, 512 }
  0x17   :  { %p15365_p8 = scmp.ne.s32.totalorder %s16757_s5, %s15364_s25  ;;  %p15368_p9 = scmp.lt.u32.totalorder %s15364_s25, %s16757_s5 }
  0x19   :  { %p15370_p10 = pnand %p15368_p9, %p15365_p8 }
  0x1b   :  { %15373 = shalt.err (!%p15370_p10)
}
  0x1c   :  { %s15374_s1 = scalar_lea.vmem %s63_s20, 512  ;;  %p15379_p12 = scmp.lt.s32.totalorder %s63_s20, %s63_s20 }
  0x1d   :  { %p15375_p11 = scmp.ne.s32.totalorder %s63_s20, %s15374_s1  ;;  %p15380_p13 = scmp.lt.s32.totalorder %s15374_s1, %s15374_s1 }
  0x1f   :  { %p15381_p0 = por %p15380_p13, %p15379_p12 }
  0x21   :  { %p15382_p1 = pnand %p15381_p0, %p15375_p11 }
  0x23   :  { %15385 = shalt.err (!%p15382_p1)
}
  0x24   :  { %68 = dma.hbm_to_vmem [thread:$0]  %s16757_s5, 512, %s63_s20, [#allocation9], %s15483_s15, %s15483_s15, %s15484_s16  }
  0x25   :  { %s15386_s12 = scalar_lea.hbm %s16752_s0, 256 }
  0x26   :  { %p15387_p2 = scmp.ne.s32.totalorder %s16752_s0, %s15386_s12  ;;  %p15390_p3 = scmp.lt.u32.totalorder %s15386_s12, %s16752_s0 }
  0x28   :  { %p15392_p4 = pnand %p15390_p3, %p15387_p2 }
  0x2a   :  { %15395 = shalt.err (!%p15392_p4)
}
  0x2b   :  { %s15396_s19 = scalar_lea.vmem %s23_s22, 256  ;;  %p15401_p6 = scmp.lt.s32.totalorder %s23_s22, %s23_s22 }
  0x2c   :  { %p15397_p5 = scmp.ne.s32.totalorder %s23_s22, %s15396_s19  ;;  %p15402_p7 = scmp.lt.s32.totalorder %s15396_s19, %s15396_s19 }
  0x2e   :  { %p15403_p8 = por %p15402_p7, %p15401_p6 }
  0x30   :  { %p15404_p9 = pnand %p15403_p8, %p15397_p5 }
  0x32   :  { %15407 = shalt.err (!%p15404_p9)
}
  0x33   :  { %s15487_s5 = smov 32   ;;  %s15488_s20 = smov 2  }
  0x34   :  { %28 = dma.hbm_to_vmem [thread:$0]  %s16752_s0, 256, %s23_s22, [#allocation3], %s15487_s5, %s15487_s5, %s15488_s20  }
  0x35   :  { %s15489_s24 = smov [#allocation7]   ;;  %s15490_s26 = smov [#allocation10]  }
  0x36   :  { %s50_s25 = sshll.u32 %s15489_s24, 4  ;;  %s74_s27 = sshll.u32 %s15490_s26, 4  ;;  %s51_s25 = int_to_ptr.vmem [resolvable:$true] %s50_s25  ;;  %s75_s27 = int_to_ptr.vmem [resolvable:$true] %s74_s27 }
  0x37   :  { %s15408_s1 = scalar_lea.hbm %s16756_s4, 512 }
  0x38   :  { %p15409_p10 = scmp.ne.s32.totalorder %s16756_s4, %s15408_s1  ;;  %p15412_p11 = scmp.lt.u32.totalorder %s15408_s1, %s16756_s4 }
  0x3a   :  { %p15414_p12 = pnand %p15412_p11, %p15409_p10 }
  0x3c   :  { %15417 = shalt.err (!%p15414_p12)
}
  0x3d   :  { %s15418_s0 = scalar_lea.vmem %s51_s25, 512  ;;  %p15423_p0 = scmp.lt.s32.totalorder %s51_s25, %s51_s25 }
  0x3e   :  { %p15419_p13 = scmp.ne.s32.totalorder %s51_s25, %s15418_s0  ;;  %p15424_p1 = scmp.lt.s32.totalorder %s15418_s0, %s15418_s0 }
  0x40   :  { %p15425_p2 = por %p15424_p1, %p15423_p0 }
  0x42   :  { %p15426_p3 = pnand %p15425_p2, %p15419_p13 }
  0x44   :  { %15429 = shalt.err (!%p15426_p3)
}
  0x45   :  { %56 = dma.hbm_to_vmem [thread:$0]  %s16756_s4, 512, %s51_s25, [#allocation6], %s15483_s15, %s15483_s15, %s15484_s16  }
  0x46   :  { %s15430_s17 = scalar_lea.hbm %s16758_s6, 512 }
  0x47   :  { %p15431_p4 = scmp.ne.s32.totalorder %s16758_s6, %s15430_s17  ;;  %p15434_p5 = scmp.lt.u32.totalorder %s15430_s17, %s16758_s6 }
  0x49   :  { %p15436_p6 = pnand %p15434_p5, %p15431_p4 }
  0x4b   :  { %15439 = shalt.err (!%p15436_p6)
}
  0x4c   :  { %s15440_s23 = scalar_lea.vmem %s75_s27, 512  ;;  %p15445_p8 = scmp.lt.s32.totalorder %s75_s27, %s75_s27 }
  0x4d   :  { %p15441_p7 = scmp.ne.s32.totalorder %s75_s27, %s15440_s23  ;;  %p15446_p9 = scmp.lt.s32.totalorder %s15440_s23, %s15440_s23 }
  0x4f   :  { %p15447_p10 = por %p15446_p9, %p15445_p8 }
  0x51   :  { %p15448_p11 = pnand %p15447_p10, %p15441_p7 }
  0x53   :  { %15451 = shalt.err (!%p15448_p11)
}
  0x54   :  { %80 = dma.hbm_to_vmem [thread:$0]  %s16758_s6, 512, %s75_s27, [#allocation9], %s15483_s15, %s15483_s15, %s15484_s16  }
  0x55   :  { %15474 = dma.done.wait [#allocation3], 256  }
  0x56   :  { %15475 = vsyncadd [#allocation3], 4294967040 }
  0x57   :  { %15476 = dma.done.wait [#allocation6], 1024  }
  0x58   :  { %15477 = vsyncadd [#allocation6], 4294966272 }
  0x59   :  { %15478 = dma.done.wait [#allocation9], 1024  }
  0x5a   :  { %15479 = vsyncadd [#allocation9], 4294966272  ;;  %v15619_v0 = vld [vmem:[%s16754_s2] ss:$0 sm:$0xff]  ;;  %s15491_s29 = smov 64   ;;  %v15492_v11 = vmov 0.0|0.0  }
  0x5b   :  { %136 = vrot.lane.b32.xlu0 %v15619_v0, %s15491_s29  ;;  %v128_v1 = vld [vmem:[#allocation2] sm:$0x3]  ;;  %14174 = vmatprep.subr.bf16.mxu0 %v15492_v11  ;;  %s15493_s6 = smov 96   ;;  %v98_v13 = vld [vmem:[#allocation5] sm:$0xff]  ;;  %v99_v14 = vld [vmem:[#allocation5 + $0x8] sm:$0xff]  ;;  %vm15494_vm0 = vmmov 0  }
  0x5c   :  { %v129_v2 = vadd.f32 %v15619_v0, %v128_v1  ;;  %14156 = vmatprep.subr.bf16.mxu1 %v15492_v11  ;;  %v161_v15 = vand.u32 4294901760, %v98_v13  ;;  %v164_v16 = vand.u32 4294901760, %v99_v14  ;;  %v100_v18 = vld [vmem:[#allocation5 + $0x10] sm:$0xff]  ;;  %v101_v19 = vld [vmem:[#allocation5 + $0x18] sm:$0xff]  ;;  %v15495_v25 = vmov 0.0  }
  0x5d   :  { %v167_v20 = vand.u32 4294901760, %v100_v18  ;;  %v170_v21 = vand.u32 4294901760, %v101_v19  ;;  %12679 = vmatprep.mubr.msk.f32.mxu0 %vm15494_vm0, %v15495_v25  ;;  %12646 = vmatprep.mubr.msk.f32.mxu1 %vm15494_vm0, %v15495_v25  ;;  %vm157_vm1 = vcmask 261120   ;;  %vm4788_vm2 = vcmask 1042176  }
  0x5e   :  { %v11924_v3 = vmul.f32 -1.442695, %v129_v2  ;;  %v15628_v17 = vpack.c.bf16 %v164_v16, %v161_v15  ;;  %v241_v23 = vsub.f32 %v98_v13, %v161_v15  ;;  %v248_v24 = vsub.f32 %v99_v14, %v164_v16 }
  0x5f   :  { %v15634_v22 = vpack.c.bf16 %v170_v21, %v167_v20  ;;  %v255_v33 = vsub.f32 %v100_v18, %v167_v20  ;;  %v262_v34 = vsub.f32 %v101_v19, %v170_v21  ;;  %vm11886_vm10 = vcmask 523264  }
  0x60   :  { %15244 = vpow2.f32 %v11924_v3  ;;  %14176 = vmatpush3.bf16.msra.mxu0 %v15628_v17  ;;  %14158 = vmatpush3.bf16.msra.mxu1 %v15628_v17  ;;  %v242_v26 = vand.u32 4294901760, %v241_v23  ;;  %v249_v27 = vand.u32 4294901760, %v248_v24  ;;  %v15656_v49 = vpack.c.bf16 %v248_v24, %v241_v23 }
  0x61   :  { %14177 = vmatprep.subr.bf16.mxu0 %v15492_v11  ;;  %14159 = vmatprep.subr.bf16.mxu1 %v15492_v11  ;;  %v256_v39 = vand.u32 4294901760, %v255_v33  ;;  %v263_v40 = vand.u32 4294901760, %v262_v34  ;;  %v15658_v50 = vpack.c.bf16 %v262_v34, %v255_v33  ;;  %vm11888_vm11 = vcmask 785408  }
  0x62   :  { %v15641_v29 = vpack.c.bf16 %v249_v27, %v242_v26  ;;  %v243_v30 = vsub.f32 %v241_v23, %v242_v26  ;;  %v250_v31 = vsub.f32 %v248_v24, %v249_v27 }
  0x63   :  { %v15650_v43 = vpack.c.bf16 %v263_v40, %v256_v39  ;;  %v257_v44 = vsub.f32 %v255_v33, %v256_v39  ;;  %v264_v45 = vsub.f32 %v262_v34, %v263_v40 }
  0x64   :  { %14179 = vmatpush3.bf16.msra.mxu0 %v15634_v22  ;;  %14161 = vmatpush3.bf16.msra.mxu1 %v15634_v22  ;;  %v244_v36 = vand.u32 4294901760, %v243_v30  ;;  %v251_v37 = vand.u32 4294901760, %v250_v31 }
  0x65   :  { %14180 = vmatprep.subr.bf16.mxu0 %v15492_v11  ;;  %14162 = vmatprep.subr.bf16.mxu1 %v15492_v11  ;;  %v258_v46 = vand.u32 4294901760, %v257_v44  ;;  %v265_v47 = vand.u32 4294901760, %v264_v45 }
  0x66   :  { %v15646_v41 = vpack.c.bf16 %v251_v37, %v244_v36 }
  0x67   :  { %v15654_v48 = vpack.c.bf16 %v265_v47, %v258_v46 }
  0x6a   :  { %v15245_v4 = vpop.eup %15244 }
  0x6b   :  { %v133_v5 = vadd.f32 1.0, %v15245_v4 }
  0x6d   :  { %15246 = vrcp.f32 %v133_v5 }
  0x77   :  { %v15247_v6 = vpop.eup %15246 }
  0x78   :  { %v146_v28 = vsub.f32 1.0, %v15247_v6  ;;  %v152_v32 = vmul.f32 0.0, %v15247_v6 }
  0xcd   :  { %v137_v7 = vpop.permute.xlu0 %136 }
  0xce   :  { %v139_v8 = vmul.f32 %v15247_v6, %v137_v7 }
  0xd0   :  { %141 = vrot.lane.b32.xlu0 %v139_v8, %s15491_s29 }
 0x142   :  { %v142_v9 = vpop.permute.xlu0 %141 }
 0x143   :  { %v144_v10 = vadd.f32 %v142_v9, %v128_v1  ;;  %v646_v1 = vld [vmem:[#allocation2 + $0x2] sm:$0x3] }
 0x145   :  { %15248 = vtanh.f32 %v144_v10 }
 0x14f   :  { %v15249_v12 = vpop.eup %15248 }
 0x150   :  { %148 = vrot.lane.b32.xlu1 %v15249_v12, %s15493_s6 }
 0x1c2   :  { %v149_v35 = vpop.permute.xlu1 %148 }
 0x1c3   :  { %v151_v38 = vmul.f32 %v149_v35, %v146_v28 }
 0x1c5   :  { %v15648_v42 = vadd.f32 %v152_v32, %v151_v38  ;;  %v1164_v32 = vld [vmem:[#allocation2 + $0x4] sm:$0x3] }
 0x1c7   :  { %155 = vrot.lane.b32.xlu1 %v15648_v42, %s15493_s6 }
 0x239   :  { %v156_v51 = vpop.permute.xlu1 %155 }
 0x23a   :  { %v158_v52 = vsel %vm157_vm1, %v156_v51, 0 }
 0x23b   :  { %v229_v53 = vand.u32 4294901760, %v158_v52 }
 0x23d   :  { %v230_v54 = vsub.f32 %v158_v52, %v229_v53 }
 0x23f   :  { %v231_v55 = vand.u32 4294901760, %v230_v54 }
 0x241   :  { %12680 = vmatmul.mubr.f32.vlgmr.msra.gmra.mrb[0].mxu0 %v231_v55  ;;  %v232_v56 = vsub.f32 %v230_v54, %v231_v55 }
 0x242   :  { %14182 = vmatpush3.bf16.msra.mxu0 %v15641_v29  ;;  %12690 = vmatprep.mubr.msk.f32.mxu0 %vm15494_vm0, %v15495_v25 }
 0x243   :  { %v233_v57 = vand.u32 4294901760, %v232_v56  ;;  %14183 = vmatprep.subr.bf16.mxu0 %v15492_v11 }
 0x245   :  { %12647 = vmatmul.mubr.f32.vlgmr.msra.gmra.mrb[0].mxu1 %v233_v57 }
 0x246   :  { %14164 = vmatpush3.bf16.msra.mxu1 %v15646_v41  ;;  %14185 = vmatpush3.bf16.msra.mxu0 %v15650_v43 }
 0x247   :  { %14165 = vmatprep.subr.bf16.mxu1 %v15492_v11  ;;  %14186 = vmatprep.subr.bf16.mxu0 %v15492_v11 }
 0x248   :  { %12657 = vmatprep.mubr.msk.f32.mxu1 %vm15494_vm0, %v15495_v25 }
 0x249   :  { %12691 = vmatmul.mubr.f32.vlgmr.msra.gmra.mrb[0].mxu0 %v229_v53 }
 0x24a   :  { %14167 = vmatpush3.bf16.msra.mxu1 %v15654_v48  ;;  %14188 = vmatpush3.bf16.msra.mxu0 %v15628_v17 }
 0x24b   :  { %14168 = vmatprep.subr.bf16.mxu1 %v15492_v11  ;;  %14189 = vmatprep.subr.bf16.mxu0 %v15492_v11 }
 0x24c   :  { %12701 = vmatprep.mubr.msk.f32.mxu0 %vm15494_vm0, %v15495_v25 }
 0x24d   :  { %12658 = vmatmul.mubr.f32.vlgmr.msra.gmra.mrb[0].mxu1 %v229_v53 }
 0x24e   :  { %14170 = vmatpush3.bf16.msra.mxu1 %v15656_v49  ;;  %14191 = vmatpush3.bf16.msra.mxu0 %v15634_v22 }
 0x24f   :  { %14171 = vmatprep.subr.bf16.mxu1 %v15492_v11  ;;  %12668 = vmatprep.mubr.msk.f32.mxu1 %vm15494_vm0, %v15495_v25 }
 0x250   :  { %14228 = vmatprep.subr.bf16.mxu0 %v15492_v11 }
 0x251   :  { %12702 = vmatmul.mubr.f32.vlgmr.msra.gmra.mrb[0].mxu0 %v229_v53 }
 0x252   :  { %14173 = vmatpush3.bf16.msra.mxu1 %v15658_v50  ;;  %14230 = vmatpush3.bf16.msra.mxu0 %v15628_v17 }
 0x253   :  { %14192 = vmatprep.subr.bf16.mxu1 %v15492_v11  ;;  %14231 = vmatprep.subr.bf16.mxu0 %v15492_v11 }
 0x254   :  { %12778 = vmatprep.mubr.msk.f32.mxu0 %vm15494_vm0, %v15495_v25 }
 0x255   :  { %12669 = vmatmul.mubr.f32.vlgmr.msra.gmra.mrb[0].mxu1 %v230_v54 }
 0x256   :  { %14194 = vmatpush3.bf16.msra.mxu1 %v15628_v17  ;;  %12712 = vmatprep.mubr.msk.f32.mxu1 %vm15494_vm0, %v15495_v25 }
 0x257   :  { %14195 = vmatprep.subr.bf16.mxu1 %v15492_v11  ;;  %14233 = vmatpush3.bf16.msra.mxu0 %v15634_v22 }
 0x258   :  { %14234 = vmatprep.subr.bf16.mxu0 %v15492_v11 }
 0x25a   :  { %14197 = vmatpush3.bf16.msra.mxu1 %v15634_v22 }
 0x25b   :  { %14198 = vmatprep.subr.bf16.mxu1 %v15492_v11 }
 0x324   :  { %v641_v58 = vpop.f32.mrb[0].mxu0 }
 0x325   :  { %v12703_v59 = vpop.f32.mrb[1].mxu0 }
 0x328   :  { %v406_v60 = vpop.f32.mrb[0].mxu1 }
 0x329   :  { %v14984_v61 = vadd.f32 %v15619_v0, %v406_v60  ;;  %v12670_v62 = vpop.f32.mrb[1].mxu1 }
 0x32b   :  { %v14985_v63 = vadd.f32 %v14984_v61, %v641_v58 }
 0x32d   :  { %655 = vrot.lane.b32.xlu0 %v14985_v63, %s15491_s29  ;;  %v647_v2 = vadd.f32 %v14985_v63, %v646_v1  ;;  %v1682_v63 = vld [vmem:[#allocation2 + $0x6] sm:$0x3] }
 0x32f   :  { %v11925_v3 = vmul.f32 -1.442695, %v647_v2 }
 0x331   :  { %15250 = vpow2.f32 %v11925_v3 }
 0x33b   :  { %v15251_v4 = vpop.eup %15250 }
 0x33c   :  { %v651_v5 = vadd.f32 1.0, %v15251_v4 }
 0x33e   :  { %15252 = vrcp.f32 %v651_v5 }
 0x348   :  { %v15253_v6 = vpop.eup %15252 }
 0x349   :  { %v665_v13 = vsub.f32 1.0, %v15253_v6  ;;  %v671_v15 = vmul.f32 %v15253_v6, %v15648_v42 }
 0x39f   :  { %v656_v7 = vpop.permute.xlu0 %655 }
 0x3a0   :  { %v658_v8 = vmul.f32 %v15253_v6, %v656_v7 }
 0x3a2   :  { %660 = vrot.lane.b32.xlu1 %v658_v8, %s15491_s29 }
 0x414   :  { %v661_v9 = vpop.permute.xlu1 %660 }
 0x415   :  { %v663_v10 = vadd.f32 %v661_v9, %v646_v1 }
 0x417   :  { %15254 = vtanh.f32 %v663_v10 }
 0x421   :  { %v15255_v12 = vpop.eup %15254 }
 0x422   :  { %667 = vrot.lane.b32.xlu0 %v15255_v12, %s15493_s6 }
 0x494   :  { %v668_v14 = vpop.permute.xlu0 %667 }
 0x495   :  { %v670_v16 = vmul.f32 %v668_v14, %v665_v13 }
 0x497   :  { %v15702_v18 = vadd.f32 %v671_v15, %v670_v16 }
 0x499   :  { %674 = vrot.lane.b32.xlu1 %v15702_v18, %s15493_s6 }
 0x50b   :  { %v675_v19 = vpop.permute.xlu1 %674 }
 0x50c   :  { %v676_v20 = vsel %vm157_vm1, %v675_v19, 0 }
 0x50d   :  { %v747_v21 = vand.u32 4294901760, %v676_v20 }
 0x50f   :  { %v748_v23 = vsub.f32 %v676_v20, %v747_v21 }
 0x511   :  { %v749_v24 = vand.u32 4294901760, %v748_v23 }
 0x513   :  { %v750_v26 = vsub.f32 %v748_v23, %v749_v24 }
 0x515   :  { %v751_v27 = vand.u32 4294901760, %v750_v26 }
 0x517   :  { %12713 = vmatmul.mubr.f32.vlgmr.msra.gmra.mrb[2].mxu1 %v751_v27 }
 0x518   :  { %14200 = vmatpush3.bf16.msra.mxu1 %v15646_v41  ;;  %12723 = vmatprep.mubr.msk.f32.mxu1 %vm15494_vm0, %v15495_v25 }
 0x519   :  { %14201 = vmatprep.subr.bf16.mxu1 %v15492_v11 }
 0x51c   :  { %14203 = vmatpush3.bf16.msra.mxu1 %v15654_v48 }
 0x51d   :  { %14204 = vmatprep.subr.bf16.mxu1 %v15492_v11 }
 0x51f   :  { %12724 = vmatmul.mubr.f32.vlgmr.msra.gmra.mrb[2].mxu1 %v747_v21 }
 0x520   :  { %14206 = vmatpush3.bf16.msra.mxu1 %v15656_v49  ;;  %12734 = vmatprep.mubr.msk.f32.mxu1 %vm15494_vm0, %v15495_v25 }
 0x521   :  { %14207 = vmatprep.subr.bf16.mxu1 %v15492_v11 }
 0x524   :  { %14209 = vmatpush3.bf16.msra.mxu1 %v15658_v50 }
 0x525   :  { %14210 = vmatprep.subr.bf16.mxu1 %v15492_v11 }
 0x527   :  { %12735 = vmatmul.mubr.f32.vlgmr.msra.gmra.mrb[2].mxu1 %v748_v23 }
 0x528   :  { %14212 = vmatpush3.bf16.msra.mxu1 %v15628_v17  ;;  %12745 = vmatprep.mubr.msk.f32.mxu1 %vm15494_vm0, %v15495_v25 }
 0x529   :  { %14213 = vmatprep.subr.bf16.mxu1 %v15492_v11 }
 0x52c   :  { %14215 = vmatpush3.bf16.msra.mxu1 %v15634_v22 }
 0x52d   :  { %14216 = vmatprep.subr.bf16.mxu1 %v15492_v11 }
 0x52f   :  { %12746 = vmatmul.mubr.f32.vlgmr.msra.gmra.mrb[2].mxu1 %v749_v24 }
 0x530   :  { %14218 = vmatpush3.bf16.msra.mxu1 %v15641_v29  ;;  %12756 = vmatprep.mubr.msk.f32.mxu1 %vm15494_vm0, %v15495_v25 }
 0x531   :  { %14219 = vmatprep.subr.bf16.mxu1 %v15492_v11 }
 0x534   :  { %14221 = vmatpush3.bf16.msra.mxu1 %v15650_v43 }
 0x535   :  { %14222 = vmatprep.subr.bf16.mxu1 %v15492_v11 }
 0x537   :  { %12757 = vmatmul.mubr.f32.vlgmr.msra.gmra.mrb[2].mxu1 %v747_v21 }
 0x538   :  { %14224 = vmatpush3.bf16.msra.mxu1 %v15628_v17  ;;  %12767 = vmatprep.mubr.msk.f32.mxu1 %vm15494_vm0, %v15495_v25 }
 0x539   :  { %14225 = vmatprep.subr.bf16.mxu1 %v15492_v11 }
 0x53c   :  { %14227 = vmatpush3.bf16.msra.mxu1 %v15634_v22 }
 0x53d   :  { %14264 = vmatprep.subr.bf16.mxu1 %v15492_v11 }
 0x53f   :  { %12768 = vmatmul.mubr.f32.vlgmr.msra.gmra.mrb[2].mxu1 %v747_v21 }
 0x540   :  { %14266 = vmatpush3.bf16.msra.mxu1 %v15628_v17  ;;  %12844 = vmatprep.mubr.msk.f32.mxu1 %vm15494_vm0, %v15495_v25 }
 0x541   :  { %14267 = vmatprep.subr.bf16.mxu1 %v15492_v11 }
 0x544   :  { %14269 = vmatpush3.bf16.msra.mxu1 %v15634_v22 }
 0x545   :  { %14270 = vmatprep.subr.bf16.mxu1 %v15492_v11 }
 0x612   :  { %v1159_v28 = vpop.f32.mrb[2].mxu1 }
 0x613   :  { %v14986_v30 = vadd.f32 %v15619_v0, %v1159_v28  ;;  %v12769_v31 = vpop.f32.mrb[3].mxu1 }
 0x614   :  { %v2200_v31 = vld [vmem:[#allocation2 + $0x8] sm:$0x3] }
 0x615   :  { %1173 = vrot.lane.b32.xlu0 %v14986_v30, %s15491_s29  ;;  %v1165_v33 = vadd.f32 %v14986_v30, %v1164_v32 }
 0x617   :  { %v11926_v34 = vmul.f32 -1.442695, %v1165_v33 }
 0x619   :  { %15256 = vpow2.f32 %v11926_v34 }
 0x623   :  { %v15257_v35 = vpop.eup %15256 }
 0x624   :  { %v1169_v36 = vadd.f32 1.0, %v15257_v35 }
 0x626   :  { %15258 = vrcp.f32 %v1169_v36 }
 0x630   :  { %v15259_v37 = vpop.eup %15258 }
 0x631   :  { %v1183_v45 = vsub.f32 1.0, %v15259_v37  ;;  %v1189_v47 = vmul.f32 %v15259_v37, %v15702_v18 }
 0x687   :  { %v1174_v38 = vpop.permute.xlu0 %1173 }
 0x688   :  { %v1176_v39 = vmul.f32 %v15259_v37, %v1174_v38 }
 0x68a   :  { %1178 = vrot.lane.b32.xlu1 %v1176_v39, %s15491_s29 }
 0x6fc   :  { %v1179_v40 = vpop.permute.xlu1 %1178 }
 0x6fd   :  { %v1181_v42 = vadd.f32 %v1179_v40, %v1164_v32 }
 0x6ff   :  { %15260 = vtanh.f32 %v1181_v42 }
 0x709   :  { %v15261_v44 = vpop.eup %15260 }
 0x70a   :  { %1185 = vrot.lane.b32.xlu0 %v15261_v44, %s15493_s6 }
 0x77c   :  { %v1186_v46 = vpop.permute.xlu0 %1185 }
 0x77d   :  { %v1188_v51 = vmul.f32 %v1186_v46, %v1183_v45 }
 0x77f   :  { %v15748_v52 = vadd.f32 %v1189_v47, %v1188_v51 }
 0x781   :  { %1192 = vrot.lane.b32.xlu1 %v15748_v52, %s15493_s6 }
 0x7f3   :  { %v1193_v53 = vpop.permute.xlu1 %1192 }
 0x7f4   :  { %v1194_v54 = vsel %vm157_vm1, %v1193_v53, 0 }
 0x7f5   :  { %v1265_v55 = vand.u32 4294901760, %v1194_v54 }
 0x7f7   :  { %v1266_v56 = vsub.f32 %v1194_v54, %v1265_v55 }
 0x7f9   :  { %v1267_v57 = vand.u32 4294901760, %v1266_v56 }
 0x7fb   :  { %v1268_v58 = vsub.f32 %v1266_v56, %v1267_v57 }
 0x7fd   :  { %v1269_v59 = vand.u32 4294901760, %v1268_v58 }
 0x7ff   :  { %12779 = vmatmul.mubr.f32.vlgmr.msra.gmra.mrb[2].mxu0 %v1269_v59 }
 0x800   :  { %14236 = vmatpush3.bf16.msra.mxu0 %v15646_v41  ;;  %12789 = vmatprep.mubr.msk.f32.mxu0 %vm15494_vm0, %v15495_v25 }
 0x801   :  { %14237 = vmatprep.subr.bf16.mxu0 %v15492_v11 }
 0x804   :  { %14239 = vmatpush3.bf16.msra.mxu0 %v15654_v48 }
 0x805   :  { %14240 = vmatprep.subr.bf16.mxu0 %v15492_v11 }
 0x807   :  { %12790 = vmatmul.mubr.f32.vlgmr.msra.gmra.mrb[2].mxu0 %v1265_v55 }
 0x808   :  { %14242 = vmatpush3.bf16.msra.mxu0 %v15656_v49  ;;  %12800 = vmatprep.mubr.msk.f32.mxu0 %vm15494_vm0, %v15495_v25 }
 0x809   :  { %14243 = vmatprep.subr.bf16.mxu0 %v15492_v11 }
 0x80c   :  { %14245 = vmatpush3.bf16.msra.mxu0 %v15658_v50 }
 0x80d   :  { %14246 = vmatprep.subr.bf16.mxu0 %v15492_v11 }
 0x80f   :  { %12801 = vmatmul.mubr.f32.vlgmr.msra.gmra.mrb[2].mxu0 %v1266_v56 }
 0x810   :  { %14248 = vmatpush3.bf16.msra.mxu0 %v15628_v17  ;;  %12811 = vmatprep.mubr.msk.f32.mxu0 %vm15494_vm0, %v15495_v25 }
 0x811   :  { %14249 = vmatprep.subr.bf16.mxu0 %v15492_v11 }
 0x814   :  { %14251 = vmatpush3.bf16.msra.mxu0 %v15634_v22 }
 0x815   :  { %14252 = vmatprep.subr.bf16.mxu0 %v15492_v11 }
 0x817   :  { %12812 = vmatmul.mubr.f32.vlgmr.msra.gmra.mrb[2].mxu0 %v1267_v57 }
 0x818   :  { %14254 = vmatpush3.bf16.msra.mxu0 %v15641_v29  ;;  %12822 = vmatprep.mubr.msk.f32.mxu0 %vm15494_vm0, %v15495_v25 }
 0x819   :  { %14255 = vmatprep.subr.bf16.mxu0 %v15492_v11 }
 0x81c   :  { %14257 = vmatpush3.bf16.msra.mxu0 %v15650_v43 }
 0x81d   :  { %14258 = vmatprep.subr.bf16.mxu0 %v15492_v11 }
 0x81f   :  { %12823 = vmatmul.mubr.f32.vlgmr.msra.gmra.mrb[2].mxu0 %v1265_v55 }
 0x820   :  { %14260 = vmatpush3.bf16.msra.mxu0 %v15628_v17  ;;  %12833 = vmatprep.mubr.msk.f32.mxu0 %vm15494_vm0, %v15495_v25 }
 0x821   :  { %14261 = vmatprep.subr.bf16.mxu0 %v15492_v11 }
 0x824   :  { %14263 = vmatpush3.bf16.msra.mxu0 %v15634_v22 }
 0x825   :  { %14300 = vmatprep.subr.bf16.mxu0 %v15492_v11 }
 0x827   :  { %12834 = vmatmul.mubr.f32.vlgmr.msra.gmra.mrb[2].mxu0 %v1265_v55 }
 0x828   :  { %14302 = vmatpush3.bf16.msra.mxu0 %v15628_v17  ;;  %12910 = vmatprep.mubr.msk.f32.mxu0 %vm15494_vm0, %v15495_v25 }
 0x829   :  { %14303 = vmatprep.subr.bf16.mxu0 %v15492_v11 }
 0x82c   :  { %14305 = vmatpush3.bf16.msra.mxu0 %v15634_v22 }
 0x82d   :  { %14306 = vmatprep.subr.bf16.mxu0 %v15492_v11 }
 0x8fa   :  { %v1677_v60 = vpop.f32.mrb[2].mxu0 }
 0x8fb   :  { %v14987_v61 = vadd.f32 %v15619_v0, %v1677_v60  ;;  %v12835_v62 = vpop.f32.mrb[3].mxu0 }
 0x8fc   :  { %v2718_v62 = vld [vmem:[#allocation2 + $0xa] sm:$0x3] }
 0x8fd   :  { %1691 = vrot.lane.b32.xlu0 %v14987_v61, %s15491_s29  ;;  %v1683_v1 = vadd.f32 %v14987_v61, %v1682_v63 }
 0x8ff   :  { %v11927_v2 = vmul.f32 -1.442695, %v1683_v1 }
 0x901   :  { %15262 = vpow2.f32 %v11927_v2 }
 0x90b   :  { %v15263_v3 = vpop.eup %15262 }
 0x90c   :  { %v1687_v4 = vadd.f32 1.0, %v15263_v3 }
 0x90e   :  { %15264 = vrcp.f32 %v1687_v4 }
 0x918   :  { %v15265_v5 = vpop.eup %15264 }
 0x919   :  { %v1701_v12 = vsub.f32 1.0, %v15265_v5  ;;  %v1707_v14 = vmul.f32 %v15265_v5, %v15748_v52 }
 0x96f   :  { %v1692_v6 = vpop.permute.xlu0 %1691 }
 0x970   :  { %v1694_v7 = vmul.f32 %v15265_v5, %v1692_v6 }
 0x972   :  { %1696 = vrot.lane.b32.xlu1 %v1694_v7, %s15491_s29 }
 0x9e4   :  { %v1697_v8 = vpop.permute.xlu1 %1696 }
 0x9e5   :  { %v1699_v9 = vadd.f32 %v1697_v8, %v1682_v63 }
 0x9e7   :  { %15266 = vtanh.f32 %v1699_v9 }
 0x9f1   :  { %v15267_v10 = vpop.eup %15266 }
 0x9f2   :  { %1703 = vrot.lane.b32.xlu0 %v15267_v10, %s15493_s6 }
 0xa64   :  { %v1704_v13 = vpop.permute.xlu0 %1703 }
 0xa65   :  { %v1706_v15 = vmul.f32 %v1704_v13, %v1701_v12 }
 0xa67   :  { %v15794_v16 = vadd.f32 %v1707_v14, %v1706_v15 }
 0xa69   :  { %1710 = vrot.lane.b32.xlu1 %v15794_v16, %s15493_s6 }
 0xadb   :  { %v1711_v18 = vpop.permute.xlu1 %1710 }
 0xadc   :  { %v1712_v19 = vsel %vm157_vm1, %v1711_v18, 0 }
 0xadd   :  { %v1783_v20 = vand.u32 4294901760, %v1712_v19 }
 0xadf   :  { %v1784_v21 = vsub.f32 %v1712_v19, %v1783_v20 }
 0xae1   :  { %v1785_v23 = vand.u32 4294901760, %v1784_v21 }
 0xae3   :  { %v1786_v24 = vsub.f32 %v1784_v21, %v1785_v23 }
 0xae5   :  { %v1787_v26 = vand.u32 4294901760, %v1786_v24 }
 0xae7   :  { %12845 = vmatmul.mubr.f32.vlgmr.msra.gmra.mrb[4].mxu1 %v1787_v26 }
 0xae8   :  { %14272 = vmatpush3.bf16.msra.mxu1 %v15646_v41  ;;  %12855 = vmatprep.mubr.msk.f32.mxu1 %vm15494_vm0, %v15495_v25 }
 0xae9   :  { %14273 = vmatprep.subr.bf16.mxu1 %v15492_v11 }
 0xaec   :  { %14275 = vmatpush3.bf16.msra.mxu1 %v15654_v48 }
 0xaed   :  { %14276 = vmatprep.subr.bf16.mxu1 %v15492_v11 }
 0xaef   :  { %12856 = vmatmul.mubr.f32.vlgmr.msra.gmra.mrb[4].mxu1 %v1783_v20 }
 0xaf0   :  { %14278 = vmatpush3.bf16.msra.mxu1 %v15656_v49  ;;  %12866 = vmatprep.mubr.msk.f32.mxu1 %vm15494_vm0, %v15495_v25 }
 0xaf1   :  { %14279 = vmatprep.subr.bf16.mxu1 %v15492_v11 }
 0xaf4   :  { %14281 = vmatpush3.bf16.msra.mxu1 %v15658_v50 }
 0xaf5   :  { %14282 = vmatprep.subr.bf16.mxu1 %v15492_v11 }
 0xaf7   :  { %12867 = vmatmul.mubr.f32.vlgmr.msra.gmra.mrb[4].mxu1 %v1784_v21 }
 0xaf8   :  { %14284 = vmatpush3.bf16.msra.mxu1 %v15628_v17  ;;  %12877 = vmatprep.mubr.msk.f32.mxu1 %vm15494_vm0, %v15495_v25 }
 0xaf9   :  { %14285 = vmatprep.subr.bf16.mxu1 %v15492_v11 }
 0xafc   :  { %14287 = vmatpush3.bf16.msra.mxu1 %v15634_v22 }
 0xafd   :  { %14288 = vmatprep.subr.bf16.mxu1 %v15492_v11 }
 0xaff   :  { %12878 = vmatmul.mubr.f32.vlgmr.msra.gmra.mrb[4].mxu1 %v1785_v23 }
 0xb00   :  { %14290 = vmatpush3.bf16.msra.mxu1 %v15641_v29  ;;  %12888 = vmatprep.mubr.msk.f32.mxu1 %vm15494_vm0, %v15495_v25 }
 0xb01   :  { %14291 = vmatprep.subr.bf16.mxu1 %v15492_v11 }
 0xb04   :  { %14293 = vmatpush3.bf16.msra.mxu1 %v15650_v43 }
 0xb05   :  { %14294 = vmatprep.subr.bf16.mxu1 %v15492_v11 }
 0xb07   :  { %12889 = vmatmul.mubr.f32.vlgmr.msra.gmra.mrb[4].mxu1 %v1783_v20 }
 0xb08   :  { %14296 = vmatpush3.bf16.msra.mxu1 %v15628_v17  ;;  %12899 = vmatprep.mubr.msk.f32.mxu1 %vm15494_vm0, %v15495_v25 }
 0xb09   :  { %14297 = vmatprep.subr.bf16.mxu1 %v15492_v11 }
 0xb0c   :  { %14299 = vmatpush3.bf16.msra.mxu1 %v15634_v22 }
 0xb0d   :  { %14336 = vmatprep.subr.bf16.mxu1 %v15492_v11 }
 0xb0f   :  { %12900 = vmatmul.mubr.f32.vlgmr.msra.gmra.mrb[4].mxu1 %v1783_v20 }
 0xb10   :  { %14338 = vmatpush3.bf16.msra.mxu1 %v15628_v17  ;;  %12976 = vmatprep.mubr.msk.f32.mxu1 %vm15494_vm0, %v15495_v25 }
 0xb11   :  { %14339 = vmatprep.subr.bf16.mxu1 %v15492_v11 }
 0xb14   :  { %14341 = vmatpush3.bf16.msra.mxu1 %v15634_v22 }
 0xb15   :  { %14342 = vmatprep.subr.bf16.mxu1 %v15492_v11 }
 0xbe2   :  { %v2195_v27 = vpop.f32.mrb[4].mxu1 }
 0xbe3   :  { %v14988_v28 = vadd.f32 %v15619_v0, %v2195_v27  ;;  %v12901_v30 = vpop.f32.mrb[5].mxu1 }
 0xbe4   :  { %v3236_v30 = vld [vmem:[#allocation2 + $0xc] sm:$0x3] }
 0xbe5   :  { %2209 = vrot.lane.b32.xlu0 %v14988_v28, %s15491_s29  ;;  %v2201_v32 = vadd.f32 %v14988_v28, %v2200_v31 }
 0xbe7   :  { %v11928_v33 = vmul.f32 -1.442695, %v2201_v32 }
 0xbe9   :  { %15268 = vpow2.f32 %v11928_v33 }
 0xbf3   :  { %v15269_v34 = vpop.eup %15268 }
 0xbf4   :  { %v2205_v35 = vadd.f32 1.0, %v15269_v34 }
 0xbf6   :  { %15270 = vrcp.f32 %v2205_v35 }
 0xc00   :  { %v15271_v36 = vpop.eup %15270 }
 0xc01   :  { %v2219_v44 = vsub.f32 1.0, %v15271_v36  ;;  %v2225_v46 = vmul.f32 %v15271_v36, %v15794_v16 }
 0xc57   :  { %v2210_v37 = vpop.permute.xlu0 %2209 }
 0xc58   :  { %v2212_v38 = vmul.f32 %v15271_v36, %v2210_v37 }
 0xc5a   :  { %2214 = vrot.lane.b32.xlu1 %v2212_v38, %s15491_s29 }
 0xccc   :  { %v2215_v39 = vpop.permute.xlu1 %2214 }
 0xccd   :  { %v2217_v40 = vadd.f32 %v2215_v39, %v2200_v31 }
 0xccf   :  { %15272 = vtanh.f32 %v2217_v40 }
 0xcd9   :  { %v15273_v42 = vpop.eup %15272 }
 0xcda   :  { %2221 = vrot.lane.b32.xlu0 %v15273_v42, %s15493_s6 }
 0xd4c   :  { %v2222_v45 = vpop.permute.xlu0 %2221 }
 0xd4d   :  { %v2224_v47 = vmul.f32 %v2222_v45, %v2219_v44 }
 0xd4f   :  { %v15840_v51 = vadd.f32 %v2225_v46, %v2224_v47 }
 0xd51   :  { %2228 = vrot.lane.b32.xlu1 %v15840_v51, %s15493_s6 }
 0xdc3   :  { %v2229_v52 = vpop.permute.xlu1 %2228 }
 0xdc4   :  { %v2230_v53 = vsel %vm157_vm1, %v2229_v52, 0 }
 0xdc5   :  { %v2301_v54 = vand.u32 4294901760, %v2230_v53 }
 0xdc7   :  { %v2302_v55 = vsub.f32 %v2230_v53, %v2301_v54 }
 0xdc9   :  { %v2303_v56 = vand.u32 4294901760, %v2302_v55 }
 0xdcb   :  { %v2304_v57 = vsub.f32 %v2302_v55, %v2303_v56 }
 0xdcd   :  { %v2305_v58 = vand.u32 4294901760, %v2304_v57 }
 0xdcf   :  { %12911 = vmatmul.mubr.f32.vlgmr.msra.gmra.mrb[4].mxu0 %v2305_v58 }
 0xdd0   :  { %14308 = vmatpush3.bf16.msra.mxu0 %v15646_v41  ;;  %12921 = vmatprep.mubr.msk.f32.mxu0 %vm15494_vm0, %v15495_v25 }
 0xdd1   :  { %14309 = vmatprep.subr.bf16.mxu0 %v15492_v11 }
 0xdd4   :  { %14311 = vmatpush3.bf16.msra.mxu0 %v15654_v48 }
 0xdd5   :  { %14312 = vmatprep.subr.bf16.mxu0 %v15492_v11 }
 0xdd7   :  { %12922 = vmatmul.mubr.f32.vlgmr.msra.gmra.mrb[4].mxu0 %v2301_v54 }
 0xdd8   :  { %14314 = vmatpush3.bf16.msra.mxu0 %v15656_v49  ;;  %12932 = vmatprep.mubr.msk.f32.mxu0 %vm15494_vm0, %v15495_v25 }
 0xdd9   :  { %14315 = vmatprep.subr.bf16.mxu0 %v15492_v11 }
 0xddc   :  { %14317 = vmatpush3.bf16.msra.mxu0 %v15658_v50 }
 0xddd   :  { %14318 = vmatprep.subr.bf16.mxu0 %v15492_v11 }
 0xddf   :  { %12933 = vmatmul.mubr.f32.vlgmr.msra.gmra.mrb[4].mxu0 %v2302_v55 }
 0xde0   :  { %14320 = vmatpush3.bf16.msra.mxu0 %v15628_v17  ;;  %12943 = vmatprep.mubr.msk.f32.mxu0 %vm15494_vm0, %v15495_v25 }
 0xde1   :  { %14321 = vmatprep.subr.bf16.mxu0 %v15492_v11 }
 0xde4   :  { %14323 = vmatpush3.bf16.msra.mxu0 %v15634_v22 }
 0xde5   :  { %14324 = vmatprep.subr.bf16.mxu0 %v15492_v11 }
 0xde7   :  { %12944 = vmatmul.mubr.f32.vlgmr.msra.gmra.mrb[4].mxu0 %v2303_v56 }
 0xde8   :  { %14326 = vmatpush3.bf16.msra.mxu0 %v15641_v29  ;;  %12954 = vmatprep.mubr.msk.f32.mxu0 %vm15494_vm0, %v15495_v25 }
 0xde9   :  { %14327 = vmatprep.subr.bf16.mxu0 %v15492_v11 }
 0xdec   :  { %14329 = vmatpush3.bf16.msra.mxu0 %v15650_v43 }
 0xded   :  { %14330 = vmatprep.subr.bf16.mxu0 %v15492_v11 }
 0xdef   :  { %12955 = vmatmul.mubr.f32.vlgmr.msra.gmra.mrb[4].mxu0 %v2301_v54 }
 0xdf0   :  { %14332 = vmatpush3.bf16.msra.mxu0 %v15628_v17  ;;  %12965 = vmatprep.mubr.msk.f32.mxu0 %vm15494_vm0, %v15495_v25 }
 0xdf1   :  { %14333 = vmatprep.subr.bf16.mxu0 %v15492_v11 }
 0xdf4   :  { %14335 = vmatpush3.bf16.msra.mxu0 %v15634_v22 }
 0xdf5   :  { %14372 = vmatprep.subr.bf16.mxu0 %v15492_v11 }
 0xdf7   :  { %12966 = vmatmul.mubr.f32.vlgmr.msra.gmra.mrb[4].mxu0 %v2301_v54 }
 0xdf8   :  { %14374 = vmatpush3.bf16.msra.mxu0 %v15628_v17  ;;  %13042 = vmatprep.mubr.msk.f32.mxu0 %vm15494_vm0, %v15495_v25 }
 0xdf9   :  { %14375 = vmatprep.subr.bf16.mxu0 %v15492_v11 }
 0xdfc   :  { %14377 = vmatpush3.bf16.msra.mxu0 %v15634_v22 }
 0xdfd   :  { %14378 = vmatprep.subr.bf16.mxu0 %v15492_v11 }
 0xeca   :  { %v2713_v59 = vpop.f32.mrb[4].mxu0 }
 0xecb   :  { %v14989_v60 = vadd.f32 %v15619_v0, %v2713_v59  ;;  %v12967_v61 = vpop.f32.mrb[5].mxu0 }
 0xecd   :  { %2727 = vrot.lane.b32.xlu0 %v14989_v60, %s15491_s29  ;;  %v2719_v63 = vadd.f32 %v14989_v60, %v2718_v62 }
 0xecf   :  { %v11929_v1 = vmul.f32 -1.442695, %v2719_v63 }
 0xed1   :  { %15274 = vpow2.f32 %v11929_v1  ;;  %v106_v1 = vld [vmem:[#allocation8] sm:$0xff] }
 0xedb   :  { %v15275_v2 = vpop.eup %15274 }
 0xedc   :  { %v2723_v3 = vadd.f32 1.0, %v15275_v2  ;;  %v107_v2 = vld [vmem:[#allocation8 + $0x8] sm:$0xff] }
 0xede   :  { %15276 = vrcp.f32 %v2723_v3  ;;  %v3787_v3 = vand.u32 4294901760, %v106_v1 }
 0xee8   :  { %v15277_v4 = vpop.eup %15276 }
 0xee9   :  { %v2737_v10 = vsub.f32 1.0, %v15277_v4  ;;  %v2743_v13 = vmul.f32 %v15277_v4, %v15840_v51 }
 0xf3f   :  { %v2728_v5 = vpop.permute.xlu0 %2727 }
 0xf40   :  { %v2730_v6 = vmul.f32 %v15277_v4, %v2728_v5  ;;  %v3790_v4 = vand.u32 4294901760, %v107_v2 }
 0xf42   :  { %2732 = vrot.lane.b32.xlu1 %v2730_v6, %s15491_s29  ;;  %v15971_v5 = vpack.c.bf16 %v3790_v4, %v3787_v3  ;;  %v3867_v6 = vsub.f32 %v106_v1, %v3787_v3 }
 0xfb4   :  { %v2733_v7 = vpop.permute.xlu1 %2732 }
 0xfb5   :  { %v2735_v8 = vadd.f32 %v2733_v7, %v2718_v62  ;;  %v3874_v7 = vsub.f32 %v107_v2, %v3790_v4 }
 0xfb7   :  { %15278 = vtanh.f32 %v2735_v8  ;;  %v108_v8 = vld [vmem:[#allocation8 + $0x10] sm:$0xff] }
 0xfc1   :  { %v15279_v9 = vpop.eup %15278 }
 0xfc2   :  { %2739 = vrot.lane.b32.xlu0 %v15279_v9, %s15493_s6  ;;  %v109_v9 = vld [vmem:[#allocation8 + $0x18] sm:$0xff] }
0x1034   :  { %v2740_v12 = vpop.permute.xlu0 %2739 }
0x1035   :  { %v2742_v14 = vmul.f32 %v2740_v12, %v2737_v10  ;;  %v3793_v10 = vand.u32 4294901760, %v108_v8  ;;  %v3796_v12 = vand.u32 4294901760, %v109_v9 }
0x1037   :  { %v15886_v15 = vadd.f32 %v2743_v13, %v2742_v14  ;;  %v3868_v13 = vand.u32 4294901760, %v3867_v6  ;;  %v3875_v14 = vand.u32 4294901760, %v3874_v7 }
0x1039   :  { %2746 = vrot.lane.b32.xlu1 %v15886_v15, %s15493_s6 }
0x10ab   :  { %v2747_v16 = vpop.permute.xlu1 %2746 }
0x10ac   :  { %v2748_v18 = vsel %vm157_vm1, %v2747_v16, 0  ;;  %v3881_v16 = vsub.f32 %v108_v8, %v3793_v10 }
0x10ad   :  { %v2819_v19 = vand.u32 4294901760, %v2748_v18 }
0x10af   :  { %v2820_v20 = vsub.f32 %v2748_v18, %v2819_v19  ;;  %v3888_v18 = vsub.f32 %v109_v9, %v3796_v12 }
0x10b1   :  { %v2821_v21 = vand.u32 4294901760, %v2820_v20 }
0x10b3   :  { %v2822_v23 = vsub.f32 %v2820_v20, %v2821_v21 }
0x10b5   :  { %v2823_v24 = vand.u32 4294901760, %v2822_v23 }
0x10b7   :  { %12977 = vmatmul.mubr.f32.vlgmr.msra.gmra.mrb[6].mxu1 %v2823_v24 }
0x10b8   :  { %14344 = vmatpush3.bf16.msra.mxu1 %v15646_v41  ;;  %12987 = vmatprep.mubr.msk.f32.mxu1 %vm15494_vm0, %v15495_v25 }
0x10b9   :  { %14345 = vmatprep.subr.bf16.mxu1 %v15492_v11 }
0x10bc   :  { %14347 = vmatpush3.bf16.msra.mxu1 %v15654_v48 }
0x10bd   :  { %14348 = vmatprep.subr.bf16.mxu1 %v15492_v11 }
0x10bf   :  { %12988 = vmatmul.mubr.f32.vlgmr.msra.gmra.mrb[6].mxu1 %v2819_v19 }
0x10c0   :  { %14350 = vmatpush3.bf16.msra.mxu1 %v15656_v49  ;;  %12998 = vmatprep.mubr.msk.f32.mxu1 %vm15494_vm0, %v15495_v25 }
0x10c1   :  { %14351 = vmatprep.subr.bf16.mxu1 %v15492_v11 }
0x10c4   :  { %14353 = vmatpush3.bf16.msra.mxu1 %v15658_v50 }
0x10c5   :  { %14354 = vmatprep.subr.bf16.mxu1 %v15492_v11 }
0x10c7   :  { %12999 = vmatmul.mubr.f32.vlgmr.msra.gmra.mrb[6].mxu1 %v2820_v20 }
0x10c8   :  { %14356 = vmatpush3.bf16.msra.mxu1 %v15628_v17  ;;  %13009 = vmatprep.mubr.msk.f32.mxu1 %vm15494_vm0, %v15495_v25 }
0x10c9   :  { %14357 = vmatprep.subr.bf16.mxu1 %v15492_v11 }
0x10cc   :  { %14359 = vmatpush3.bf16.msra.mxu1 %v15634_v22 }
0x10cd   :  { %14360 = vmatprep.subr.bf16.mxu1 %v15492_v11 }
0x10cf   :  { %13010 = vmatmul.mubr.f32.vlgmr.msra.gmra.mrb[6].mxu1 %v2821_v21  ;;  %v3876_v21 = vsub.f32 %v3874_v7, %v3875_v14 }
0x10d0   :  { %14362 = vmatpush3.bf16.msra.mxu1 %v15641_v29  ;;  %13020 = vmatprep.mubr.msk.f32.mxu1 %vm15494_vm0, %v15495_v25 }
0x10d1   :  { %14363 = vmatprep.subr.bf16.mxu1 %v15492_v11 }
0x10d4   :  { %14365 = vmatpush3.bf16.msra.mxu1 %v15650_v43 }
0x10d5   :  { %14366 = vmatprep.subr.bf16.mxu1 %v15492_v11 }
0x10d7   :  { %13021 = vmatmul.mubr.f32.vlgmr.msra.gmra.mrb[6].mxu1 %v2819_v19 }
0x10d8   :  { %14368 = vmatpush3.bf16.msra.mxu1 %v15628_v17  ;;  %13031 = vmatprep.mubr.msk.f32.mxu1 %vm15494_vm0, %v15495_v25 }
0x10d9   :  { %14369 = vmatprep.subr.bf16.mxu1 %v15492_v11 }
0x10dc   :  { %14371 = vmatpush3.bf16.msra.mxu1 %v15634_v22 }
0x10dd   :  { %14408 = vmatprep.subr.bf16.mxu1 %v15492_v11 }
0x10df   :  { %13032 = vmatmul.mubr.f32.vlgmr.msra.gmra.mrb[6].mxu1 %v2819_v19  ;;  %v3869_v19 = vsub.f32 %v3867_v6, %v3868_v13 }
0x10e0   :  { %13108 = vmatprep.mubr.msk.f32.mxu1 %vm15494_vm0, %v15495_v25  ;;  %14410 = vmatpush3.bf16.msra.mxu1 %v15971_v5 }
0x10e1   :  { %14411 = vmatprep.subr.bf16.mxu1 %v15492_v11  ;;  %v3870_v24 = vand.u32 4294901760, %v3869_v19 }
0x11b2   :  { %v3231_v26 = vpop.f32.mrb[6].mxu1 }
0x11b3   :  { %v14990_v27 = vadd.f32 %v15619_v0, %v3231_v26  ;;  %v13033_v28 = vpop.f32.mrb[7].mxu1  ;;  %v3882_v26 = vand.u32 4294901760, %v3881_v16 }
0x11b5   :  { %3245 = vrot.lane.b32.xlu0 %v14990_v27, %s15491_s29  ;;  %v3237_v31 = vadd.f32 %v14990_v27, %v3236_v30  ;;  %v3889_v27 = vand.u32 4294901760, %v3888_v18 }
0x11b7   :  { %v11930_v32 = vmul.f32 -1.442695, %v3237_v31  ;;  %v3877_v31 = vand.u32 4294901760, %v3876_v21 }
0x11b9   :  { %15280 = vpow2.f32 %v11930_v32  ;;  %v3883_v32 = vsub.f32 %v3881_v16, %v3882_v26 }
0x11c3   :  { %v15281_v33 = vpop.eup %15280 }
0x11c4   :  { %v3241_v34 = vadd.f32 1.0, %v15281_v33  ;;  %v3890_v33 = vsub.f32 %v3888_v18, %v3889_v27 }
0x11c6   :  { %15282 = vrcp.f32 %v3241_v34 }
0x11d0   :  { %v15283_v35 = vpop.eup %15282 }
0x11d1   :  { %v3255_v0 = vsub.f32 1.0, %v15283_v35  ;;  %v3261_v44 = vmul.f32 %v15283_v35, %v15886_v15  ;;  %v14412_v15 = vpack.c.bf16 %v3796_v12, %v3793_v10 }
0x11d3   :  { %14413 = vmatpush3.bf16.msra.mxu1 %v14412_v15 }
0x11d4   :  { %14414 = vmatprep.subr.bf16.mxu1 %v15492_v11 }
0x1227   :  { %v3246_v36 = vpop.permute.xlu0 %3245 }
0x1228   :  { %v3248_v37 = vmul.f32 %v15283_v35, %v3246_v36  ;;  %v14415_v35 = vpack.c.bf16 %v3877_v31, %v3870_v24  ;;  %v3884_v36 = vand.u32 4294901760, %v3883_v32 }
0x122a   :  { %3250 = vrot.lane.b32.xlu1 %v3248_v37, %s15491_s29  ;;  %v3891_v37 = vand.u32 4294901760, %v3890_v33 }
0x129c   :  { %v3251_v38 = vpop.permute.xlu1 %3250 }
0x129d   :  { %v3253_v39 = vadd.f32 %v3251_v38, %v3236_v30  ;;  %v14418_v38 = vpack.c.bf16 %v3891_v37, %v3884_v36 }
0x129f   :  { %15284 = vtanh.f32 %v3253_v39  ;;  %v14421_v39 = vpack.c.bf16 %v3874_v7, %v3867_v6  ;;  %v113_v6 = vld [vmem:[#allocation10 + $0x18] sm:$0xff] }
0x12a0   :  { %v4313_v8 = vand.u32 4294901760, %v113_v6 }
0x12a9   :  { %v15285_v40 = vpop.eup %15284 }
0x12aa   :  { %3257 = vrot.lane.b32.xlu0 %v15285_v40, %s15493_s6  ;;  %v14424_v40 = vpack.c.bf16 %v3888_v18, %v3881_v16  ;;  %v4405_v18 = vsub.f32 %v113_v6, %v4313_v8 }
0x131c   :  { %v3258_v42 = vpop.permute.xlu0 %3257 }
0x131d   :  { %v3260_v45 = vmul.f32 %v3258_v42, %v3255_v0  ;;  %v14433_v0 = vpack.c.bf16 %v3875_v14, %v3868_v13  ;;  %v14436_v42 = vpack.c.bf16 %v3889_v27, %v3882_v26  ;;  %v4406_v27 = vand.u32 4294901760, %v4405_v18 }
0x131f   :  { %v15928_v46 = vadd.f32 %v3261_v44, %v3260_v45  ;;  %v4407_v32 = vsub.f32 %v4405_v18, %v4406_v27 }
0x1321   :  { %3264 = vrot.lane.b32.xlu1 %v15928_v46, %s15493_s6 }
0x1393   :  { %v3265_v47 = vpop.permute.xlu1 %3264 }
0x1394   :  { %v3266_v51 = vsel %vm157_vm1, %v3265_v47, 0 }
0x1395   :  { %v3337_v52 = vand.u32 4294901760, %v3266_v51 }
0x1397   :  { %v3338_v53 = vsub.f32 %v3266_v51, %v3337_v52 }
0x1399   :  { %v3339_v54 = vand.u32 4294901760, %v3338_v53 }
0x139b   :  { %v3340_v55 = vsub.f32 %v3338_v53, %v3339_v54 }
0x139d   :  { %v3341_v56 = vand.u32 4294901760, %v3340_v55 }
0x139f   :  { %13043 = vmatmul.mubr.f32.vlgmr.msra.gmra.mrb[6].mxu0 %v3341_v56 }
0x13a0   :  { %14380 = vmatpush3.bf16.msra.mxu0 %v15646_v41  ;;  %13053 = vmatprep.mubr.msk.f32.mxu0 %vm15494_vm0, %v15495_v25  ;;  %v15340_v41 = vld [vmem:[%s16754_s2] ss:$0 sm:$0xff] }
0x13a1   :  { %14381 = vmatprep.subr.bf16.mxu0 %v15492_v11 }
0x13a4   :  { %14383 = vmatpush3.bf16.msra.mxu0 %v15654_v48  ;;  %v3754_v48 = vld [vmem:[#allocation2 + $0xe] sm:$0x3] }
0x13a5   :  { %14384 = vmatprep.subr.bf16.mxu0 %v15492_v11 }
0x13a7   :  { %13054 = vmatmul.mubr.f32.vlgmr.msra.gmra.mrb[6].mxu0 %v3337_v52 }
0x13a8   :  { %14386 = vmatpush3.bf16.msra.mxu0 %v15656_v49  ;;  %13064 = vmatprep.mubr.msk.f32.mxu0 %vm15494_vm0, %v15495_v25 }
0x13a9   :  { %14387 = vmatprep.subr.bf16.mxu0 %v15492_v11 }
0x13ac   :  { %14389 = vmatpush3.bf16.msra.mxu0 %v15658_v50 }
0x13ad   :  { %14390 = vmatprep.subr.bf16.mxu0 %v15492_v11 }
0x13af   :  { %13065 = vmatmul.mubr.f32.vlgmr.msra.gmra.mrb[6].mxu0 %v3338_v53 }
0x13b0   :  { %14392 = vmatpush3.bf16.msra.mxu0 %v15628_v17  ;;  %13075 = vmatprep.mubr.msk.f32.mxu0 %vm15494_vm0, %v15495_v25 }
0x13b1   :  { %14393 = vmatprep.subr.bf16.mxu0 %v15492_v11 }
0x13b4   :  { %14395 = vmatpush3.bf16.msra.mxu0 %v15634_v22 }
0x13b5   :  { %14396 = vmatprep.subr.bf16.mxu0 %v15492_v11 }
0x13b7   :  { %13076 = vmatmul.mubr.f32.vlgmr.msra.gmra.mrb[6].mxu0 %v3339_v54  ;;  %v16009_v54 = vld [vmem:[%s16759_s7] ss:$0 sm:$0xff] }
0x13b8   :  { %14398 = vmatpush3.bf16.msra.mxu0 %v15641_v29  ;;  %13086 = vmatprep.mubr.msk.f32.mxu0 %vm15494_vm0, %v15495_v25 }
0x13b9   :  { %14399 = vmatprep.subr.bf16.mxu0 %v15492_v11 }
0x13bc   :  { %14401 = vmatpush3.bf16.msra.mxu0 %v15650_v43 }
0x13bd   :  { %14402 = vmatprep.subr.bf16.mxu0 %v15492_v11 }
0x13bf   :  { %13087 = vmatmul.mubr.f32.vlgmr.msra.gmra.mrb[6].mxu0 %v3337_v52 }
0x13c0   :  { %14404 = vmatpush3.bf16.msra.mxu0 %v15628_v17  ;;  %13097 = vmatprep.mubr.msk.f32.mxu0 %vm15494_vm0, %v15495_v25 }
0x13c1   :  { %14405 = vmatprep.subr.bf16.mxu0 %v15492_v11 }
0x13c4   :  { %14407 = vmatpush3.bf16.msra.mxu0 %v15634_v22 }
0x13c5   :  { %14444 = vmatprep.subr.bf16.mxu0 %v15492_v11 }
0x13c7   :  { %13098 = vmatmul.mubr.f32.vlgmr.msra.gmra.mrb[6].mxu0 %v3337_v52 }
0x13c8   :  { %13174 = vmatprep.mubr.msk.f32.mxu0 %vm15494_vm0, %v15495_v25 }
0x149a   :  { %v3749_v29 = vpop.f32.mrb[6].mxu0 }
0x149b   :  { %v14991_v43 = vadd.f32 %v15340_v41, %v3749_v29  ;;  %v13099_v17 = vpop.f32.mrb[7].mxu0  ;;  %v4271_v41 = vld [vmem:[%s16755_s3] sm:$0x3] }
0x149d   :  { %3763 = vrot.lane.b32.xlu0 %v14991_v43, %s15491_s29  ;;  %v3755_v49 = vadd.f32 %v14991_v43, %v3754_v48 }
0x149f   :  { %v11931_v50 = vmul.f32 -1.442695, %v3755_v49 }
0x14a1   :  { %15286 = vpow2.f32 %v11931_v50 }
0x14ab   :  { %v15287_v22 = vpop.eup %15286 }
0x14ac   :  { %v3759_v57 = vadd.f32 1.0, %v15287_v22 }
0x14ae   :  { %15288 = vrcp.f32 %v3759_v57 }
0x14b8   :  { %v15289_v58 = vpop.eup %15288 }
0x14b9   :  { %v3773_v20 = vsub.f32 1.0, %v15289_v58  ;;  %v3779_v28 = vmul.f32 %v15289_v58, %v15928_v46 }
0x150f   :  { %v3764_v59 = vpop.permute.xlu0 %3763 }
0x1510   :  { %v3766_v60 = vmul.f32 %v15289_v58, %v3764_v59 }
0x1512   :  { %3768 = vrot.lane.b32.xlu1 %v3766_v60, %s15491_s29 }
0x1584   :  { %v3769_v61 = vpop.permute.xlu1 %3768 }
0x1585   :  { %v3771_v62 = vadd.f32 %v3769_v61, %v3754_v48  ;;  %v110_v61 = vld [vmem:[#allocation10] sm:$0xff] }
0x1587   :  { %15290 = vtanh.f32 %v3771_v62  ;;  %v111_v62 = vld [vmem:[#allocation10 + $0x8] sm:$0xff] }
0x1588   :  { %v4307_v1 = vand.u32 4294901760, %v111_v62 }
0x158a   :  { %v4391_v4 = vsub.f32 %v111_v62, %v4307_v1 }
0x158c   :  { %v4392_v10 = vand.u32 4294901760, %v4391_v4 }
0x158e   :  { %v4393_v14 = vsub.f32 %v4391_v4, %v4392_v10 }
0x1590   :  { %v4394_v21 = vand.u32 4294901760, %v4393_v14 }
0x1591   :  { %v15291_v63 = vpop.eup %15290 }
0x1592   :  { %3775 = vrot.lane.b32.xlu0 %v15291_v63, %s15493_s6  ;;  %v4304_v63 = vand.u32 4294901760, %v110_v61 }
0x1594   :  { %v16018_v2 = vpack.c.bf16 %v4307_v1, %v4304_v63  ;;  %v4384_v3 = vsub.f32 %v110_v61, %v4304_v63 }
0x1596   :  { %14446 = vmatpush3.bf16.msra.mxu0 %v16018_v2  ;;  %v4385_v9 = vand.u32 4294901760, %v4384_v3  ;;  %v16035_v37 = vpack.c.bf16 %v4391_v4, %v4384_v3 }
0x1597   :  { %14447 = vmatprep.subr.bf16.mxu0 %v15492_v11 }
0x1598   :  { %v4386_v13 = vsub.f32 %v4384_v3, %v4385_v9 }
0x1604   :  { %v3776_v23 = vpop.permute.xlu0 %3775 }
0x1605   :  { %v3778_v30 = vmul.f32 %v3776_v23, %v3773_v20  ;;  %v4387_v20 = vand.u32 4294901760, %v4386_v13 }
0x1607   :  { %v15977_v34 = vadd.f32 %v3779_v28, %v3778_v30  ;;  %v16027_v28 = vpack.c.bf16 %v4394_v21, %v4387_v20 }
0x1609   :  { %3782 = vrot.lane.b32.xlu1 %v15977_v34, %s15493_s6 }
0x167b   :  { %v3783_v44 = vpop.permute.xlu1 %3782 }
0x167c   :  { %v3784_v45 = vsel %vm157_vm1, %v3783_v44, 0 }
0x167d   :  { %v3855_v46 = vand.u32 4294901760, %v3784_v45 }
0x167f   :  { %v3856_v47 = vsub.f32 %v3784_v45, %v3855_v46 }
0x1681   :  { %v3857_v51 = vand.u32 4294901760, %v3856_v47 }
0x1683   :  { %v3858_v52 = vsub.f32 %v3856_v47, %v3857_v51 }
0x1685   :  { %v3859_v53 = vand.u32 4294901760, %v3858_v52 }
0x1687   :  { %13109 = vmatmul.mubr.f32.vlgmr.msra.gmra.mrb[8].mxu1 %v3859_v53 }
0x1688   :  { %14416 = vmatpush3.bf16.msra.mxu1 %v14415_v35  ;;  %13119 = vmatprep.mubr.msk.f32.mxu1 %vm15494_vm0, %v15495_v25  ;;  %v4408_v35 = vand.u32 4294901760, %v4407_v32 }
0x1689   :  { %14417 = vmatprep.subr.bf16.mxu1 %v15492_v11 }
0x168c   :  { %14419 = vmatpush3.bf16.msra.mxu1 %v14418_v38  ;;  %v16039_v38 = vpack.c.bf16 %v4392_v10, %v4385_v9 }
0x168d   :  { %14420 = vmatprep.subr.bf16.mxu1 %v15492_v11 }
0x168f   :  { %13120 = vmatmul.mubr.f32.vlgmr.msra.gmra.mrb[8].mxu1 %v3855_v46 }
0x1690   :  { %14422 = vmatpush3.bf16.msra.mxu1 %v14421_v39  ;;  %13130 = vmatprep.mubr.msk.f32.mxu1 %vm15494_vm0, %v15495_v25 }
0x1691   :  { %14423 = vmatprep.subr.bf16.mxu1 %v15492_v11 }
0x1694   :  { %14425 = vmatpush3.bf16.msra.mxu1 %v14424_v40 }
0x1695   :  { %14426 = vmatprep.subr.bf16.mxu1 %v15492_v11 }
0x1697   :  { %13131 = vmatmul.mubr.f32.vlgmr.msra.gmra.mrb[8].mxu1 %v3856_v47 }
0x1698   :  { %14428 = vmatpush3.bf16.msra.mxu1 %v15971_v5  ;;  %13141 = vmatprep.mubr.msk.f32.mxu1 %vm15494_vm0, %v15495_v25 }
0x1699   :  { %14429 = vmatprep.subr.bf16.mxu1 %v15492_v11 }
0x169c   :  { %14431 = vmatpush3.bf16.msra.mxu1 %v14412_v15 }
0x169d   :  { %14432 = vmatprep.subr.bf16.mxu1 %v15492_v11 }
0x169f   :  { %13142 = vmatmul.mubr.f32.vlgmr.msra.gmra.mrb[8].mxu1 %v3857_v51 }
0x16a0   :  { %14434 = vmatpush3.bf16.msra.mxu1 %v14433_v0  ;;  %13152 = vmatprep.mubr.msk.f32.mxu1 %vm15494_vm0, %v15495_v25 }
0x16a1   :  { %14435 = vmatprep.subr.bf16.mxu1 %v15492_v11 }
0x16a4   :  { %14437 = vmatpush3.bf16.msra.mxu1 %v14436_v42 }
0x16a5   :  { %14438 = vmatprep.subr.bf16.mxu1 %v15492_v11 }
0x16a7   :  { %13153 = vmatmul.mubr.f32.vlgmr.msra.gmra.mrb[8].mxu1 %v3855_v46 }
0x16a8   :  { %14440 = vmatpush3.bf16.msra.mxu1 %v15971_v5  ;;  %13163 = vmatprep.mubr.msk.f32.mxu1 %vm15494_vm0, %v15495_v25  ;;  %v112_v5 = vld [vmem:[#allocation10 + $0x10] sm:$0xff] }
0x16a9   :  { %14441 = vmatprep.subr.bf16.mxu1 %v15492_v11  ;;  %v4310_v7 = vand.u32 4294901760, %v112_v5 }
0x16ab   :  { %v16022_v12 = vpack.c.bf16 %v4313_v8, %v4310_v7 }
0x16ac   :  { %14443 = vmatpush3.bf16.msra.mxu1 %v14412_v15  ;;  %v4398_v15 = vsub.f32 %v112_v5, %v4310_v7 }
0x16ad   :  { %14480 = vmatprep.subr.bf16.mxu1 %v15492_v11  ;;  %14449 = vmatpush3.bf16.msra.mxu0 %v16022_v12 }
0x16ae   :  { %v4399_v23 = vand.u32 4294901760, %v4398_v15  ;;  %14450 = vmatprep.subr.bf16.mxu0 %v15492_v11 }
0x16af   :  { %13164 = vmatmul.mubr.f32.vlgmr.msra.gmra.mrb[8].mxu1 %v3855_v46 }
0x16b0   :  { %13240 = vmatprep.mubr.msk.f32.mxu1 %vm15494_vm0, %v15495_v25  ;;  %v4400_v30 = vsub.f32 %v4398_v15, %v4399_v23  ;;  %v16041_v39 = vpack.c.bf16 %v4406_v27, %v4399_v23 }
0x16b2   :  { %v4401_v33 = vand.u32 4294901760, %v4400_v30 }
0x16b4   :  { %v16033_v36 = vpack.c.bf16 %v4408_v35, %v4401_v33 }
0x1782   :  { %v4267_v55 = vpop.f32.mrb[8].mxu1 }
0x1783   :  { %v14992_v56 = vadd.f32 %v16009_v54, %v4267_v55  ;;  %v13165_v29 = vpop.f32.mrb[9].mxu1 }
0x1784   :  { %v103_v29 = vld [vmem:[#allocation7 + $0x8] sm:$0xff] }
0x1785   :  { %4280 = vrot.lane.b32.xlu0 %v14992_v56, %s15491_s29  ;;  %v4272_v43 = vadd.f32 %v14992_v56, %v4271_v41  ;;  %v102_v56 = vld [vmem:[#allocation7] sm:$0xff] }
0x1787   :  { %v11932_v17 = vmul.f32 -1.442695, %v4272_v43  ;;  %v4804_v43 = vand.u32 4294901760, %v103_v29 }
0x1789   :  { %15292 = vpow2.f32 %v11932_v17 }
0x1793   :  { %v15293_v48 = vpop.eup %15292 }
0x1794   :  { %v4276_v49 = vadd.f32 1.0, %v15293_v48 }
0x1796   :  { %15294 = vrcp.f32 %v4276_v49  ;;  %v4888_v49 = vsub.f32 %v103_v29, %v4804_v43 }
0x17a0   :  { %v15295_v50 = vpop.eup %15294 }
0x17a1   :  { %v4290_v16 = vsub.f32 1.0, %v15295_v50  ;;  %v4296_v24 = vmul.f32 %v15295_v50, %v15977_v34  ;;  %v16037_v34 = vpack.c.bf16 %v4405_v18, %v4398_v15 }
0x17f7   :  { %v4281_v22 = vpop.permute.xlu0 %4280 }
0x17f8   :  { %v4283_v57 = vmul.f32 %v15295_v50, %v4281_v22  ;;  %v104_v50 = vld [vmem:[#allocation7 + $0x10] sm:$0xff]  ;;  %v105_v22 = vld [vmem:[#allocation7 + $0x18] sm:$0xff] }
0x17fa   :  { %4285 = vrot.lane.b32.xlu1 %v4283_v57, %s15491_s29  ;;  %v4807_v57 = vand.u32 4294901760, %v104_v50 }
0x17fc   :  { %v4895_v1 = vsub.f32 %v104_v50, %v4807_v57 }
0x17fe   :  { %v4896_v6 = vand.u32 4294901760, %v4895_v1 }
0x1800   :  { %v4897_v10 = vsub.f32 %v4895_v1, %v4896_v6 }
0x1802   :  { %v4898_v15 = vand.u32 4294901760, %v4897_v10 }
0x186c   :  { %v4286_v58 = vpop.permute.xlu1 %4285 }
0x186d   :  { %v4288_v59 = vadd.f32 %v4286_v58, %v4271_v41  ;;  %v4801_v41 = vand.u32 4294901760, %v102_v56  ;;  %v4810_v58 = vand.u32 4294901760, %v105_v22 }
0x186f   :  { %15296 = vtanh.f32 %v4288_v59  ;;  %v16085_v17 = vpack.c.bf16 %v4804_v43, %v4801_v41  ;;  %v4881_v48 = vsub.f32 %v102_v56, %v4801_v41  ;;  %v16089_v61 = vpack.c.bf16 %v4810_v58, %v4807_v57 }
0x1870   :  { %v4902_v3 = vsub.f32 %v105_v22, %v4810_v58 }
0x1871   :  { %14482 = vmatpush3.bf16.msra.mxu1 %v16085_v17  ;;  %v4882_v59 = vand.u32 4294901760, %v4881_v48 }
0x1872   :  { %14483 = vmatprep.subr.bf16.mxu1 %v15492_v11  ;;  %v4903_v7 = vand.u32 4294901760, %v4902_v3  ;;  %v16104_v20 = vpack.c.bf16 %v4902_v3, %v4895_v1 }
0x1873   :  { %v4883_v62 = vsub.f32 %v4881_v48, %v4882_v59 }
0x1874   :  { %v4904_v13 = vsub.f32 %v4902_v3, %v4903_v7  ;;  %v16108_v23 = vpack.c.bf16 %v4903_v7, %v4896_v6 }
0x1875   :  { %14485 = vmatpush3.bf16.msra.mxu1 %v16089_v61  ;;  %v4884_v4 = vand.u32 4294901760, %v4883_v62 }
0x1876   :  { %14486 = vmatprep.subr.bf16.mxu1 %v15492_v11 }
0x1879   :  { %v15297_v60 = vpop.eup %15296 }
0x187a   :  { %4292 = vrot.lane.b32.xlu0 %v15297_v60, %s15493_s6  ;;  %v4889_v60 = vand.u32 4294901760, %v4888_v49 }
0x187c   :  { %v4890_v63 = vsub.f32 %v4888_v49, %v4889_v60  ;;  %v16106_v21 = vpack.c.bf16 %v4889_v60, %v4882_v59 }
0x187e   :  { %v4891_v5 = vand.u32 4294901760, %v4890_v63 }
0x1880   :  { %v16093_v9 = vpack.c.bf16 %v4891_v5, %v4884_v4 }
0x18ec   :  { %v4293_v19 = vpop.permute.xlu0 %4292 }
0x18ed   :  { %v4295_v26 = vmul.f32 %v4293_v19, %v4290_v16  ;;  %v4905_v16 = vand.u32 4294901760, %v4904_v13  ;;  %v16102_v19 = vpack.c.bf16 %v4888_v49, %v4881_v48 }
0x18ef   :  { %v16029_v31 = vadd.f32 %v4296_v24, %v4295_v26  ;;  %v16098_v18 = vpack.c.bf16 %v4905_v16, %v4898_v15 }
0x18f1   :  { %4299 = vrot.lane.b32.xlu1 %v16029_v31, %s15493_s6 }
0x1963   :  { %v4300_v40 = vpop.permute.xlu1 %4299 }
0x1964   :  { %v4301_v0 = vsel %vm157_vm1, %v4300_v40, 0 }
0x1965   :  { %v4372_v42 = vand.u32 4294901760, %v4301_v0 }
0x1967   :  { %v4373_v44 = vsub.f32 %v4301_v0, %v4372_v42 }
0x1969   :  { %v4374_v45 = vand.u32 4294901760, %v4373_v44 }
0x196b   :  { %v4375_v46 = vsub.f32 %v4373_v44, %v4374_v45 }
0x196d   :  { %v4376_v47 = vand.u32 4294901760, %v4375_v46 }
0x196f   :  { %13175 = vmatmul.mubr.f32.vlgmr.msra.gmra.mrb[8].mxu0 %v4376_v47 }
0x1970   :  { %14452 = vmatpush3.bf16.msra.mxu0 %v16027_v28  ;;  %13185 = vmatprep.mubr.msk.f32.mxu0 %vm15494_vm0, %v15495_v25 }
0x1971   :  { %14453 = vmatprep.subr.bf16.mxu0 %v15492_v11 }
0x1974   :  { %14455 = vmatpush3.bf16.msra.mxu0 %v16033_v36 }
0x1975   :  { %14456 = vmatprep.subr.bf16.mxu0 %v15492_v11 }
0x1977   :  { %13186 = vmatmul.mubr.f32.vlgmr.msra.gmra.mrb[8].mxu0 %v4372_v42 }
0x1978   :  { %14458 = vmatpush3.bf16.msra.mxu0 %v16035_v37  ;;  %13196 = vmatprep.mubr.msk.f32.mxu0 %vm15494_vm0, %v15495_v25 }
0x1979   :  { %14459 = vmatprep.subr.bf16.mxu0 %v15492_v11 }
0x197c   :  { %14461 = vmatpush3.bf16.msra.mxu0 %v16037_v34 }
0x197d   :  { %14462 = vmatprep.subr.bf16.mxu0 %v15492_v11 }
0x197f   :  { %13197 = vmatmul.mubr.f32.vlgmr.msra.gmra.mrb[8].mxu0 %v4373_v44 }
0x1980   :  { %14464 = vmatpush3.bf16.msra.mxu0 %v16018_v2  ;;  %13207 = vmatprep.mubr.msk.f32.mxu0 %vm15494_vm0, %v15495_v25 }
0x1981   :  { %14465 = vmatprep.subr.bf16.mxu0 %v15492_v11 }
0x1984   :  { %14467 = vmatpush3.bf16.msra.mxu0 %v16022_v12 }
0x1985   :  { %14468 = vmatprep.subr.bf16.mxu0 %v15492_v11 }
0x1987   :  { %13208 = vmatmul.mubr.f32.vlgmr.msra.gmra.mrb[8].mxu0 %v4374_v45 }
0x1988   :  { %14470 = vmatpush3.bf16.msra.mxu0 %v16039_v38  ;;  %13218 = vmatprep.mubr.msk.f32.mxu0 %vm15494_vm0, %v15495_v25 }
0x1989   :  { %14471 = vmatprep.subr.bf16.mxu0 %v15492_v11 }
0x198c   :  { %14473 = vmatpush3.bf16.msra.mxu0 %v16041_v39 }
0x198d   :  { %14474 = vmatprep.subr.bf16.mxu0 %v15492_v11 }
0x198f   :  { %13219 = vmatmul.mubr.f32.vlgmr.msra.gmra.mrb[8].mxu0 %v4372_v42 }
0x1990   :  { %14476 = vmatpush3.bf16.msra.mxu0 %v16018_v2  ;;  %13229 = vmatprep.mubr.msk.f32.mxu0 %vm15494_vm0, %v15495_v25 }
0x1991   :  { %14477 = vmatprep.subr.bf16.mxu0 %v15492_v11 }
0x1994   :  { %14479 = vmatpush3.bf16.msra.mxu0 %v16022_v12 }
0x1995   :  { %14516 = vmatprep.subr.bf16.mxu0 %v15492_v11 }
0x1997   :  { %13230 = vmatmul.mubr.f32.vlgmr.msra.gmra.mrb[8].mxu0 %v4372_v42 }
0x1998   :  { %14518 = vmatpush3.bf16.msra.mxu0 %v16018_v2  ;;  %13306 = vmatprep.mubr.msk.f32.mxu0 %vm15494_vm0, %v15495_v25 }
0x1999   :  { %14519 = vmatprep.subr.bf16.mxu0 %v15492_v11 }
0x199c   :  { %14521 = vmatpush3.bf16.msra.mxu0 %v16022_v12 }
0x199d   :  { %14522 = vmatprep.subr.bf16.mxu0 %v15492_v11 }
0x1a6a   :  { %v4784_v51 = vpop.f32.mrb[8].mxu0 }
0x1a6b   :  { %v16081_v52 = vadd.f32 %v16009_v54, %v4784_v51  ;;  %v13231_v53 = vpop.f32.mrb[9].mxu0 }
0x1a6d   :  { %v4789_v55 = vsel %vm4788_vm2, %v16081_v52, -inf }
0x1a6e   :  { %4790 = vmax.xlane.f32.xlu0 %v4789_v55 }
0x1afb   :  { %v4791_v8 = vpop.xlane.xlu0 %4790 }
0x1afc   :  { %vm4792_vm3 = vcmp.eq.f32.partialorder %v16081_v52, %v4791_v8 }
0x1afd   :  { %v11933_v14 = vsel %vm4792_vm3, 1.0, %v15495_v25 }
0x1afe   :  { %4796 = vrot.lane.b32.xlu1 %v11933_v14, %s15487_s5 }
0x1b02   :  { %5293 = vrot.lane.b32.xlu1 %v16081_v52, %s15491_s29 }
0x1b70   :  { %v4797_v24 = vpop.permute.xlu1 %4796 }
0x1b71   :  { %v4798_v26 = vsel %vm157_vm1, %v4797_v24, 0 }
0x1b72   :  { %v4869_v27 = vand.u32 4294901760, %v4798_v26 }
0x1b74   :  { %v4870_v30 = vsub.f32 %v4798_v26, %v4869_v27  ;;  %v5294_v51 = vpop.permute.xlu1 %5293 }
0x1b76   :  { %v4871_v32 = vand.u32 4294901760, %v4870_v30 }
0x1b78   :  { %v4872_v33 = vsub.f32 %v4870_v30, %v4871_v32 }
0x1b7a   :  { %v4873_v35 = vand.u32 4294901760, %v4872_v33 }
0x1b7c   :  { %13241 = vmatmul.mubr.f32.vlgmr.msra.gmra.mrb[10].mxu1 %v4873_v35 }
0x1b7d   :  { %14488 = vmatpush3.bf16.msra.mxu1 %v16093_v9  ;;  %13251 = vmatprep.mubr.msk.f32.mxu1 %vm15494_vm0, %v15495_v25 }
0x1b7e   :  { %14489 = vmatprep.subr.bf16.mxu1 %v15492_v11 }
0x1b81   :  { %14491 = vmatpush3.bf16.msra.mxu1 %v16098_v18 }
0x1b82   :  { %14492 = vmatprep.subr.bf16.mxu1 %v15492_v11 }
0x1b84   :  { %13252 = vmatmul.mubr.f32.vlgmr.msra.gmra.mrb[10].mxu1 %v4869_v27 }
0x1b85   :  { %14494 = vmatpush3.bf16.msra.mxu1 %v16102_v19  ;;  %13262 = vmatprep.mubr.msk.f32.mxu1 %vm15494_vm0, %v15495_v25 }
0x1b86   :  { %14495 = vmatprep.subr.bf16.mxu1 %v15492_v11 }
0x1b89   :  { %14497 = vmatpush3.bf16.msra.mxu1 %v16104_v20 }
0x1b8a   :  { %14498 = vmatprep.subr.bf16.mxu1 %v15492_v11 }
0x1b8c   :  { %13263 = vmatmul.mubr.f32.vlgmr.msra.gmra.mrb[10].mxu1 %v4870_v30 }
0x1b8d   :  { %14500 = vmatpush3.bf16.msra.mxu1 %v16085_v17  ;;  %13273 = vmatprep.mubr.msk.f32.mxu1 %vm15494_vm0, %v15495_v25 }
0x1b8e   :  { %14501 = vmatprep.subr.bf16.mxu1 %v15492_v11 }
0x1b91   :  { %14503 = vmatpush3.bf16.msra.mxu1 %v16089_v61 }
0x1b92   :  { %14504 = vmatprep.subr.bf16.mxu1 %v15492_v11 }
0x1b94   :  { %13274 = vmatmul.mubr.f32.vlgmr.msra.gmra.mrb[10].mxu1 %v4871_v32 }
0x1b95   :  { %14506 = vmatpush3.bf16.msra.mxu1 %v16106_v21  ;;  %13284 = vmatprep.mubr.msk.f32.mxu1 %vm15494_vm0, %v15495_v25 }
0x1b96   :  { %14507 = vmatprep.subr.bf16.mxu1 %v15492_v11 }
0x1b99   :  { %14509 = vmatpush3.bf16.msra.mxu1 %v16108_v23 }
0x1b9a   :  { %14510 = vmatprep.subr.bf16.mxu1 %v15492_v11 }
0x1b9c   :  { %13285 = vmatmul.mubr.f32.vlgmr.msra.gmra.mrb[10].mxu1 %v4869_v27 }
0x1b9d   :  { %14512 = vmatpush3.bf16.msra.mxu1 %v16085_v17  ;;  %13295 = vmatprep.mubr.msk.f32.mxu1 %vm15494_vm0, %v15495_v25 }
0x1b9e   :  { %14513 = vmatprep.subr.bf16.mxu1 %v15492_v11 }
0x1ba1   :  { %14515 = vmatpush3.bf16.msra.mxu1 %v16089_v61 }
0x1ba2   :  { %14552 = vmatprep.subr.bf16.mxu1 %v15492_v11 }
0x1ba4   :  { %13296 = vmatmul.mubr.f32.vlgmr.msra.gmra.mrb[10].mxu1 %v4869_v27 }
0x1ba5   :  { %14554 = vmatpush3.bf16.msra.mxu1 %v16085_v17  ;;  %13372 = vmatprep.mubr.msk.f32.mxu1 %vm15494_vm0, %v15495_v25 }
0x1ba6   :  { %14555 = vmatprep.subr.bf16.mxu1 %v15492_v11 }
0x1ba9   :  { %14557 = vmatpush3.bf16.msra.mxu1 %v16089_v61 }
0x1baa   :  { %14558 = vmatprep.subr.bf16.mxu1 %v15492_v11 }
0x1c77   :  { %v5281_v40 = vpop.f32.mrb[10].mxu1 }
0x1c78   :  { %v5285_v0 = vadd.f32 %v16081_v52, %v5281_v40  ;;  %v13297_v42 = vpop.f32.mrb[11].mxu1 }
0x1c7a   :  { %v11934_v44 = vmul.f32 -1.442695, %v5285_v0 }
0x1c7c   :  { %15298 = vpow2.f32 %v11934_v44 }
0x1c86   :  { %v15299_v45 = vpop.eup %15298 }
0x1c87   :  { %v5289_v46 = vadd.f32 1.0, %v15299_v45 }
0x1c89   :  { %15300 = vrcp.f32 %v5289_v46 }
0x1c93   :  { %v15301_v47 = vpop.eup %15300 }
0x1c94   :  { %v5296_v53 = vmul.f32 %v15301_v47, %v5294_v51  ;;  %v5303_v41 = vsub.f32 1.0, %v15301_v47  ;;  %v5309_v48 = vmul.f32 %v15301_v47, %v16029_v31 }
0x1c96   :  { %5298 = vrot.lane.b32.xlu1 %v5296_v53, %s15491_s29 }
0x1d08   :  { %v5299_v55 = vpop.permute.xlu1 %5298 }
0x1d09   :  { %v5301_v56 = vadd.f32 %v5299_v55, %v5281_v40 }
0x1d0b   :  { %15302 = vtanh.f32 %v5301_v56 }
0x1d15   :  { %v15303_v29 = vpop.eup %15302 }
0x1d16   :  { %5305 = vrot.lane.b32.xlu1 %v15303_v29, %s15493_s6 }
0x1d88   :  { %v5306_v43 = vpop.permute.xlu1 %5305 }
0x1d89   :  { %v5308_v49 = vmul.f32 %v5306_v43, %v5303_v41 }
0x1d8b   :  { %v16151_v50 = vadd.f32 %v5309_v48, %v5308_v49 }
0x1d8d   :  { %5312 = vrot.lane.b32.xlu1 %v16151_v50, %s15493_s6 }
0x1dff   :  { %v5313_v22 = vpop.permute.xlu1 %5312 }
0x1e00   :  { %v5314_v57 = vsel %vm157_vm1, %v5313_v22, 0 }
0x1e01   :  { %v5385_v58 = vand.u32 4294901760, %v5314_v57 }
0x1e03   :  { %v5386_v59 = vsub.f32 %v5314_v57, %v5385_v58 }
0x1e05   :  { %v5387_v60 = vand.u32 4294901760, %v5386_v59 }
0x1e07   :  { %v5388_v62 = vsub.f32 %v5386_v59, %v5387_v60 }
0x1e09   :  { %v5389_v63 = vand.u32 4294901760, %v5388_v62 }
0x1e0b   :  { %13307 = vmatmul.mubr.f32.vlgmr.msra.gmra.mrb[10].mxu0 %v5389_v63 }
0x1e0c   :  { %14524 = vmatpush3.bf16.msra.mxu0 %v16027_v28  ;;  %13317 = vmatprep.mubr.msk.f32.mxu0 %vm15494_vm0, %v15495_v25 }
0x1e0d   :  { %14525 = vmatprep.subr.bf16.mxu0 %v15492_v11 }
0x1e10   :  { %14527 = vmatpush3.bf16.msra.mxu0 %v16033_v36 }
0x1e11   :  { %14528 = vmatprep.subr.bf16.mxu0 %v15492_v11 }
0x1e13   :  { %13318 = vmatmul.mubr.f32.vlgmr.msra.gmra.mrb[10].mxu0 %v5385_v58 }
0x1e14   :  { %14530 = vmatpush3.bf16.msra.mxu0 %v16035_v37  ;;  %13328 = vmatprep.mubr.msk.f32.mxu0 %vm15494_vm0, %v15495_v25 }
0x1e15   :  { %14531 = vmatprep.subr.bf16.mxu0 %v15492_v11 }
0x1e18   :  { %14533 = vmatpush3.bf16.msra.mxu0 %v16037_v34 }
0x1e19   :  { %14534 = vmatprep.subr.bf16.mxu0 %v15492_v11 }
0x1e1b   :  { %13329 = vmatmul.mubr.f32.vlgmr.msra.gmra.mrb[10].mxu0 %v5386_v59 }
0x1e1c   :  { %14536 = vmatpush3.bf16.msra.mxu0 %v16018_v2  ;;  %13339 = vmatprep.mubr.msk.f32.mxu0 %vm15494_vm0, %v15495_v25 }
0x1e1d   :  { %14537 = vmatprep.subr.bf16.mxu0 %v15492_v11 }
0x1e20   :  { %14539 = vmatpush3.bf16.msra.mxu0 %v16022_v12 }
0x1e21   :  { %14540 = vmatprep.subr.bf16.mxu0 %v15492_v11 }
0x1e23   :  { %13340 = vmatmul.mubr.f32.vlgmr.msra.gmra.mrb[10].mxu0 %v5387_v60 }
0x1e24   :  { %14542 = vmatpush3.bf16.msra.mxu0 %v16039_v38  ;;  %13350 = vmatprep.mubr.msk.f32.mxu0 %vm15494_vm0, %v15495_v25 }
0x1e25   :  { %14543 = vmatprep.subr.bf16.mxu0 %v15492_v11 }
0x1e28   :  { %14545 = vmatpush3.bf16.msra.mxu0 %v16041_v39 }
0x1e29   :  { %14546 = vmatprep.subr.bf16.mxu0 %v15492_v11 }
0x1e2b   :  { %13351 = vmatmul.mubr.f32.vlgmr.msra.gmra.mrb[10].mxu0 %v5385_v58 }
0x1e2c   :  { %14548 = vmatpush3.bf16.msra.mxu0 %v16018_v2  ;;  %13361 = vmatprep.mubr.msk.f32.mxu0 %vm15494_vm0, %v15495_v25 }
0x1e2d   :  { %14549 = vmatprep.subr.bf16.mxu0 %v15492_v11 }
0x1e30   :  { %14551 = vmatpush3.bf16.msra.mxu0 %v16022_v12 }
0x1e31   :  { %14588 = vmatprep.subr.bf16.mxu0 %v15492_v11 }
0x1e33   :  { %13362 = vmatmul.mubr.f32.vlgmr.msra.gmra.mrb[10].mxu0 %v5385_v58 }
0x1e34   :  { %14590 = vmatpush3.bf16.msra.mxu0 %v16018_v2  ;;  %13438 = vmatprep.mubr.msk.f32.mxu0 %vm15494_vm0, %v15495_v25 }
0x1e35   :  { %14591 = vmatprep.subr.bf16.mxu0 %v15492_v11 }
0x1e38   :  { %14593 = vmatpush3.bf16.msra.mxu0 %v16022_v12 }
0x1e39   :  { %14594 = vmatprep.subr.bf16.mxu0 %v15492_v11 }
0x1f06   :  { %v5797_v31 = vpop.f32.mrb[10].mxu0 }
0x1f07   :  { %v14994_v1 = vadd.f32 %v16009_v54, %v5797_v31  ;;  %v13363_v3 = vpop.f32.mrb[11].mxu0 }
0x1f09   :  { %v5801_v4 = vsel %vm4788_vm2, %v14994_v1, -inf }
0x1f0a   :  { %5802 = vmax.xlane.f32.xlu1 %v5801_v4 }
0x1f97   :  { %v5803_v5 = vpop.xlane.xlu1 %5802 }
0x1f98   :  { %vm5804_vm4 = vcmp.eq.f32.partialorder %v14994_v1, %v5803_v5 }
0x1f99   :  { %v11935_v6 = vsel %vm5804_vm4, 1.0, %v15495_v25 }
0x1f9a   :  { %5808 = vrot.lane.b32.xlu0 %v11935_v6, %s15487_s5 }
0x1f9e   :  { %6305 = vrot.lane.b32.xlu0 %v14994_v1, %s15491_s29 }
0x200c   :  { %v5809_v7 = vpop.permute.xlu0 %5808 }
0x200d   :  { %v5810_v8 = vsel %vm157_vm1, %v5809_v7, 0 }
0x200e   :  { %v5881_v10 = vand.u32 4294901760, %v5810_v8 }
0x2010   :  { %v5882_v13 = vsub.f32 %v5810_v8, %v5881_v10  ;;  %v16234_v40 = vpop.permute.xlu0 %6305 }
0x2012   :  { %v5883_v14 = vand.u32 4294901760, %v5882_v13 }
0x2014   :  { %v5884_v15 = vsub.f32 %v5882_v13, %v5883_v14 }
0x2016   :  { %v5885_v16 = vand.u32 4294901760, %v5884_v15 }
0x2018   :  { %13373 = vmatmul.mubr.f32.vlgmr.msra.gmra.mrb[12].mxu1 %v5885_v16 }
0x2019   :  { %14560 = vmatpush3.bf16.msra.mxu1 %v16093_v9  ;;  %13383 = vmatprep.mubr.msk.f32.mxu1 %vm15494_vm0, %v15495_v25 }
0x201a   :  { %14561 = vmatprep.subr.bf16.mxu1 %v15492_v11 }
0x201d   :  { %14563 = vmatpush3.bf16.msra.mxu1 %v16098_v18 }
0x201e   :  { %14564 = vmatprep.subr.bf16.mxu1 %v15492_v11 }
0x2020   :  { %13384 = vmatmul.mubr.f32.vlgmr.msra.gmra.mrb[12].mxu1 %v5881_v10 }
0x2021   :  { %14566 = vmatpush3.bf16.msra.mxu1 %v16102_v19  ;;  %13394 = vmatprep.mubr.msk.f32.mxu1 %vm15494_vm0, %v15495_v25 }
0x2022   :  { %14567 = vmatprep.subr.bf16.mxu1 %v15492_v11 }
0x2025   :  { %14569 = vmatpush3.bf16.msra.mxu1 %v16104_v20 }
0x2026   :  { %14570 = vmatprep.subr.bf16.mxu1 %v15492_v11 }
0x2028   :  { %13395 = vmatmul.mubr.f32.vlgmr.msra.gmra.mrb[12].mxu1 %v5882_v13 }
0x2029   :  { %14572 = vmatpush3.bf16.msra.mxu1 %v16085_v17  ;;  %13405 = vmatprep.mubr.msk.f32.mxu1 %vm15494_vm0, %v15495_v25 }
0x202a   :  { %14573 = vmatprep.subr.bf16.mxu1 %v15492_v11 }
0x202d   :  { %14575 = vmatpush3.bf16.msra.mxu1 %v16089_v61 }
0x202e   :  { %14576 = vmatprep.subr.bf16.mxu1 %v15492_v11 }
0x2030   :  { %13406 = vmatmul.mubr.f32.vlgmr.msra.gmra.mrb[12].mxu1 %v5883_v14 }
0x2031   :  { %14578 = vmatpush3.bf16.msra.mxu1 %v16106_v21  ;;  %13416 = vmatprep.mubr.msk.f32.mxu1 %vm15494_vm0, %v15495_v25 }
0x2032   :  { %14579 = vmatprep.subr.bf16.mxu1 %v15492_v11 }
0x2035   :  { %14581 = vmatpush3.bf16.msra.mxu1 %v16108_v23 }
0x2036   :  { %14582 = vmatprep.subr.bf16.mxu1 %v15492_v11 }
0x2038   :  { %13417 = vmatmul.mubr.f32.vlgmr.msra.gmra.mrb[12].mxu1 %v5881_v10 }
0x2039   :  { %14584 = vmatpush3.bf16.msra.mxu1 %v16085_v17  ;;  %13427 = vmatprep.mubr.msk.f32.mxu1 %vm15494_vm0, %v15495_v25 }
0x203a   :  { %14585 = vmatprep.subr.bf16.mxu1 %v15492_v11 }
0x203d   :  { %14587 = vmatpush3.bf16.msra.mxu1 %v16089_v61 }
0x203e   :  { %14624 = vmatprep.subr.bf16.mxu1 %v15492_v11 }
0x2040   :  { %13428 = vmatmul.mubr.f32.vlgmr.msra.gmra.mrb[12].mxu1 %v5881_v10 }
0x2041   :  { %14626 = vmatpush3.bf16.msra.mxu1 %v16085_v17  ;;  %13504 = vmatprep.mubr.msk.f32.mxu1 %vm15494_vm0, %v15495_v25 }
0x2042   :  { %14627 = vmatprep.subr.bf16.mxu1 %v15492_v11 }
0x2045   :  { %14629 = vmatpush3.bf16.msra.mxu1 %v16089_v61 }
0x2046   :  { %14630 = vmatprep.subr.bf16.mxu1 %v15492_v11 }
0x2113   :  { %v6293_v24 = vpop.f32.mrb[12].mxu1 }
0x2114   :  { %v6297_v26 = vadd.f32 %v14994_v1, %v6293_v24  ;;  %v13429_v27 = vpop.f32.mrb[13].mxu1 }
0x2116   :  { %v11936_v30 = vmul.f32 -1.442695, %v6297_v26 }
0x2118   :  { %15304 = vpow2.f32 %v11936_v30 }
0x2122   :  { %v15305_v32 = vpop.eup %15304 }
0x2123   :  { %v6301_v33 = vadd.f32 1.0, %v15305_v32 }
0x2125   :  { %15306 = vrcp.f32 %v6301_v33 }
0x212f   :  { %v15307_v35 = vpop.eup %15306 }
0x2130   :  { %v6308_v0 = vmul.f32 %v15307_v35, %v16234_v40  ;;  %v6315_v46 = vsub.f32 1.0, %v15307_v35  ;;  %v6321_v51 = vmul.f32 %v15307_v35, %v16151_v50 }
0x2132   :  { %6310 = vrot.lane.b32.xlu1 %v6308_v0, %s15491_s29 }
0x21a4   :  { %v6311_v42 = vpop.permute.xlu1 %6310 }
0x21a5   :  { %v6313_v44 = vadd.f32 %v6311_v42, %v6293_v24 }
0x21a7   :  { %15308 = vtanh.f32 %v6313_v44 }
0x21b1   :  { %v15309_v45 = vpop.eup %15308 }
0x21b2   :  { %6317 = vrot.lane.b32.xlu0 %v15309_v45, %s15493_s6 }
0x2224   :  { %v6318_v47 = vpop.permute.xlu0 %6317 }
0x2225   :  { %v6320_v53 = vmul.f32 %v6318_v47, %v6315_v46 }
0x2227   :  { %v16240_v55 = vadd.f32 %v6321_v51, %v6320_v53 }
0x2229   :  { %6324 = vrot.lane.b32.xlu0 %v16240_v55, %s15493_s6 }
0x229b   :  { %v6325_v56 = vpop.permute.xlu0 %6324 }
0x229c   :  { %v6326_v29 = vsel %vm157_vm1, %v6325_v56, 0 }
0x229d   :  { %v6397_v41 = vand.u32 4294901760, %v6326_v29 }
0x229f   :  { %v6398_v43 = vsub.f32 %v6326_v29, %v6397_v41 }
0x22a1   :  { %v6399_v48 = vand.u32 4294901760, %v6398_v43 }
0x22a3   :  { %v6400_v49 = vsub.f32 %v6398_v43, %v6399_v48 }
0x22a5   :  { %v6401_v22 = vand.u32 4294901760, %v6400_v49 }
0x22a7   :  { %13439 = vmatmul.mubr.f32.vlgmr.msra.gmra.mrb[12].mxu0 %v6401_v22 }
0x22a8   :  { %14596 = vmatpush3.bf16.msra.mxu0 %v16027_v28  ;;  %13449 = vmatprep.mubr.msk.f32.mxu0 %vm15494_vm0, %v15495_v25 }
0x22a9   :  { %14597 = vmatprep.subr.bf16.mxu0 %v15492_v11 }
0x22ac   :  { %14599 = vmatpush3.bf16.msra.mxu0 %v16033_v36 }
0x22ad   :  { %14600 = vmatprep.subr.bf16.mxu0 %v15492_v11 }
0x22af   :  { %13450 = vmatmul.mubr.f32.vlgmr.msra.gmra.mrb[12].mxu0 %v6397_v41 }
0x22b0   :  { %14602 = vmatpush3.bf16.msra.mxu0 %v16035_v37  ;;  %13460 = vmatprep.mubr.msk.f32.mxu0 %vm15494_vm0, %v15495_v25 }
0x22b1   :  { %14603 = vmatprep.subr.bf16.mxu0 %v15492_v11 }
0x22b4   :  { %14605 = vmatpush3.bf16.msra.mxu0 %v16037_v34 }
0x22b5   :  { %14606 = vmatprep.subr.bf16.mxu0 %v15492_v11 }
0x22b7   :  { %13461 = vmatmul.mubr.f32.vlgmr.msra.gmra.mrb[12].mxu0 %v6398_v43 }
0x22b8   :  { %14608 = vmatpush3.bf16.msra.mxu0 %v16018_v2  ;;  %13471 = vmatprep.mubr.msk.f32.mxu0 %vm15494_vm0, %v15495_v25 }
0x22b9   :  { %14609 = vmatprep.subr.bf16.mxu0 %v15492_v11 }
0x22bc   :  { %14611 = vmatpush3.bf16.msra.mxu0 %v16022_v12 }
0x22bd   :  { %14612 = vmatprep.subr.bf16.mxu0 %v15492_v11 }
0x22bf   :  { %13472 = vmatmul.mubr.f32.vlgmr.msra.gmra.mrb[12].mxu0 %v6399_v48 }
0x22c0   :  { %14614 = vmatpush3.bf16.msra.mxu0 %v16039_v38  ;;  %13482 = vmatprep.mubr.msk.f32.mxu0 %vm15494_vm0, %v15495_v25 }
0x22c1   :  { %14615 = vmatprep.subr.bf16.mxu0 %v15492_v11 }
0x22c4   :  { %14617 = vmatpush3.bf16.msra.mxu0 %v16041_v39 }
0x22c5   :  { %14618 = vmatprep.subr.bf16.mxu0 %v15492_v11 }
0x22c7   :  { %13483 = vmatmul.mubr.f32.vlgmr.msra.gmra.mrb[12].mxu0 %v6397_v41 }
0x22c8   :  { %14620 = vmatpush3.bf16.msra.mxu0 %v16018_v2  ;;  %13493 = vmatprep.mubr.msk.f32.mxu0 %vm15494_vm0, %v15495_v25 }
0x22c9   :  { %14621 = vmatprep.subr.bf16.mxu0 %v15492_v11 }
0x22cc   :  { %14623 = vmatpush3.bf16.msra.mxu0 %v16022_v12 }
0x22cd   :  { %14660 = vmatprep.subr.bf16.mxu0 %v15492_v11 }
0x22cf   :  { %13494 = vmatmul.mubr.f32.vlgmr.msra.gmra.mrb[12].mxu0 %v6397_v41 }
0x22d0   :  { %14662 = vmatpush3.bf16.msra.mxu0 %v16018_v2  ;;  %13570 = vmatprep.mubr.msk.f32.mxu0 %vm15494_vm0, %v15495_v25 }
0x22d1   :  { %14663 = vmatprep.subr.bf16.mxu0 %v15492_v11 }
0x22d4   :  { %14665 = vmatpush3.bf16.msra.mxu0 %v16022_v12 }
0x22d5   :  { %14666 = vmatprep.subr.bf16.mxu0 %v15492_v11 }
0x23a2   :  { %v6809_v50 = vpop.f32.mrb[12].mxu0 }
0x23a3   :  { %v16282_v57 = vadd.f32 %v16009_v54, %v6809_v50  ;;  %v13495_v58 = vpop.f32.mrb[13].mxu0 }
0x23a5   :  { %v6813_v59 = vsel %vm4788_vm2, %v16282_v57, -inf }
0x23a6   :  { %6814 = vmax.xlane.f32.xlu0 %v6813_v59 }
0x2433   :  { %v6815_v60 = vpop.xlane.xlu0 %6814 }
0x2434   :  { %vm6816_vm5 = vcmp.eq.f32.partialorder %v16282_v57, %v6815_v60 }
0x2435   :  { %v11937_v62 = vsel %vm6816_vm5, 1.0, %v15495_v25 }
0x2436   :  { %6820 = vrot.lane.b32.xlu1 %v11937_v62, %s15487_s5 }
0x243a   :  { %7317 = vrot.lane.b32.xlu1 %v16282_v57, %s15491_s29 }
0x24a8   :  { %v6821_v63 = vpop.permute.xlu1 %6820 }
0x24a9   :  { %v6822_v31 = vsel %vm157_vm1, %v6821_v63, 0 }
0x24aa   :  { %v6893_v1 = vand.u32 4294901760, %v6822_v31 }
0x24ac   :  { %v6894_v3 = vsub.f32 %v6822_v31, %v6893_v1  ;;  %v7318_v24 = vpop.permute.xlu1 %7317 }
0x24ae   :  { %v6895_v4 = vand.u32 4294901760, %v6894_v3 }
0x24b0   :  { %v6896_v5 = vsub.f32 %v6894_v3, %v6895_v4 }
0x24b2   :  { %v6897_v6 = vand.u32 4294901760, %v6896_v5 }
0x24b4   :  { %13505 = vmatmul.mubr.f32.vlgmr.msra.gmra.mrb[14].mxu1 %v6897_v6 }
0x24b5   :  { %14632 = vmatpush3.bf16.msra.mxu1 %v16093_v9  ;;  %13515 = vmatprep.mubr.msk.f32.mxu1 %vm15494_vm0, %v15495_v25 }
0x24b6   :  { %14633 = vmatprep.subr.bf16.mxu1 %v15492_v11 }
0x24b9   :  { %14635 = vmatpush3.bf16.msra.mxu1 %v16098_v18 }
0x24ba   :  { %14636 = vmatprep.subr.bf16.mxu1 %v15492_v11 }
0x24bc   :  { %13516 = vmatmul.mubr.f32.vlgmr.msra.gmra.mrb[14].mxu1 %v6893_v1 }
0x24bd   :  { %14638 = vmatpush3.bf16.msra.mxu1 %v16102_v19  ;;  %13526 = vmatprep.mubr.msk.f32.mxu1 %vm15494_vm0, %v15495_v25 }
0x24be   :  { %14639 = vmatprep.subr.bf16.mxu1 %v15492_v11 }
0x24c1   :  { %14641 = vmatpush3.bf16.msra.mxu1 %v16104_v20 }
0x24c2   :  { %14642 = vmatprep.subr.bf16.mxu1 %v15492_v11 }
0x24c4   :  { %13527 = vmatmul.mubr.f32.vlgmr.msra.gmra.mrb[14].mxu1 %v6894_v3 }
0x24c5   :  { %14644 = vmatpush3.bf16.msra.mxu1 %v16085_v17  ;;  %13537 = vmatprep.mubr.msk.f32.mxu1 %vm15494_vm0, %v15495_v25 }
0x24c6   :  { %14645 = vmatprep.subr.bf16.mxu1 %v15492_v11 }
0x24c9   :  { %14647 = vmatpush3.bf16.msra.mxu1 %v16089_v61 }
0x24ca   :  { %14648 = vmatprep.subr.bf16.mxu1 %v15492_v11 }
0x24cc   :  { %13538 = vmatmul.mubr.f32.vlgmr.msra.gmra.mrb[14].mxu1 %v6895_v4 }
0x24cd   :  { %14650 = vmatpush3.bf16.msra.mxu1 %v16106_v21  ;;  %13548 = vmatprep.mubr.msk.f32.mxu1 %vm15494_vm0, %v15495_v25 }
0x24ce   :  { %14651 = vmatprep.subr.bf16.mxu1 %v15492_v11 }
0x24d1   :  { %14653 = vmatpush3.bf16.msra.mxu1 %v16108_v23 }
0x24d2   :  { %14654 = vmatprep.subr.bf16.mxu1 %v15492_v11 }
0x24d4   :  { %13549 = vmatmul.mubr.f32.vlgmr.msra.gmra.mrb[14].mxu1 %v6893_v1 }
0x24d5   :  { %14656 = vmatpush3.bf16.msra.mxu1 %v16085_v17  ;;  %13559 = vmatprep.mubr.msk.f32.mxu1 %vm15494_vm0, %v15495_v25 }
0x24d6   :  { %14657 = vmatprep.subr.bf16.mxu1 %v15492_v11 }
0x24d9   :  { %14659 = vmatpush3.bf16.msra.mxu1 %v16089_v61 }
0x24da   :  { %14696 = vmatprep.subr.bf16.mxu1 %v15492_v11 }
0x24dc   :  { %13560 = vmatmul.mubr.f32.vlgmr.msra.gmra.mrb[14].mxu1 %v6893_v1 }
0x24dd   :  { %14698 = vmatpush3.bf16.msra.mxu1 %v16085_v17  ;;  %13636 = vmatprep.mubr.msk.f32.mxu1 %vm15494_vm0, %v15495_v25 }
0x24de   :  { %14699 = vmatprep.subr.bf16.mxu1 %v15492_v11 }
0x24e1   :  { %14701 = vmatpush3.bf16.msra.mxu1 %v16089_v61 }
0x24e2   :  { %14702 = vmatprep.subr.bf16.mxu1 %v15492_v11 }
0x25af   :  { %v7305_v7 = vpop.f32.mrb[14].mxu1 }
0x25b0   :  { %v7309_v8 = vadd.f32 %v16282_v57, %v7305_v7  ;;  %v13561_v10 = vpop.f32.mrb[15].mxu1 }
0x25b2   :  { %v11938_v13 = vmul.f32 -1.442695, %v7309_v8 }
0x25b4   :  { %15310 = vpow2.f32 %v11938_v13 }
0x25be   :  { %v15311_v14 = vpop.eup %15310 }
0x25bf   :  { %v7313_v15 = vadd.f32 1.0, %v15311_v14 }
0x25c1   :  { %15312 = vrcp.f32 %v7313_v15 }
0x25cb   :  { %v15313_v16 = vpop.eup %15312 }
0x25cc   :  { %v7320_v26 = vmul.f32 %v15313_v16, %v7318_v24  ;;  %v7327_v33 = vsub.f32 1.0, %v15313_v16  ;;  %v7333_v0 = vmul.f32 %v15313_v16, %v16240_v55 }
0x25ce   :  { %7322 = vrot.lane.b32.xlu1 %v7320_v26, %s15491_s29 }
0x2640   :  { %v7323_v27 = vpop.permute.xlu1 %7322 }
0x2641   :  { %v7325_v30 = vadd.f32 %v7323_v27, %v7305_v7 }
0x2643   :  { %15314 = vtanh.f32 %v7325_v30 }
0x264d   :  { %v15315_v32 = vpop.eup %15314 }
0x264e   :  { %7329 = vrot.lane.b32.xlu1 %v15315_v32, %s15493_s6 }
0x26c0   :  { %v7330_v35 = vpop.permute.xlu1 %7329 }
0x26c1   :  { %v7332_v42 = vmul.f32 %v7330_v35, %v7327_v33 }
0x26c3   :  { %v16332_v44 = vadd.f32 %v7333_v0, %v7332_v42 }
0x26c5   :  { %7336 = vrot.lane.b32.xlu1 %v16332_v44, %s15493_s6 }
0x2737   :  { %v7337_v45 = vpop.permute.xlu1 %7336 }
0x2738   :  { %v7338_v46 = vsel %vm157_vm1, %v7337_v45, 0 }
0x2739   :  { %v7409_v47 = vand.u32 4294901760, %v7338_v46 }
0x273b   :  { %v7410_v51 = vsub.f32 %v7338_v46, %v7409_v47 }
0x273d   :  { %v7411_v53 = vand.u32 4294901760, %v7410_v51 }
0x273f   :  { %v7412_v56 = vsub.f32 %v7410_v51, %v7411_v53 }
0x2741   :  { %v7413_v29 = vand.u32 4294901760, %v7412_v56 }
0x2743   :  { %13571 = vmatmul.mubr.f32.vlgmr.msra.gmra.mrb[14].mxu0 %v7413_v29 }
0x2744   :  { %14668 = vmatpush3.bf16.msra.mxu0 %v16027_v28  ;;  %13581 = vmatprep.mubr.msk.f32.mxu0 %vm15494_vm0, %v15495_v25 }
0x2745   :  { %14669 = vmatprep.subr.bf16.mxu0 %v15492_v11 }
0x2748   :  { %14671 = vmatpush3.bf16.msra.mxu0 %v16033_v36 }
0x2749   :  { %14672 = vmatprep.subr.bf16.mxu0 %v15492_v11 }
0x274b   :  { %13582 = vmatmul.mubr.f32.vlgmr.msra.gmra.mrb[14].mxu0 %v7409_v47 }
0x274c   :  { %14674 = vmatpush3.bf16.msra.mxu0 %v16035_v37  ;;  %13592 = vmatprep.mubr.msk.f32.mxu0 %vm15494_vm0, %v15495_v25 }
0x274d   :  { %14675 = vmatprep.subr.bf16.mxu0 %v15492_v11 }
0x2750   :  { %14677 = vmatpush3.bf16.msra.mxu0 %v16037_v34 }
0x2751   :  { %14678 = vmatprep.subr.bf16.mxu0 %v15492_v11 }
0x2753   :  { %13593 = vmatmul.mubr.f32.vlgmr.msra.gmra.mrb[14].mxu0 %v7410_v51 }
0x2754   :  { %14680 = vmatpush3.bf16.msra.mxu0 %v16018_v2  ;;  %13603 = vmatprep.mubr.msk.f32.mxu0 %vm15494_vm0, %v15495_v25 }
0x2755   :  { %14681 = vmatprep.subr.bf16.mxu0 %v15492_v11 }
0x2758   :  { %14683 = vmatpush3.bf16.msra.mxu0 %v16022_v12 }
0x2759   :  { %14684 = vmatprep.subr.bf16.mxu0 %v15492_v11 }
0x275b   :  { %13604 = vmatmul.mubr.f32.vlgmr.msra.gmra.mrb[14].mxu0 %v7411_v53 }
0x275c   :  { %14686 = vmatpush3.bf16.msra.mxu0 %v16039_v38  ;;  %13614 = vmatprep.mubr.msk.f32.mxu0 %vm15494_vm0, %v15495_v25 }
0x275d   :  { %14687 = vmatprep.subr.bf16.mxu0 %v15492_v11 }
0x2760   :  { %14689 = vmatpush3.bf16.msra.mxu0 %v16041_v39 }
0x2761   :  { %14690 = vmatprep.subr.bf16.mxu0 %v15492_v11 }
0x2763   :  { %13615 = vmatmul.mubr.f32.vlgmr.msra.gmra.mrb[14].mxu0 %v7409_v47 }
0x2764   :  { %14692 = vmatpush3.bf16.msra.mxu0 %v16018_v2  ;;  %13625 = vmatprep.mubr.msk.f32.mxu0 %vm15494_vm0, %v15495_v25 }
0x2765   :  { %14693 = vmatprep.subr.bf16.mxu0 %v15492_v11 }
0x2768   :  { %14695 = vmatpush3.bf16.msra.mxu0 %v16022_v12 }
0x2769   :  { %14732 = vmatprep.subr.bf16.mxu0 %v15492_v11 }
0x276b   :  { %13626 = vmatmul.mubr.f32.vlgmr.msra.gmra.mrb[14].mxu0 %v7409_v47  ;;  %v16468_v47 = vld [vmem:[%s16759_s7] ss:$0 sm:$0xff]  ;;  %s15496_s7 = smov [#allocation11]  }
0x276c   :  { %14734 = vmatpush3.bf16.msra.mxu0 %v16018_v2  ;;  %13702 = vmatprep.mubr.msk.f32.mxu0 %vm15494_vm0, %v15495_v25 }
0x276d   :  { %14735 = vmatprep.subr.bf16.mxu0 %v15492_v11 }
0x2770   :  { %14737 = vmatpush3.bf16.msra.mxu0 %v16022_v12 }
0x2771   :  { %14738 = vmatprep.subr.bf16.mxu0 %v15492_v11 }
0x283e   :  { %v7821_v55 = vpop.f32.mrb[14].mxu0 }
0x283f   :  { %v16374_v41 = vadd.f32 %v16009_v54, %v7821_v55  ;;  %v13627_v43 = vpop.f32.mrb[15].mxu0 }
0x2841   :  { %v7825_v48 = vsel %vm4788_vm2, %v16374_v41, -inf }
0x2842   :  { %7826 = vmax.xlane.f32.xlu1 %v7825_v48 }
0x28cf   :  { %v7827_v49 = vpop.xlane.xlu1 %7826 }
0x28d0   :  { %vm7828_vm6 = vcmp.eq.f32.partialorder %v16374_v41, %v7827_v49 }
0x28d1   :  { %v11939_v22 = vsel %vm7828_vm6, 1.0, %v15495_v25 }
0x28d2   :  { %7832 = vrot.lane.b32.xlu0 %v11939_v22, %s15487_s5 }
0x28d6   :  { %8329 = vrot.lane.b32.xlu0 %v16374_v41, %s15491_s29 }
0x2944   :  { %v7833_v50 = vpop.permute.xlu0 %7832 }
0x2945   :  { %v7834_v58 = vsel %vm157_vm1, %v7833_v50, 0 }
0x2946   :  { %v7905_v54 = vand.u32 4294901760, %v7834_v58 }
0x2948   :  { %v7906_v59 = vsub.f32 %v7834_v58, %v7905_v54  ;;  %v8330_v8 = vpop.permute.xlu0 %8329 }
0x294a   :  { %v7907_v60 = vand.u32 4294901760, %v7906_v59 }
0x294c   :  { %v7908_v62 = vsub.f32 %v7906_v59, %v7907_v60 }
0x294e   :  { %v7909_v63 = vand.u32 4294901760, %v7908_v62 }
0x2950   :  { %13637 = vmatmul.mubr.f32.vlgmr.msra.gmra.mrb[16].mxu1 %v7909_v63 }
0x2951   :  { %14704 = vmatpush3.bf16.msra.mxu1 %v16093_v9  ;;  %13647 = vmatprep.mubr.msk.f32.mxu1 %vm15494_vm0, %v15495_v25 }
0x2952   :  { %14705 = vmatprep.subr.bf16.mxu1 %v15492_v11 }
0x2955   :  { %14707 = vmatpush3.bf16.msra.mxu1 %v16098_v18 }
0x2956   :  { %14708 = vmatprep.subr.bf16.mxu1 %v15492_v11 }
0x2958   :  { %13648 = vmatmul.mubr.f32.vlgmr.msra.gmra.mrb[16].mxu1 %v7905_v54 }
0x2959   :  { %14710 = vmatpush3.bf16.msra.mxu1 %v16102_v19  ;;  %13658 = vmatprep.mubr.msk.f32.mxu1 %vm15494_vm0, %v15495_v25 }
0x295a   :  { %14711 = vmatprep.subr.bf16.mxu1 %v15492_v11 }
0x295d   :  { %14713 = vmatpush3.bf16.msra.mxu1 %v16104_v20 }
0x295e   :  { %14714 = vmatprep.subr.bf16.mxu1 %v15492_v11 }
0x2960   :  { %13659 = vmatmul.mubr.f32.vlgmr.msra.gmra.mrb[16].mxu1 %v7906_v59 }
0x2961   :  { %14716 = vmatpush3.bf16.msra.mxu1 %v16085_v17  ;;  %13669 = vmatprep.mubr.msk.f32.mxu1 %vm15494_vm0, %v15495_v25 }
0x2962   :  { %14717 = vmatprep.subr.bf16.mxu1 %v15492_v11 }
0x2965   :  { %14719 = vmatpush3.bf16.msra.mxu1 %v16089_v61 }
0x2966   :  { %14720 = vmatprep.subr.bf16.mxu1 %v15492_v11 }
0x2968   :  { %13670 = vmatmul.mubr.f32.vlgmr.msra.gmra.mrb[16].mxu1 %v7907_v60 }
0x2969   :  { %14722 = vmatpush3.bf16.msra.mxu1 %v16106_v21  ;;  %13680 = vmatprep.mubr.msk.f32.mxu1 %vm15494_vm0, %v15495_v25 }
0x296a   :  { %14723 = vmatprep.subr.bf16.mxu1 %v15492_v11 }
0x296d   :  { %14725 = vmatpush3.bf16.msra.mxu1 %v16108_v23 }
0x296e   :  { %14726 = vmatprep.subr.bf16.mxu1 %v15492_v11 }
0x2970   :  { %13681 = vmatmul.mubr.f32.vlgmr.msra.gmra.mrb[16].mxu1 %v7905_v54 }
0x2971   :  { %14728 = vmatpush3.bf16.msra.mxu1 %v16085_v17  ;;  %13691 = vmatprep.mubr.msk.f32.mxu1 %vm15494_vm0, %v15495_v25 }
0x2972   :  { %14729 = vmatprep.subr.bf16.mxu1 %v15492_v11 }
0x2975   :  { %14731 = vmatpush3.bf16.msra.mxu1 %v16089_v61 }
0x2976   :  { %14768 = vmatprep.subr.bf16.mxu1 %v15492_v11 }
0x2978   :  { %13692 = vmatmul.mubr.f32.vlgmr.msra.gmra.mrb[16].mxu1 %v7905_v54 }
0x2979   :  { %14770 = vmatpush3.bf16.msra.mxu1 %v16085_v17  ;;  %13768 = vmatprep.mubr.msk.f32.mxu1 %vm15494_vm0, %v15495_v25 }
0x297a   :  { %14771 = vmatprep.subr.bf16.mxu1 %v15492_v11 }
0x297d   :  { %14773 = vmatpush3.bf16.msra.mxu1 %v16089_v61 }
0x297e   :  { %14774 = vmatprep.subr.bf16.mxu1 %v15492_v11 }
0x2a4b   :  { %v8317_v31 = vpop.f32.mrb[16].mxu1 }
0x2a4c   :  { %v8321_v1 = vadd.f32 %v16374_v41, %v8317_v31  ;;  %v13693_v3 = vpop.f32.mrb[17].mxu1 }
0x2a4e   :  { %v11940_v4 = vmul.f32 -1.442695, %v8321_v1 }
0x2a50   :  { %15316 = vpow2.f32 %v11940_v4 }
0x2a5a   :  { %v15317_v5 = vpop.eup %15316 }
0x2a5b   :  { %v8325_v6 = vadd.f32 1.0, %v15317_v5 }
0x2a5d   :  { %15318 = vrcp.f32 %v8325_v6 }
0x2a67   :  { %v15319_v7 = vpop.eup %15318 }
0x2a68   :  { %v8332_v10 = vmul.f32 %v15319_v7, %v8330_v8  ;;  %v8339_v16 = vsub.f32 1.0, %v15319_v7  ;;  %v8345_v26 = vmul.f32 %v15319_v7, %v16332_v44 }
0x2a6a   :  { %8334 = vrot.lane.b32.xlu0 %v8332_v10, %s15491_s29 }
0x2adc   :  { %v8335_v13 = vpop.permute.xlu0 %8334 }
0x2add   :  { %v8337_v14 = vadd.f32 %v8335_v13, %v8317_v31 }
0x2adf   :  { %15320 = vtanh.f32 %v8337_v14 }
0x2ae9   :  { %v15321_v15 = vpop.eup %15320 }
0x2aea   :  { %8341 = vrot.lane.b32.xlu0 %v15321_v15, %s15493_s6 }
0x2b5c   :  { %v8342_v24 = vpop.permute.xlu0 %8341 }
0x2b5d   :  { %v8344_v27 = vmul.f32 %v8342_v24, %v8339_v16 }
0x2b5f   :  { %v16424_v30 = vadd.f32 %v8345_v26, %v8344_v27 }
0x2b61   :  { %8348 = vrot.lane.b32.xlu1 %v16424_v30, %s15493_s6 }
0x2bd3   :  { %v8349_v32 = vpop.permute.xlu1 %8348 }
0x2bd4   :  { %v8350_v33 = vsel %vm157_vm1, %v8349_v32, 0 }
0x2bd5   :  { %v8421_v35 = vand.u32 4294901760, %v8350_v33 }
0x2bd7   :  { %v8422_v0 = vsub.f32 %v8350_v33, %v8421_v35 }
0x2bd9   :  { %v8423_v42 = vand.u32 4294901760, %v8422_v0 }
0x2bdb   :  { %v8424_v45 = vsub.f32 %v8422_v0, %v8423_v42 }
0x2bdd   :  { %v8425_v46 = vand.u32 4294901760, %v8424_v45 }
0x2bdf   :  { %13703 = vmatmul.mubr.f32.vlgmr.msra.gmra.mrb[16].mxu0 %v8425_v46 }
0x2be0   :  { %14740 = vmatpush3.bf16.msra.mxu0 %v16027_v28  ;;  %13713 = vmatprep.mubr.msk.f32.mxu0 %vm15494_vm0, %v15495_v25 }
0x2be1   :  { %14741 = vmatprep.subr.bf16.mxu0 %v15492_v11 }
0x2be4   :  { %14743 = vmatpush3.bf16.msra.mxu0 %v16033_v36 }
0x2be5   :  { %14744 = vmatprep.subr.bf16.mxu0 %v15492_v11 }
0x2be7   :  { %13714 = vmatmul.mubr.f32.vlgmr.msra.gmra.mrb[16].mxu0 %v8421_v35 }
0x2be8   :  { %14746 = vmatpush3.bf16.msra.mxu0 %v16035_v37  ;;  %13724 = vmatprep.mubr.msk.f32.mxu0 %vm15494_vm0, %v15495_v25 }
0x2be9   :  { %14747 = vmatprep.subr.bf16.mxu0 %v15492_v11 }
0x2bec   :  { %14749 = vmatpush3.bf16.msra.mxu0 %v16037_v34 }
0x2bed   :  { %14750 = vmatprep.subr.bf16.mxu0 %v15492_v11 }
0x2bef   :  { %13725 = vmatmul.mubr.f32.vlgmr.msra.gmra.mrb[16].mxu0 %v8422_v0 }
0x2bf0   :  { %14752 = vmatpush3.bf16.msra.mxu0 %v16018_v2  ;;  %13735 = vmatprep.mubr.msk.f32.mxu0 %vm15494_vm0, %v15495_v25 }
0x2bf1   :  { %14753 = vmatprep.subr.bf16.mxu0 %v15492_v11 }
0x2bf4   :  { %14755 = vmatpush3.bf16.msra.mxu0 %v16022_v12 }
0x2bf5   :  { %14756 = vmatprep.subr.bf16.mxu0 %v15492_v11 }
0x2bf7   :  { %13736 = vmatmul.mubr.f32.vlgmr.msra.gmra.mrb[16].mxu0 %v8423_v42 }
0x2bf8   :  { %14758 = vmatpush3.bf16.msra.mxu0 %v16039_v38  ;;  %13746 = vmatprep.mubr.msk.f32.mxu0 %vm15494_vm0, %v15495_v25 }
0x2bf9   :  { %14759 = vmatprep.subr.bf16.mxu0 %v15492_v11 }
0x2bfc   :  { %14761 = vmatpush3.bf16.msra.mxu0 %v16041_v39 }
0x2bfd   :  { %14762 = vmatprep.subr.bf16.mxu0 %v15492_v11 }
0x2bff   :  { %13747 = vmatmul.mubr.f32.vlgmr.msra.gmra.mrb[16].mxu0 %v8421_v35 }
0x2c00   :  { %14764 = vmatpush3.bf16.msra.mxu0 %v16018_v2  ;;  %13757 = vmatprep.mubr.msk.f32.mxu0 %vm15494_vm0, %v15495_v25 }
0x2c01   :  { %14765 = vmatprep.subr.bf16.mxu0 %v15492_v11 }
0x2c04   :  { %14767 = vmatpush3.bf16.msra.mxu0 %v16022_v12 }
0x2c05   :  { %14804 = vmatprep.subr.bf16.mxu0 %v15492_v11 }
0x2c07   :  { %13758 = vmatmul.mubr.f32.vlgmr.msra.gmra.mrb[16].mxu0 %v8421_v35 }
0x2c08   :  { %14806 = vmatpush3.bf16.msra.mxu0 %v16018_v2  ;;  %13834 = vmatprep.mubr.msk.f32.mxu0 %vm15494_vm0, %v15495_v25 }
0x2c09   :  { %14807 = vmatprep.subr.bf16.mxu0 %v15492_v11 }
0x2c0c   :  { %14809 = vmatpush3.bf16.msra.mxu0 %v16022_v12 }
0x2c0d   :  { %14810 = vmatprep.subr.bf16.mxu0 %v15492_v11 }
0x2cda   :  { %v8833_v44 = vpop.f32.mrb[16].mxu0 }
0x2cdb   :  { %v16471_v51 = vadd.f32 %v16468_v47, %v8833_v44  ;;  %v13759_v53 = vpop.f32.mrb[17].mxu0 }
0x2cdd   :  { %v8837_v56 = vsel %vm4788_vm2, %v16471_v51, -inf }
0x2cde   :  { %8838 = vmax.xlane.f32.xlu0 %v8837_v56 }
0x2d6b   :  { %v8839_v29 = vpop.xlane.xlu0 %8838 }
0x2d6c   :  { %vm8840_vm7 = vcmp.eq.f32.partialorder %v16471_v51, %v8839_v29 }
0x2d6d   :  { %v11941_v55 = vsel %vm8840_vm7, 1.0, %v15495_v25 }
0x2d6e   :  { %8844 = vrot.lane.b32.xlu1 %v11941_v55, %s15487_s5 }
0x2d72   :  { %9341 = vrot.lane.b32.xlu1 %v16471_v51, %s15491_s29 }
0x2de0   :  { %v8845_v43 = vpop.permute.xlu1 %8844 }
0x2de1   :  { %v8846_v48 = vsel %vm157_vm1, %v8845_v43, 0 }
0x2de2   :  { %v8917_v49 = vand.u32 4294901760, %v8846_v48 }
0x2de4   :  { %v8918_v22 = vsub.f32 %v8846_v48, %v8917_v49  ;;  %v9342_v4 = vpop.permute.xlu1 %9341 }
0x2de6   :  { %v8919_v50 = vand.u32 4294901760, %v8918_v22 }
0x2de8   :  { %v8920_v58 = vsub.f32 %v8918_v22, %v8919_v50 }
0x2dea   :  { %v8921_v54 = vand.u32 4294901760, %v8920_v58 }
0x2dec   :  { %13769 = vmatmul.mubr.f32.vlgmr.msra.gmra.mrb[18].mxu1 %v8921_v54 }
0x2ded   :  { %14776 = vmatpush3.bf16.msra.mxu1 %v16093_v9  ;;  %13779 = vmatprep.mubr.msk.f32.mxu1 %vm15494_vm0, %v15495_v25 }
0x2dee   :  { %14777 = vmatprep.subr.bf16.mxu1 %v15492_v11 }
0x2df1   :  { %14779 = vmatpush3.bf16.msra.mxu1 %v16098_v18 }
0x2df2   :  { %14780 = vmatprep.subr.bf16.mxu1 %v15492_v11 }
0x2df4   :  { %13780 = vmatmul.mubr.f32.vlgmr.msra.gmra.mrb[18].mxu1 %v8917_v49 }
0x2df5   :  { %14782 = vmatpush3.bf16.msra.mxu1 %v16102_v19  ;;  %13790 = vmatprep.mubr.msk.f32.mxu1 %vm15494_vm0, %v15495_v25 }
0x2df6   :  { %14783 = vmatprep.subr.bf16.mxu1 %v15492_v11 }
0x2df9   :  { %14785 = vmatpush3.bf16.msra.mxu1 %v16104_v20 }
0x2dfa   :  { %14786 = vmatprep.subr.bf16.mxu1 %v15492_v11 }
0x2dfc   :  { %13791 = vmatmul.mubr.f32.vlgmr.msra.gmra.mrb[18].mxu1 %v8918_v22 }
0x2dfd   :  { %14788 = vmatpush3.bf16.msra.mxu1 %v16085_v17  ;;  %13801 = vmatprep.mubr.msk.f32.mxu1 %vm15494_vm0, %v15495_v25 }
0x2dfe   :  { %14789 = vmatprep.subr.bf16.mxu1 %v15492_v11 }
0x2e01   :  { %14791 = vmatpush3.bf16.msra.mxu1 %v16089_v61 }
0x2e02   :  { %14792 = vmatprep.subr.bf16.mxu1 %v15492_v11 }
0x2e04   :  { %13802 = vmatmul.mubr.f32.vlgmr.msra.gmra.mrb[18].mxu1 %v8919_v50 }
0x2e05   :  { %14794 = vmatpush3.bf16.msra.mxu1 %v16106_v21  ;;  %13812 = vmatprep.mubr.msk.f32.mxu1 %vm15494_vm0, %v15495_v25 }
0x2e06   :  { %14795 = vmatprep.subr.bf16.mxu1 %v15492_v11 }
0x2e09   :  { %14797 = vmatpush3.bf16.msra.mxu1 %v16108_v23 }
0x2e0a   :  { %14798 = vmatprep.subr.bf16.mxu1 %v15492_v11 }
0x2e0c   :  { %13813 = vmatmul.mubr.f32.vlgmr.msra.gmra.mrb[18].mxu1 %v8917_v49 }
0x2e0d   :  { %14800 = vmatpush3.bf16.msra.mxu1 %v16085_v17  ;;  %13823 = vmatprep.mubr.msk.f32.mxu1 %vm15494_vm0, %v15495_v25 }
0x2e0e   :  { %14801 = vmatprep.subr.bf16.mxu1 %v15492_v11 }
0x2e11   :  { %14803 = vmatpush3.bf16.msra.mxu1 %v16089_v61 }
0x2e12   :  { %14840 = vmatprep.subr.bf16.mxu1 %v15492_v11 }
0x2e14   :  { %13824 = vmatmul.mubr.f32.vlgmr.msra.gmra.mrb[18].mxu1 %v8917_v49 }
0x2e15   :  { %14842 = vmatpush3.bf16.msra.mxu1 %v16085_v17  ;;  %13900 = vmatprep.mubr.msk.f32.mxu1 %vm15494_vm0, %v15495_v25 }
0x2e16   :  { %14843 = vmatprep.subr.bf16.mxu1 %v15492_v11 }
0x2e19   :  { %14845 = vmatpush3.bf16.msra.mxu1 %v16089_v61 }
0x2e1a   :  { %14846 = vmatprep.subr.bf16.mxu1 %v15492_v11 }
0x2ee7   :  { %v9329_v59 = vpop.f32.mrb[18].mxu1 }
0x2ee8   :  { %v9333_v60 = vadd.f32 %v16471_v51, %v9329_v59  ;;  %v13825_v62 = vpop.f32.mrb[19].mxu1 }
0x2eea   :  { %v11942_v63 = vmul.f32 -1.442695, %v9333_v60 }
0x2eec   :  { %15322 = vpow2.f32 %v11942_v63 }
0x2ef6   :  { %v15323_v31 = vpop.eup %15322 }
0x2ef7   :  { %v9337_v1 = vadd.f32 1.0, %v15323_v31 }
0x2ef9   :  { %15324 = vrcp.f32 %v9337_v1 }
0x2f03   :  { %v15325_v3 = vpop.eup %15324 }
0x2f04   :  { %v9344_v5 = vmul.f32 %v15325_v3, %v9342_v4  ;;  %v9351_v10 = vsub.f32 1.0, %v15325_v3  ;;  %v9357_v14 = vmul.f32 %v15325_v3, %v16424_v30 }
0x2f06   :  { %9346 = vrot.lane.b32.xlu1 %v9344_v5, %s15491_s29 }
0x2f78   :  { %v9347_v6 = vpop.permute.xlu1 %9346 }
0x2f79   :  { %v9349_v7 = vadd.f32 %v9347_v6, %v9329_v59 }
0x2f7b   :  { %15326 = vtanh.f32 %v9349_v7 }
0x2f85   :  { %v15327_v8 = vpop.eup %15326 }
0x2f86   :  { %9353 = vrot.lane.b32.xlu1 %v15327_v8, %s15493_s6 }
0x2ff8   :  { %v9354_v13 = vpop.permute.xlu1 %9353 }
0x2ff9   :  { %v9356_v15 = vmul.f32 %v9354_v13, %v9351_v10 }
0x2ffb   :  { %v16521_v16 = vadd.f32 %v9357_v14, %v9356_v15 }
0x2ffd   :  { %9360 = vrot.lane.b32.xlu0 %v16521_v16, %s15493_s6 }
0x306f   :  { %v9361_v24 = vpop.permute.xlu0 %9360 }
0x3070   :  { %v9362_v26 = vsel %vm157_vm1, %v9361_v24, 0 }
0x3071   :  { %v9433_v27 = vand.u32 4294901760, %v9362_v26 }
0x3073   :  { %v9434_v32 = vsub.f32 %v9362_v26, %v9433_v27 }
0x3075   :  { %v9435_v33 = vand.u32 4294901760, %v9434_v32 }
0x3077   :  { %v9436_v35 = vsub.f32 %v9434_v32, %v9435_v33 }
0x3079   :  { %v9437_v0 = vand.u32 4294901760, %v9436_v35 }
0x307b   :  { %13835 = vmatmul.mubr.f32.vlgmr.msra.gmra.mrb[18].mxu0 %v9437_v0 }
0x307c   :  { %14812 = vmatpush3.bf16.msra.mxu0 %v16027_v28  ;;  %13845 = vmatprep.mubr.msk.f32.mxu0 %vm15494_vm0, %v15495_v25 }
0x307d   :  { %14813 = vmatprep.subr.bf16.mxu0 %v15492_v11 }
0x3080   :  { %14815 = vmatpush3.bf16.msra.mxu0 %v16033_v36 }
0x3081   :  { %14816 = vmatprep.subr.bf16.mxu0 %v15492_v11 }
0x3083   :  { %13846 = vmatmul.mubr.f32.vlgmr.msra.gmra.mrb[18].mxu0 %v9433_v27 }
0x3084   :  { %14818 = vmatpush3.bf16.msra.mxu0 %v16035_v37  ;;  %13856 = vmatprep.mubr.msk.f32.mxu0 %vm15494_vm0, %v15495_v25 }
0x3085   :  { %14819 = vmatprep.subr.bf16.mxu0 %v15492_v11 }
0x3088   :  { %14821 = vmatpush3.bf16.msra.mxu0 %v16037_v34 }
0x3089   :  { %14822 = vmatprep.subr.bf16.mxu0 %v15492_v11 }
0x308b   :  { %13857 = vmatmul.mubr.f32.vlgmr.msra.gmra.mrb[18].mxu0 %v9434_v32 }
0x308c   :  { %14824 = vmatpush3.bf16.msra.mxu0 %v16018_v2  ;;  %13867 = vmatprep.mubr.msk.f32.mxu0 %vm15494_vm0, %v15495_v25 }
0x308d   :  { %14825 = vmatprep.subr.bf16.mxu0 %v15492_v11 }
0x3090   :  { %14827 = vmatpush3.bf16.msra.mxu0 %v16022_v12 }
0x3091   :  { %14828 = vmatprep.subr.bf16.mxu0 %v15492_v11 }
0x3093   :  { %13868 = vmatmul.mubr.f32.vlgmr.msra.gmra.mrb[18].mxu0 %v9435_v33 }
0x3094   :  { %14830 = vmatpush3.bf16.msra.mxu0 %v16039_v38  ;;  %13878 = vmatprep.mubr.msk.f32.mxu0 %vm15494_vm0, %v15495_v25 }
0x3095   :  { %14831 = vmatprep.subr.bf16.mxu0 %v15492_v11 }
0x3098   :  { %14833 = vmatpush3.bf16.msra.mxu0 %v16041_v39 }
0x3099   :  { %14834 = vmatprep.subr.bf16.mxu0 %v15492_v11 }
0x309b   :  { %13879 = vmatmul.mubr.f32.vlgmr.msra.gmra.mrb[18].mxu0 %v9433_v27 }
0x309c   :  { %14836 = vmatpush3.bf16.msra.mxu0 %v16018_v2  ;;  %13889 = vmatprep.mubr.msk.f32.mxu0 %vm15494_vm0, %v15495_v25 }
0x309d   :  { %14837 = vmatprep.subr.bf16.mxu0 %v15492_v11 }
0x30a0   :  { %14839 = vmatpush3.bf16.msra.mxu0 %v16022_v12 }
0x30a1   :  { %14876 = vmatprep.subr.bf16.mxu0 %v15492_v11 }
0x30a3   :  { %13890 = vmatmul.mubr.f32.vlgmr.msra.gmra.mrb[18].mxu0 %v9433_v27 }
0x30a4   :  { %14878 = vmatpush3.bf16.msra.mxu0 %v16018_v2  ;;  %13966 = vmatprep.mubr.msk.f32.mxu0 %vm15494_vm0, %v15495_v25 }
0x30a5   :  { %14879 = vmatprep.subr.bf16.mxu0 %v15492_v11 }
0x30a8   :  { %14881 = vmatpush3.bf16.msra.mxu0 %v16022_v12 }
0x30a9   :  { %14882 = vmatprep.subr.bf16.mxu0 %v15492_v11 }
0x3176   :  { %v9845_v30 = vpop.f32.mrb[18].mxu0 }
0x3177   :  { %v14998_v42 = vadd.f32 %v16468_v47, %v9845_v30  ;;  %v13891_v45 = vpop.f32.mrb[19].mxu0 }
0x3179   :  { %v9849_v46 = vsel %vm4788_vm2, %v14998_v42, -inf }
0x317a   :  { %9850 = vmax.xlane.f32.xlu1 %v9849_v46 }
0x3207   :  { %v9851_v44 = vpop.xlane.xlu1 %9850 }
0x3208   :  { %vm9852_vm8 = vcmp.eq.f32.partialorder %v14998_v42, %v9851_v44 }
0x3209   :  { %v11943_v53 = vsel %vm9852_vm8, 1.0, %v15495_v25 }
0x320a   :  { %9856 = vrot.lane.b32.xlu0 %v11943_v53, %s15487_s5 }
0x320e   :  { %10353 = vrot.lane.b32.xlu0 %v14998_v42, %s15491_s29 }
0x327c   :  { %v9857_v56 = vpop.permute.xlu0 %9856 }
0x327d   :  { %v9858_v29 = vsel %vm157_vm1, %v9857_v56, 0 }
0x327e   :  { %v9929_v55 = vand.u32 4294901760, %v9858_v29 }
0x3280   :  { %v9930_v43 = vsub.f32 %v9858_v29, %v9929_v55  ;;  %v16604_v31 = vpop.permute.xlu0 %10353 }
0x3282   :  { %v9931_v48 = vand.u32 4294901760, %v9930_v43 }
0x3284   :  { %v9932_v49 = vsub.f32 %v9930_v43, %v9931_v48 }
0x3286   :  { %v9933_v22 = vand.u32 4294901760, %v9932_v49 }
0x3288   :  { %13901 = vmatmul.mubr.f32.vlgmr.msra.gmra.mrb[20].mxu1 %v9933_v22 }
0x3289   :  { %14848 = vmatpush3.bf16.msra.mxu1 %v16093_v9  ;;  %13911 = vmatprep.mubr.msk.f32.mxu1 %vm15494_vm0, %v15495_v25 }
0x328a   :  { %14849 = vmatprep.subr.bf16.mxu1 %v15492_v11 }
0x328d   :  { %14851 = vmatpush3.bf16.msra.mxu1 %v16098_v18 }
0x328e   :  { %14852 = vmatprep.subr.bf16.mxu1 %v15492_v11 }
0x3290   :  { %13912 = vmatmul.mubr.f32.vlgmr.msra.gmra.mrb[20].mxu1 %v9929_v55 }
0x3291   :  { %14854 = vmatpush3.bf16.msra.mxu1 %v16102_v19  ;;  %13922 = vmatprep.mubr.msk.f32.mxu1 %vm15494_vm0, %v15495_v25 }
0x3292   :  { %14855 = vmatprep.subr.bf16.mxu1 %v15492_v11 }
0x3295   :  { %14857 = vmatpush3.bf16.msra.mxu1 %v16104_v20 }
0x3296   :  { %14858 = vmatprep.subr.bf16.mxu1 %v15492_v11 }
0x3298   :  { %13923 = vmatmul.mubr.f32.vlgmr.msra.gmra.mrb[20].mxu1 %v9930_v43 }
0x3299   :  { %14860 = vmatpush3.bf16.msra.mxu1 %v16085_v17  ;;  %13933 = vmatprep.mubr.msk.f32.mxu1 %vm15494_vm0, %v15495_v25 }
0x329a   :  { %14861 = vmatprep.subr.bf16.mxu1 %v15492_v11 }
0x329d   :  { %14863 = vmatpush3.bf16.msra.mxu1 %v16089_v61 }
0x329e   :  { %14864 = vmatprep.subr.bf16.mxu1 %v15492_v11 }
0x32a0   :  { %13934 = vmatmul.mubr.f32.vlgmr.msra.gmra.mrb[20].mxu1 %v9931_v48 }
0x32a1   :  { %14866 = vmatpush3.bf16.msra.mxu1 %v16106_v21  ;;  %13944 = vmatprep.mubr.msk.f32.mxu1 %vm15494_vm0, %v15495_v25 }
0x32a2   :  { %14867 = vmatprep.subr.bf16.mxu1 %v15492_v11 }
0x32a5   :  { %14869 = vmatpush3.bf16.msra.mxu1 %v16108_v23 }
0x32a6   :  { %14870 = vmatprep.subr.bf16.mxu1 %v15492_v11 }
0x32a8   :  { %13945 = vmatmul.mubr.f32.vlgmr.msra.gmra.mrb[20].mxu1 %v9929_v55 }
0x32a9   :  { %14872 = vmatpush3.bf16.msra.mxu1 %v16085_v17  ;;  %13955 = vmatprep.mubr.msk.f32.mxu1 %vm15494_vm0, %v15495_v25 }
0x32aa   :  { %14873 = vmatprep.subr.bf16.mxu1 %v15492_v11 }
0x32ad   :  { %14875 = vmatpush3.bf16.msra.mxu1 %v16089_v61 }
0x32ae   :  { %14912 = vmatprep.subr.bf16.mxu1 %v15492_v11 }
0x32b0   :  { %13956 = vmatmul.mubr.f32.vlgmr.msra.gmra.mrb[20].mxu1 %v9929_v55 }
0x32b1   :  { %14914 = vmatpush3.bf16.msra.mxu1 %v16085_v17  ;;  %14032 = vmatprep.mubr.msk.f32.mxu1 %vm15494_vm0, %v15495_v25 }
0x32b2   :  { %14915 = vmatprep.subr.bf16.mxu1 %v15492_v11 }
0x32b5   :  { %14917 = vmatpush3.bf16.msra.mxu1 %v16089_v61 }
0x32b6   :  { %14918 = vmatprep.subr.bf16.mxu1 %v15492_v11 }
0x3383   :  { %v10341_v50 = vpop.f32.mrb[20].mxu1 }
0x3384   :  { %v10345_v58 = vadd.f32 %v14998_v42, %v10341_v50  ;;  %v13957_v54 = vpop.f32.mrb[21].mxu1 }
0x3386   :  { %v11944_v59 = vmul.f32 -1.442695, %v10345_v58 }
0x3388   :  { %15328 = vpow2.f32 %v11944_v59 }
0x3392   :  { %v15329_v60 = vpop.eup %15328 }
0x3393   :  { %v10349_v62 = vadd.f32 1.0, %v15329_v60 }
0x3395   :  { %15330 = vrcp.f32 %v10349_v62 }
0x339f   :  { %v15331_v63 = vpop.eup %15330 }
0x33a0   :  { %v10356_v1 = vmul.f32 %v15331_v63, %v16604_v31  ;;  %v10363_v6 = vsub.f32 1.0, %v15331_v63  ;;  %v10369_v8 = vmul.f32 %v15331_v63, %v16521_v16 }
0x33a2   :  { %10358 = vrot.lane.b32.xlu0 %v10356_v1, %s15491_s29 }
0x3414   :  { %v10359_v3 = vpop.permute.xlu0 %10358 }
0x3415   :  { %v10361_v4 = vadd.f32 %v10359_v3, %v10341_v50 }
0x3417   :  { %15332 = vtanh.f32 %v10361_v4 }
0x3421   :  { %v15333_v5 = vpop.eup %15332 }
0x3422   :  { %10365 = vrot.lane.b32.xlu0 %v15333_v5, %s15493_s6 }
0x3494   :  { %v10366_v7 = vpop.permute.xlu0 %10365 }
0x3495   :  { %v10368_v10 = vmul.f32 %v10366_v7, %v10363_v6 }
0x3497   :  { %v16610_v13 = vadd.f32 %v10369_v8, %v10368_v10 }
0x3499   :  { %10372 = vrot.lane.b32.xlu1 %v16610_v13, %s15493_s6 }
0x350b   :  { %v10373_v14 = vpop.permute.xlu1 %10372 }
0x350c   :  { %v10374_v15 = vsel %vm157_vm1, %v10373_v14, 0 }
0x350d   :  { %v10445_v24 = vand.u32 4294901760, %v10374_v15 }
0x350f   :  { %v10446_v26 = vsub.f32 %v10374_v15, %v10445_v24 }
0x3511   :  { %v10447_v27 = vand.u32 4294901760, %v10446_v26 }
0x3513   :  { %v10448_v32 = vsub.f32 %v10446_v26, %v10447_v27 }
0x3515   :  { %v10449_v33 = vand.u32 4294901760, %v10448_v32 }
0x3517   :  { %13967 = vmatmul.mubr.f32.vlgmr.msra.gmra.mrb[20].mxu0 %v10449_v33 }
0x3518   :  { %14884 = vmatpush3.bf16.msra.mxu0 %v16027_v28  ;;  %13977 = vmatprep.mubr.msk.f32.mxu0 %vm15494_vm0, %v15495_v25 }
0x3519   :  { %14885 = vmatprep.subr.bf16.mxu0 %v15492_v11 }
0x351c   :  { %14887 = vmatpush3.bf16.msra.mxu0 %v16033_v36 }
0x351d   :  { %14888 = vmatprep.subr.bf16.mxu0 %v15492_v11 }
0x351f   :  { %13978 = vmatmul.mubr.f32.vlgmr.msra.gmra.mrb[20].mxu0 %v10445_v24 }
0x3520   :  { %14890 = vmatpush3.bf16.msra.mxu0 %v16035_v37  ;;  %13988 = vmatprep.mubr.msk.f32.mxu0 %vm15494_vm0, %v15495_v25 }
0x3521   :  { %14891 = vmatprep.subr.bf16.mxu0 %v15492_v11 }
0x3524   :  { %14893 = vmatpush3.bf16.msra.mxu0 %v16037_v34 }
0x3525   :  { %14894 = vmatprep.subr.bf16.mxu0 %v15492_v11 }
0x3527   :  { %13989 = vmatmul.mubr.f32.vlgmr.msra.gmra.mrb[20].mxu0 %v10446_v26 }
0x3528   :  { %14896 = vmatpush3.bf16.msra.mxu0 %v16018_v2  ;;  %13999 = vmatprep.mubr.msk.f32.mxu0 %vm15494_vm0, %v15495_v25 }
0x3529   :  { %14897 = vmatprep.subr.bf16.mxu0 %v15492_v11 }
0x352c   :  { %14899 = vmatpush3.bf16.msra.mxu0 %v16022_v12 }
0x352d   :  { %14900 = vmatprep.subr.bf16.mxu0 %v15492_v11 }
0x352f   :  { %14000 = vmatmul.mubr.f32.vlgmr.msra.gmra.mrb[20].mxu0 %v10447_v27 }
0x3530   :  { %14902 = vmatpush3.bf16.msra.mxu0 %v16039_v38  ;;  %14010 = vmatprep.mubr.msk.f32.mxu0 %vm15494_vm0, %v15495_v25 }
0x3531   :  { %14903 = vmatprep.subr.bf16.mxu0 %v15492_v11 }
0x3534   :  { %14905 = vmatpush3.bf16.msra.mxu0 %v16041_v39 }
0x3535   :  { %14906 = vmatprep.subr.bf16.mxu0 %v15492_v11 }
0x3537   :  { %14011 = vmatmul.mubr.f32.vlgmr.msra.gmra.mrb[20].mxu0 %v10445_v24 }
0x3538   :  { %14908 = vmatpush3.bf16.msra.mxu0 %v16018_v2  ;;  %14021 = vmatprep.mubr.msk.f32.mxu0 %vm15494_vm0, %v15495_v25 }
0x3539   :  { %14909 = vmatprep.subr.bf16.mxu0 %v15492_v11 }
0x353c   :  { %14911 = vmatpush3.bf16.msra.mxu0 %v16022_v12 }
0x353d   :  { %14948 = vmatprep.subr.bf16.mxu0 %v15492_v11 }
0x353f   :  { %14022 = vmatmul.mubr.f32.vlgmr.msra.gmra.mrb[20].mxu0 %v10445_v24 }
0x3540   :  { %14950 = vmatpush3.bf16.msra.mxu0 %v16018_v2  ;;  %14098 = vmatprep.mubr.msk.f32.mxu0 %vm15494_vm0, %v15495_v25 }
0x3541   :  { %14951 = vmatprep.subr.bf16.mxu0 %v15492_v11 }
0x3544   :  { %14953 = vmatpush3.bf16.msra.mxu0 %v16022_v12 }
0x3545   :  { %14954 = vmatprep.subr.bf16.mxu0 %v15492_v11 }
0x3612   :  { %v10857_v16 = vpop.f32.mrb[20].mxu0 }
0x3613   :  { %v16652_v35 = vadd.f32 %v16468_v47, %v10857_v16  ;;  %v14023_v0 = vpop.f32.mrb[21].mxu0 }
0x3615   :  { %v10861_v30 = vsel %vm4788_vm2, %v16652_v35, -inf }
0x3616   :  { %10862 = vmax.xlane.f32.xlu0 %v10861_v30 }
0x36a3   :  { %v10863_v42 = vpop.xlane.xlu0 %10862 }
0x36a4   :  { %vm10864_vm9 = vcmp.eq.f32.partialorder %v16652_v35, %v10863_v42 }
0x36a5   :  { %v11945_v45 = vsel %vm10864_vm9, 1.0, %v15495_v25 }
0x36a6   :  { %10868 = vrot.lane.b32.xlu1 %v11945_v45, %s15487_s5 }
0x36aa   :  { %11365 = vrot.lane.b32.xlu1 %v16652_v35, %s15491_s29 }
0x3718   :  { %v10869_v46 = vpop.permute.xlu1 %10868 }
0x3719   :  { %v10870_v44 = vsel %vm157_vm1, %v10869_v46, 0 }
0x371a   :  { %v10941_v53 = vand.u32 4294901760, %v10870_v44 }
0x371c   :  { %v10942_v56 = vsub.f32 %v10870_v44, %v10941_v53  ;;  %v11366_v49 = vpop.permute.xlu1 %11365 }
0x371e   :  { %v10943_v29 = vand.u32 4294901760, %v10942_v56 }
0x3720   :  { %v10944_v55 = vsub.f32 %v10942_v56, %v10943_v29 }
0x3722   :  { %v10945_v43 = vand.u32 4294901760, %v10944_v55 }
0x3724   :  { %14033 = vmatmul.mubr.f32.vlgmr.msra.gmra.mrb[22].mxu1 %v10945_v43 }
0x3725   :  { %14920 = vmatpush3.bf16.msra.mxu1 %v16093_v9  ;;  %14043 = vmatprep.mubr.msk.f32.mxu1 %vm15494_vm0, %v15495_v25 }
0x3726   :  { %14921 = vmatprep.subr.bf16.mxu1 %v15492_v11 }
0x3729   :  { %14923 = vmatpush3.bf16.msra.mxu1 %v16098_v18 }
0x372a   :  { %14924 = vmatprep.subr.bf16.mxu1 %v15492_v11 }
0x372c   :  { %14044 = vmatmul.mubr.f32.vlgmr.msra.gmra.mrb[22].mxu1 %v10941_v53 }
0x372d   :  { %14926 = vmatpush3.bf16.msra.mxu1 %v16102_v19  ;;  %14054 = vmatprep.mubr.msk.f32.mxu1 %vm15494_vm0, %v15495_v25 }
0x372e   :  { %14927 = vmatprep.subr.bf16.mxu1 %v15492_v11 }
0x3731   :  { %14929 = vmatpush3.bf16.msra.mxu1 %v16104_v20 }
0x3732   :  { %14930 = vmatprep.subr.bf16.mxu1 %v15492_v11 }
0x3734   :  { %14055 = vmatmul.mubr.f32.vlgmr.msra.gmra.mrb[22].mxu1 %v10942_v56 }
0x3735   :  { %14932 = vmatpush3.bf16.msra.mxu1 %v16085_v17  ;;  %14065 = vmatprep.mubr.msk.f32.mxu1 %vm15494_vm0, %v15495_v25 }
0x3736   :  { %14933 = vmatprep.subr.bf16.mxu1 %v15492_v11 }
0x3739   :  { %14935 = vmatpush3.bf16.msra.mxu1 %v16089_v61 }
0x373a   :  { %14936 = vmatprep.subr.bf16.mxu1 %v15492_v11 }
0x373c   :  { %14066 = vmatmul.mubr.f32.vlgmr.msra.gmra.mrb[22].mxu1 %v10943_v29 }
0x373d   :  { %14938 = vmatpush3.bf16.msra.mxu1 %v16106_v21  ;;  %14076 = vmatprep.mubr.msk.f32.mxu1 %vm15494_vm0, %v15495_v25 }
0x373e   :  { %14939 = vmatprep.subr.bf16.mxu1 %v15492_v11 }
0x3741   :  { %14941 = vmatpush3.bf16.msra.mxu1 %v16108_v23 }
0x3742   :  { %14942 = vmatprep.subr.bf16.mxu1 %v15492_v11 }
0x3744   :  { %14077 = vmatmul.mubr.f32.vlgmr.msra.gmra.mrb[22].mxu1 %v10941_v53 }
0x3745   :  { %14944 = vmatpush3.bf16.msra.mxu1 %v16085_v17  ;;  %14087 = vmatprep.mubr.msk.f32.mxu1 %vm15494_vm0, %v15495_v25 }
0x3746   :  { %14945 = vmatprep.subr.bf16.mxu1 %v15492_v11 }
0x3749   :  { %14947 = vmatpush3.bf16.msra.mxu1 %v16089_v61 }
0x374c   :  { %14088 = vmatmul.mubr.f32.vlgmr.msra.gmra.mrb[22].mxu1 %v10941_v53 }
0x381f   :  { %v11353_v9 = vpop.f32.mrb[22].mxu1 }
0x3820   :  { %v11357_v18 = vadd.f32 %v16652_v35, %v11353_v9  ;;  %v14089_v19 = vpop.f32.mrb[23].mxu1 }
0x3822   :  { %v11946_v20 = vmul.f32 -1.442695, %v11357_v18 }
0x3824   :  { %15334 = vpow2.f32 %v11946_v20 }
0x382e   :  { %v15335_v21 = vpop.eup %15334 }
0x382f   :  { %v11361_v23 = vadd.f32 1.0, %v15335_v21 }
0x3831   :  { %15336 = vrcp.f32 %v11361_v23 }
0x383b   :  { %v15337_v48 = vpop.eup %15336 }
0x383c   :  { %v11368_v17 = vmul.f32 %v15337_v48, %v11366_v49  ;;  %v11375_v61 = vsub.f32 1.0, %v15337_v48  ;;  %v11381_v59 = vmul.f32 %v15337_v48, %v16610_v13 }
0x383e   :  { %11370 = vrot.lane.b32.xlu1 %v11368_v17, %s15491_s29 }
0x38b0   :  { %v11371_v22 = vpop.permute.xlu1 %11370 }
0x38b1   :  { %v11373_v50 = vadd.f32 %v11371_v22, %v11353_v9 }
0x38b3   :  { %15338 = vtanh.f32 %v11373_v50 }
0x38bd   :  { %v15339_v58 = vpop.eup %15338 }
0x38be   :  { %11377 = vrot.lane.b32.xlu1 %v15339_v58, %s15493_s6 }
0x38c2   :  { %11873 = vrot.lane.b32.xlu1 %v16081_v52, %s15487_s5 }
0x38c6   :  { %11879 = vrot.lane.b32.xlu1 %v16471_v51, %s15487_s5  ;;  %s11911_s5 = sshll.u32 %s15496_s7, 4  ;;  %s11912_s5 = int_to_ptr.vmem [resolvable:$true] %s11911_s5 }
0x38c7   :  { %s15452_s9 = scalar_lea.vmem %s11912_s5, 64  ;;  %p15457_p13 = scmp.lt.s32.totalorder %s11912_s5, %s11912_s5 }
0x38c8   :  { %p15453_p12 = scmp.ne.s32.totalorder %s11912_s5, %s15452_s9  ;;  %p15458_p0 = scmp.lt.s32.totalorder %s15452_s9, %s15452_s9 }
0x38ca   :  { %11876 = vrot.lane.b32.xlu1 %v16282_v57, %s15493_s6  ;;  %p15459_p1 = por %p15458_p0, %p15457_p13 }
0x38cc   :  { %p15460_p2 = pnand %p15459_p1, %p15453_p12 }
0x38ce   :  { %11882 = vrot.lane.b32.xlu1 %v16652_v35, %s15493_s6 }
0x3930   :  { %v11378_v54 = vpop.permute.xlu1 %11377 }
0x3931   :  { %v11380_v60 = vmul.f32 %v11378_v54, %v11375_v61 }
0x3933   :  { %v11382_v62 = vadd.f32 %v11381_v59, %v11380_v60 }
0x3935   :  { %11384 = vrot.lane.b32.xlu0 %v11382_v62, %s15493_s6 }
0x39a7   :  { %v11385_v63 = vpop.permute.xlu0 %11384 }
0x39a8   :  { %v11386_v52 = vsel %vm157_vm1, %v11385_v63, 0 }
0x39a9   :  { %v11457_v1 = vand.u32 4294901760, %v11386_v52 }
0x39ab   :  { %v11458_v3 = vsub.f32 %v11386_v52, %v11457_v1 }
0x39ad   :  { %v11459_v51 = vand.u32 4294901760, %v11458_v3 }
0x39af   :  { %v11460_v4 = vsub.f32 %v11458_v3, %v11459_v51 }
0x39b1   :  { %v11461_v5 = vand.u32 4294901760, %v11460_v4 }
0x39b3   :  { %14099 = vmatmul.mubr.f32.vlgmr.msra.gmra.mrb[22].mxu0 %v11461_v5 }
0x39b4   :  { %14956 = vmatpush3.bf16.msra.mxu0 %v16027_v28  ;;  %14109 = vmatprep.mubr.msk.f32.mxu0 %vm15494_vm0, %v15495_v25  ;;  %v11874_v28 = vpop.permute.xlu1 %11873 }
0x39b5   :  { %14957 = vmatprep.subr.bf16.mxu0 %v15492_v11 }
0x39b8   :  { %14959 = vmatpush3.bf16.msra.mxu0 %v16033_v36  ;;  %v11880_v36 = vpop.permute.xlu1 %11879 }
0x39b9   :  { %14960 = vmatprep.subr.bf16.mxu0 %v15492_v11 }
0x39bb   :  { %14110 = vmatmul.mubr.f32.vlgmr.msra.gmra.mrb[22].mxu0 %v11457_v1 }
0x39bc   :  { %14962 = vmatpush3.bf16.msra.mxu0 %v16035_v37  ;;  %14120 = vmatprep.mubr.msk.f32.mxu0 %vm15494_vm0, %v15495_v25  ;;  %v11877_v37 = vpop.permute.xlu1 %11876 }
0x39bd   :  { %14963 = vmatprep.subr.bf16.mxu0 %v15492_v11 }
0x39c0   :  { %14965 = vmatpush3.bf16.msra.mxu0 %v16037_v34  ;;  %v11885_v34 = vsel %vm157_vm1, %v11874_v28, %v16234_v40 }
0x39c1   :  { %14966 = vmatprep.subr.bf16.mxu0 %v15492_v11 }
0x39c3   :  { %14121 = vmatmul.mubr.f32.vlgmr.msra.gmra.mrb[22].mxu0 %v11458_v3 }
0x39c4   :  { %14968 = vmatpush3.bf16.msra.mxu0 %v16018_v2  ;;  %14131 = vmatprep.mubr.msk.f32.mxu0 %vm15494_vm0, %v15495_v25 }
0x39c5   :  { %14969 = vmatprep.subr.bf16.mxu0 %v15492_v11 }
0x39c8   :  { %14971 = vmatpush3.bf16.msra.mxu0 %v16022_v12 }
0x39c9   :  { %14972 = vmatprep.subr.bf16.mxu0 %v15492_v11 }
0x39cb   :  { %14132 = vmatmul.mubr.f32.vlgmr.msra.gmra.mrb[22].mxu0 %v11459_v51 }
0x39cc   :  { %14974 = vmatpush3.bf16.msra.mxu0 %v16039_v38  ;;  %14142 = vmatprep.mubr.msk.f32.mxu0 %vm15494_vm0, %v15495_v25  ;;  %v11883_v38 = vpop.permute.xlu1 %11882 }
0x39cd   :  { %14975 = vmatprep.subr.bf16.mxu0 %v15492_v11 }
0x39d0   :  { %14977 = vmatpush3.bf16.msra.mxu0 %v16041_v39  ;;  %v11887_v39 = vsel %vm11886_vm10, %v11885_v34, %v11877_v37 }
0x39d1   :  { %14978 = vmatprep.subr.bf16.mxu0 %v15492_v11  ;;  %v11889_v6 = vsel %vm11888_vm11, %v11887_v39, %v16374_v41 }
0x39d3   :  { %14143 = vmatmul.mubr.f32.vlgmr.msra.gmra.mrb[22].mxu0 %v11457_v1 }
0x39d4   :  { %14980 = vmatpush3.bf16.msra.mxu0 %v16018_v2  ;;  %14153 = vmatprep.mubr.msk.f32.mxu0 %vm15494_vm0, %v15495_v25  ;;  %v11890_v2 = vsel %vm157_vm1, %v11880_v36, %v16604_v31 }
0x39d5   :  { %14981 = vmatprep.subr.bf16.mxu0 %v15492_v11 }
0x39d8   :  { %14983 = vmatpush3.bf16.msra.mxu0 %v16022_v12  ;;  %v11891_v12 = vsel %vm11886_vm10, %v11890_v2, %v11883_v38 }
0x39db   :  { %14154 = vmatmul.mubr.f32.vlgmr.msra.gmra.mrb[22].mxu0 %v11457_v1 }
0x3aae   :  { %v11869_v57 = vpop.f32.mrb[22].mxu0 }
0x3aaf   :  { %v15000_v25 = vadd.f32 %v16468_v47, %v11869_v57  ;;  %v14155_v11 = vpop.f32.mrb[23].mxu0 }
0x3ab1   :  { %v11892_v7 = vsel %vm11888_vm11, %v11891_v12, %v15000_v25 }
0x3ab2   :  { %v11895_v8 = vcombine.low %v11889_v6, %v11892_v7 }
0x3ab4   :  { %11947 = vst.sshfl [vmem:[#allocation11] sm:$0x33 pattern:$0x76325410] %v11895_v8 }
0x3ab5   :  { %15463 = shalt.err (!%p15460_p2)
}
0x3ab6   :  { %s15464_s0 = scalar_lea.hbm %s16760_s8, 64 }
0x3ab7   :  { %p15465_p3 = scmp.ne.s32.totalorder %s16760_s8, %s15464_s0  ;;  %p15468_p4 = scmp.lt.u32.totalorder %s15464_s0, %s16760_s8 }
0x3ab9   :  { %p15470_p5 = pnand %p15468_p4, %p15465_p3 }
0x3abb   :  { %15473 = shalt.err (!%p15470_p5)
}
0x3abc   :  { %11914 = dma.vmem_to_hbm [thread:$0]  %s11912_s5, 64, %s16760_s8, [#allocation4]  }
0x3abd   :  { %15480 = dma.done.wait [#allocation4], 64  }
0x3abe   :  { %15481 = vsyncadd [#allocation4], 4294967232 }
0x3abf   :  { %11918 = vsyncpa [#allocation3], 1 }
0x3ac0   :  { %11919 = vsyncpa [#allocation6], 1 }
0x3ac1   :  { %11920 = vsyncpa [#allocation9], 1 }
0x3ac2   :  { %11921 = vsyncpa [#allocation4], 1 }

</bundles_post_ra>
